<compile_context>
chip_gen: v7x
topology: tpu7x:2x2x1
jax: 0.10.0
libtpu: 0.0.40
codegen_flags: <defaults>
</compile_context>

<pallas_src>
import functools

import jax
import jax.numpy as jnp
from jax.experimental import pallas as pl
from jax.experimental.pallas import tpu as pltpu

EPS = 1e-5
LANE = 128
# Target rows (h_tile * W) handled per grid step. Per-step overhead is ~0.35us, and the
# elementwise passes are memory bound, so bigger is better as long as VMEM allows.
ROW_TILE_TARGET = 1024


# ---------------------------------------------------------------------------
# Small helpers
# ---------------------------------------------------------------------------
def _round_up(x, m):
    return (x + m - 1) // m * m


def _vmem_limit_bytes():
    """Per-generation scoped-VMEM limit: ~3/4 of physical, capped at 96 MiB."""
    try:
        cap = pltpu.get_tpu_info().vmem_capacity_bytes
    except Exception:  # query unavailable -> conservative (fits v7x's 64 MiB)
        cap = 64 * 1024 * 1024
    return int(min(cap * 3 // 4, 96 * 1024 * 1024))


def _compiler_params():
    return pltpu.CompilerParams(
        dimension_semantics=("parallel", "arbitrary"),  # batch parallel, H-tiles sequential
        vmem_limit_bytes=_vmem_limit_bytes(),
    )


def _pick_h_tile(h, w):
    """Largest divisor of H with h_tile*W <= ROW_TILE_TARGET; prefer >=2 H-tiles so the
    halo branches and the cross-tile BN partial-stat reduction are exercised."""
    cands = [c for c in range(1, h + 1) if h % c == 0 and c * w <= ROW_TILE_TARGET]
    if not cands:
        return h  # whole image per step; batch axis still provides parallelism
    sub = [c for c in cands if c < h]
    return max(sub) if sub else max(cands)


def _pad_last(x, size):
    pad = [(0, 0)] * (x.ndim - 1) + [(0, size - x.shape[-1])]
    return jnp.pad(x, pad)


def _pack_weight(w_oihw, cin_p, cout_p):
    """(Cout, Cin, 3, 3) -> (9, Cin_p, Cout_p) bf16, tap index k = kh*3 + kw."""
    co, ci, _, _ = w_oihw.shape
    w = jnp.transpose(w_oihw, (2, 3, 1, 0)).reshape(9, ci, co)
    w = jnp.pad(w, ((0, 0), (0, cin_p - ci), (0, cout_p - co)))
    return w.astype(jnp.bfloat16)


def _fold_bn(tot, gamma_p, beta_p, count):
    """(sum, sumsq) totals -> per-channel affine (scale, bias) for training-mode BN."""
    mean = tot[0] / count
    var = tot[1] / count - mean * mean  # biased variance
    scale = gamma_p * jax.lax.rsqrt(var + EPS)
    bias = beta_p - mean * scale
    return scale.reshape(1, -1), bias.reshape(1, -1)


def _tile_stats(acc):
    """(rows, Cp) f32 -> (1, 2, Cp) partial (sum, sum of squares) in one store-able value."""
    s = jnp.sum(acc, axis=0, keepdims=True)
    ss = jnp.sum(acc * acc, axis=0, keepdims=True)
    return jnp.concatenate([s, ss], axis=0)[None]


# ---------------------------------------------------------------------------
# Pallas kernels
# ---------------------------------------------------------------------------
def _conv1_kernel(x_ref, w_ref, y_ref, st_ref, acc_ref, *, h_tile, w):
    # x_ref : (H+2, W+2, Cin_p) bf16, spatially zero-padded, resident per batch element
    # w_ref : (9, Cin_p, Cout_p) bf16, resident
    # y_ref : (h_tile, W, Cout_p) bf16 output tile
    # st_ref: (1, 2, Cout_p) f32 per-tile partial BN statistics
    # acc_ref: (h_tile*W, Cout_p) f32 scratch accumulator
    h0 = pl.program_id(1) * h_tile
    cin_p = x_ref.shape[-1]
    for k in range(9):
        kh, kw = divmod(k, 3)
        xs = x_ref[pl.ds(h0 + kh, h_tile), kw:kw + w, :].reshape(h_tile * w, cin_p)
        p = jnp.dot(xs, w_ref[k], preferred_element_type=jnp.float32)
        if k == 0:
            acc_ref[...] = p
        else:
            acc_ref[...] += p
    acc = acc_ref[...]
    y_ref[...] = acc.reshape(y_ref.shape).astype(y_ref.dtype)
    st_ref[...] = _tile_stats(acc)


def _conv2_kernel(y1_ref, w_ref, s1_ref, o1_ref, y_ref, st_ref, a_scr, acc_ref,
                  *, h_tile, w):
    # y1_ref: (H, W, Cp) bf16 conv1 output, resident per batch element
    # s1/o1 : (1, Cp) f32 folded bn1 scale / bias (resident)
    # a_scr : (h_tile+2, W+2, Cp) bf16 scratch holding relu(bn1(y1)) with a zero halo ring
    # acc_ref: (h_tile*W, Cp) f32 scratch accumulator
    t = pl.program_id(1)
    n_t = pl.num_programs(1)
    h0 = t * h_tile
    cp = y1_ref.shape[-1]
    s1 = s1_ref[...].reshape(1, 1, cp)
    o1 = o1_ref[...].reshape(1, 1, cp)

    def act(v):  # fused bn1 + ReLU, bf16 result for the MXU (free VPU filler under matmul)
        return jnp.maximum(v.astype(jnp.float32) * s1 + o1, 0.0).astype(jnp.bfloat16)

    a_scr[...] = jnp.zeros_like(a_scr)  # halo ring (and image border) stays zero
    a_scr[1:h_tile + 1, 1:w + 1, :] = act(y1_ref[pl.ds(h0, h_tile), :, :])

    @pl.when(t > 0)
    def _():  # top halo row comes from the previous H-tile
        a_scr[0:1, 1:w + 1, :] = act(y1_ref[pl.ds(h0 - 1, 1), :, :])

    @pl.when(t < n_t - 1)
    def _():  # bottom halo row comes from the next H-tile
        a_scr[h_tile + 1:h_tile + 2, 1:w + 1, :] = act(y1_ref[pl.ds(h0 + h_tile, 1), :, :])

    for k in range(9):
        kh, kw = divmod(k, 3)
        xs = a_scr[kh:kh + h_tile, kw:kw + w, :].reshape(h_tile * w, cp)
        p = jnp.dot(xs, w_ref[k], preferred_element_type=jnp.float32)
        if k == 0:
            acc_ref[...] = p
        else:
            acc_ref[...] += p
    acc = acc_ref[...]
    y_ref[...] = acc.reshape(y_ref.shape).astype(y_ref.dtype)
    st_ref[...] = _tile_stats(acc)


def _bn2_add_relu_kernel(y2_ref, x_ref, s2_ref, o2_ref, o_ref, *, h_tile, w):
    # y2_ref: (h_tile, W, Cp) bf16 conv2 output tile
    # x_ref : (H+2, W+2, Cp) bf16 padded block input, resident per batch element (residual)
    h0 = pl.program_id(1) * h_tile
    cp = y2_ref.shape[-1]
    s2 = s2_ref[...].reshape(1, 1, cp)
    o2 = o2_ref[...].reshape(1, 1, cp)
    res = x_ref[pl.ds(h0 + 1, h_tile), 1:w + 1, :].astype(jnp.float32)
    z = y2_ref[...].astype(jnp.float32) * s2 + o2 + res
    o_ref[...] = jnp.maximum(z, 0.0).astype(o_ref.dtype)


# ---------------------------------------------------------------------------
# pallas_call wrappers
# ---------------------------------------------------------------------------
def _conv1(x_pad, w1p, h_tile):
    n, hp, wp, cin_p = x_pad.shape
    h, w = hp - 2, wp - 2
    cp = w1p.shape[-1]
    n_t = h // h_tile
    y1, st = pl.pallas_call(
        functools.partial(_conv1_kernel, h_tile=h_tile, w=w),
        grid=(n, n_t),
        in_specs=[
            pl.BlockSpec((None, hp, wp, cin_p), lambda i, t: (i, 0, 0, 0)),  # resident/batch
            pl.BlockSpec((9, cin_p, cp), lambda i, t: (0, 0, 0)),            # resident weight
        ],
        out_specs=[
            pl.BlockSpec((None, h_tile, w, cp), lambda i, t: (i, t, 0, 0)),
            pl.BlockSpec((1, 2, cp), lambda i, t: (i * n_t + t, 0, 0)),
        ],
        out_shape=[
            jax.ShapeDtypeStruct((n, h, w, cp), jnp.bfloat16),
            jax.ShapeDtypeStruct((n * n_t, 2, cp), jnp.float32),
        ],
        scratch_shapes=[pltpu.VMEM((h_tile * w, cp), jnp.float32)],
        compiler_params=_compiler_params(),
    )(x_pad, w1p)
    return y1, st.sum(axis=0)  # tiny (2, Cp) reduction in plain JAX


def _conv2(y1, w2p, s1, o1, h_tile):
    n, h, w, cp = y1.shape
    n_t = h // h_tile
    y2, st = pl.pallas_call(
        functools.partial(_conv2_kernel, h_tile=h_tile, w=w),
        grid=(n, n_t),
        in_specs=[
            pl.BlockSpec((None, h, w, cp), lambda i, t: (i, 0, 0, 0)),   # resident per batch
            pl.BlockSpec((9, cp, cp), lambda i, t: (0, 0, 0)),           # resident weight
            pl.BlockSpec((1, cp), lambda i, t: (0, 0)),                  # bn1 scale
            pl.BlockSpec((1, cp), lambda i, t: (0, 0)),                  # bn1 bias
        ],
        out_specs=[
            pl.BlockSpec((None, h_tile, w, cp), lambda i, t: (i, t, 0, 0)),
            pl.BlockSpec((1, 2, cp), lambda i, t: (i * n_t + t, 0, 0)),
        ],
        out_shape=[
            jax.ShapeDtypeStruct((n, h, w, cp), jnp.bfloat16),
            jax.ShapeDtypeStruct((n * n_t, 2, cp), jnp.float32),
        ],
        scratch_shapes=[
            pltpu.VMEM((h_tile + 2, w + 2, cp), jnp.bfloat16),
            pltpu.VMEM((h_tile * w, cp), jnp.float32),
        ],
        compiler_params=_compiler_params(),
    )(y1, w2p, s1, o1)
    return y2, st.sum(axis=0)


def _bn2_add_relu(y2, x_pad, s2, o2, h_tile):
    n, h, w, cp = y2.shape
    n_t = h // h_tile
    return pl.pallas_call(
        functools.partial(_bn2_add_relu_kernel, h_tile=h_tile, w=w),
        grid=(n, n_t),
        in_specs=[
            pl.BlockSpec((None, h_tile, w, cp), lambda i, t: (i, t, 0, 0)),
            pl.BlockSpec((None, h + 2, w + 2, cp), lambda i, t: (i, 0, 0, 0)),  # residual src
            pl.BlockSpec((1, cp), lambda i, t: (0, 0)),
            pl.BlockSpec((1, cp), lambda i, t: (0, 0)),
        ],
        out_specs=pl.BlockSpec((None, h_tile, w, cp), lambda i, t: (i, t, 0, 0)),
        out_shape=jax.ShapeDtypeStruct((n, h, w, cp), jnp.float32),
        compiler_params=_compiler_params(),
    )(y2, x_pad, s2, o2)


# ---------------------------------------------------------------------------
# BasicBlock forward (inplanes == planes, stride=1, downsample=None)
# ---------------------------------------------------------------------------
def basic_block_forward(x_nchw, w1, g1, b1, w2, g2, b2):
    n, c, h, w = x_nchw.shape
    planes = w1.shape[0]
    assert planes == c and w2.shape == (planes, planes, 3, 3), \
        "identity residual requires inplanes == planes (stride=1, downsample=None)"

    cin_p = _round_up(c, LANE)
    cp = _round_up(planes, LANE)
    h_tile = _pick_h_tile(h, w)
    count = n * h * w  # true element count per channel (no padded rows)

    # NCHW -> spatially + channel padded NHWC bf16 (single copy; also used as the residual).
    x_nhwc = jnp.transpose(x_nchw, (0, 2, 3, 1))
    x_pad = jnp.pad(x_nhwc, ((0, 0), (1, 1), (1, 1), (0, cin_p - c))).astype(jnp.bfloat16)

    g1p = _pad_last(g1.astype(jnp.float32), cp)
    b1p = _pad_last(b1.astype(jnp.float32), cp)
    g2p = _pad_last(g2.astype(jnp.float32), cp)
    b2p = _pad_last(b2.astype(jnp.float32), cp)

    # ---- conv1 (+ bn1 partial stats); y1 stays bf16 in HBM -------------------
    y1, tot1 = _conv1(x_pad, _pack_weight(w1, cin_p, cp), h_tile)
    s1, o1 = _fold_bn(tot1, g1p, b1p, count)

    # ---- conv2 with bn1+ReLU fused into its input path (+ bn2 partial stats) -
    y2, tot2 = _conv2(y1, _pack_weight(w2, cp, cp), s1, o1, h_tile)
    s2, o2 = _fold_bn(tot2, g2p, b2p, count)

    # ---- bn2 + residual (read from x_pad) + ReLU -----------------------------
    out = _bn2_add_relu(y2, x_pad, s2, o2, h_tile)
    return jnp.transpose(out[..., :planes], (0, 3, 1, 2))  # back to NCHW


# ---------------------------------------------------------------------------
# Reference (matches the kernel's MXU operand precision: bf16 inputs, f32 accumulate)
# ---------------------------------------------------------------------------
def _conv3x3_ref(x, w):
    return jax.lax.conv_general_dilated(
        x.astype(jnp.bfloat16), w.astype(jnp.bfloat16),
        window_strides=(1, 1), padding=((1, 1), (1, 1)),
        dimension_numbers=("NCHW", "OIHW", "NCHW"),
        preferred_element_type=jnp.float32)


def _bn_ref(y, gamma, beta):
    mean = jnp.mean(y, axis=(0, 2, 3), keepdims=True)
    var = jnp.mean((y - mean) ** 2, axis=(0, 2, 3), keepdims=True)
    yhat = (y - mean) * jax.lax.rsqrt(var + EPS)
    return yhat * gamma.reshape(1, -1, 1, 1) + beta.reshape(1, -1, 1, 1)


def _reference(x, w1, g1, b1, w2, g2, b2):
    out = jax.nn.relu(_bn_ref(_conv3x3_ref(x, w1), g1, b1))
    out = _bn_ref(_conv3x3_ref(out, w2), g2, b2)
    return jax.nn.relu(out + x)


if __name__ == "__main__":
    key = jax.random.PRNGKey(0)
    ks = jax.random.split(key, 7)

    N, C, H, W = 2, 4, 16, 16          # inplanes == planes == 4, stride=1, downsample=None
    planes = C

    x = jax.random.normal(ks[0], (N, C, H, W), jnp.float32)
    w1 = jax.random.normal(ks[1], (planes, C, 3, 3), jnp.float32) * 0.2
    w2 = jax.random.normal(ks[2], (planes, planes, 3, 3), jnp.float32) * 0.2
    g1 = jax.random.uniform(ks[3], (planes,), jnp.float32, 0.5, 1.5)
    b1 = jax.random.normal(ks[4], (planes,), jnp.float32) * 0.1
    g2 = jax.random.uniform(ks[5], (planes,), jnp.float32, 0.5, 1.5)
    b2 = jax.random.normal(ks[6], (planes,), jnp.float32) * 0.1

    fwd = jax.jit(basic_block_forward)
    out = jax.block_until_ready(fwd(x, w1, g1, b1, w2, g2, b2))

    ref = _reference(x, w1, g1, b1, w2, g2, b2)
    assert out.shape == (N, C, H, W), out.shape
    max_err = float(jnp.max(jnp.abs(out - ref)))
    # bf16 intermediates (y1/y2) and bf16 residual (per perf review) widen the error a bit
    # versus the mostly-f32 reference; BN statistics themselves are accumulated in f32.
    assert jnp.allclose(out, ref, atol=3e-2, rtol=3e-2), f"max_err={max_err}"

    print("KERNEL_OK")
</pallas_src>

<mosaic_0001>
module attributes {stable_mosaic.version = 11 : i64} {
  func.func @_conv1_kernel(%arg0: i32, %arg1: i32, %arg2: memref<1x18x18x128xbf16, #tpu.memory_space<vmem>>, %arg3: memref<9x128x128xbf16, #tpu.memory_space<vmem>>, %arg4: memref<1x8x16x128xbf16, #tpu.memory_space<vmem>>, %arg5: memref<1x2x128xf32, #tpu.memory_space<vmem>>, %arg6: memref<128x128xf32, #tpu.memory_space<vmem>>) attributes {dimension_semantics = [#tpu.dimension_semantics<parallel>, #tpu.dimension_semantics<arbitrary>], iteration_bounds = array<i64: 2, 2>, scalar_prefetch = 0 : i64, scratch_operands = 1 : i64, tpu.core_type = #tpu.core_type<tc>, window_params = [{transform_indices = @transform_0, window_bounds = array<i64: 1, 18, 18, 128>}, {pipeline_mode = #tpu.pipeline_mode<synchronous>, transform_indices = @transform_1, window_bounds = array<i64: 9, 128, 128>}, {transform_indices = @transform_2, window_bounds = array<i64: 1, 8, 16, 128>}, {transform_indices = @transform_3, window_bounds = array<i64: 1, 2, 128>}]} {
    %c8_i32 = arith.constant 8 : i32
    %0 = arith.muli %arg1, %c8_i32 : i32
    %c0_i32 = arith.constant 0 : i32
    %1 = arith.addi %0, %c0_i32 : i32
    %c0 = arith.constant 0 : index
    %2 = arith.index_cast %1 : i32 to index
    %c0_0 = arith.constant 0 : index
    %c0_1 = arith.constant 0 : index
    %3 = vector.load %arg2[%c0, %2, %c0_0, %c0_1] : memref<1x18x18x128xbf16, #tpu.memory_space<vmem>>, vector<1x8x16x128xbf16>
    %4 = vector.shape_cast %3 : vector<1x8x16x128xbf16> to vector<8x16x128xbf16>
    %5 = vector.shape_cast %4 : vector<8x16x128xbf16> to vector<128x128xbf16>
    %c0_2 = arith.constant 0 : index
    %c0_3 = arith.constant 0 : index
    %c0_4 = arith.constant 0 : index
    %6 = vector.load %arg3[%c0_2, %c0_3, %c0_4] : memref<9x128x128xbf16, #tpu.memory_space<vmem>>, vector<1x128x128xbf16>
    %7 = vector.shape_cast %6 : vector<1x128x128xbf16> to vector<128x128xbf16>
    %cst = arith.constant dense<0.000000e+00> : vector<128x128xf32>
    %8 = tpu.matmul %5, %7, %cst {dimension_numbers = #tpu.dot_dimension_numbers<[1], [0], [0], [1], [0, 0, 1, 1], [], []>} : vector<128x128xbf16>, vector<128x128xbf16>, vector<128x128xf32> -> vector<128x128xf32>
    %c0_5 = arith.constant 0 : index
    %c0_6 = arith.constant 0 : index
    %9 = vector.load %arg6[%c0_5, %c0_6] : memref<128x128xf32, #tpu.memory_space<vmem>>, vector<128x128xf32>
    tpu.vector_store %arg6[%c0_5, %c0_6], %8 {strides = array<i32>} : memref<128x128xf32, #tpu.memory_space<vmem>>, vector<128x128xf32>,
    %c0_i32_7 = arith.constant 0 : i32
    %10 = arith.addi %0, %c0_i32_7 : i32
    %c0_8 = arith.constant 0 : index
    %11 = arith.index_cast %10 : i32 to index
    %c1 = arith.constant 1 : index
    %c0_9 = arith.constant 0 : index
    %12 = vector.load %arg2[%c0_8, %11, %c1, %c0_9] : memref<1x18x18x128xbf16, #tpu.memory_space<vmem>>, vector<1x8x16x128xbf16>
    %13 = vector.shape_cast %12 : vector<1x8x16x128xbf16> to vector<8x16x128xbf16>
    %14 = vector.shape_cast %13 : vector<8x16x128xbf16> to vector<128x128xbf16>
    %c1_10 = arith.constant 1 : index
    %c0_11 = arith.constant 0 : index
    %c0_12 = arith.constant 0 : index
    %15 = vector.load %arg3[%c1_10, %c0_11, %c0_12] : memref<9x128x128xbf16, #tpu.memory_space<vmem>>, vector<1x128x128xbf16>
    %16 = vector.shape_cast %15 : vector<1x128x128xbf16> to vector<128x128xbf16>
    %cst_13 = arith.constant dense<0.000000e+00> : vector<128x128xf32>
    %17 = tpu.matmul %14, %16, %cst_13 {dimension_numbers = #tpu.dot_dimension_numbers<[1], [0], [0], [1], [0, 0, 1, 1], [], []>} : vector<128x128xbf16>, vector<128x128xbf16>, vector<128x128xf32> -> vector<128x128xf32>
    %c0_14 = arith.constant 0 : index
    %c0_15 = arith.constant 0 : index
    %18 = vector.load %arg6[%c0_14, %c0_15] : memref<128x128xf32, #tpu.memory_space<vmem>>, vector<128x128xf32>
    %19 = arith.addf %18, %17 : vector<128x128xf32>
    %c0_16 = arith.constant 0 : index
    %c0_17 = arith.constant 0 : index
    %20 = vector.load %arg6[%c0_16, %c0_17] : memref<128x128xf32, #tpu.memory_space<vmem>>, vector<128x128xf32>
    tpu.vector_store %arg6[%c0_16, %c0_17], %19 {strides = array<i32>} : memref<128x128xf32, #tpu.memory_space<vmem>>, vector<128x128xf32>,
    %c0_i32_18 = arith.constant 0 : i32
    %21 = arith.addi %0, %c0_i32_18 : i32
    %c0_19 = arith.constant 0 : index
    %22 = arith.index_cast %21 : i32 to index
    %c2 = arith.constant 2 : index
    %c0_20 = arith.constant 0 : index
    %23 = vector.load %arg2[%c0_19, %22, %c2, %c0_20] : memref<1x18x18x128xbf16, #tpu.memory_space<vmem>>, vector<1x8x16x128xbf16>
    %24 = vector.shape_cast %23 : vector<1x8x16x128xbf16> to vector<8x16x128xbf16>
    %25 = vector.shape_cast %24 : vector<8x16x128xbf16> to vector<128x128xbf16>
    %c2_21 = arith.constant 2 : index
    %c0_22 = arith.constant 0 : index
    %c0_23 = arith.constant 0 : index
    %26 = vector.load %arg3[%c2_21, %c0_22, %c0_23] : memref<9x128x128xbf16, #tpu.memory_space<vmem>>, vector<1x128x128xbf16>
    %27 = vector.shape_cast %26 : vector<1x128x128xbf16> to vector<128x128xbf16>
    %cst_24 = arith.constant dense<0.000000e+00> : vector<128x128xf32>
    %28 = tpu.matmul %25, %27, %cst_24 {dimension_numbers = #tpu.dot_dimension_numbers<[1], [0], [0], [1], [0, 0, 1, 1], [], []>} : vector<128x128xbf16>, vector<128x128xbf16>, vector<128x128xf32> -> vector<128x128xf32>
    %c0_25 = arith.constant 0 : index
    %c0_26 = arith.constant 0 : index
    %29 = vector.load %arg6[%c0_25, %c0_26] : memref<128x128xf32, #tpu.memory_space<vmem>>, vector<128x128xf32>
    %30 = arith.addf %29, %28 : vector<128x128xf32>
    %c0_27 = arith.constant 0 : index
    %c0_28 = arith.constant 0 : index
    %31 = vector.load %arg6[%c0_27, %c0_28] : memref<128x128xf32, #tpu.memory_space<vmem>>, vector<128x128xf32>
    tpu.vector_store %arg6[%c0_27, %c0_28], %30 {strides = array<i32>} : memref<128x128xf32, #tpu.memory_space<vmem>>, vector<128x128xf32>,
    %c1_i32 = arith.constant 1 : i32
    %32 = arith.addi %0, %c1_i32 : i32
    %c0_29 = arith.constant 0 : index
    %33 = arith.index_cast %32 : i32 to index
    %c0_30 = arith.constant 0 : index
    %c0_31 = arith.constant 0 : index
    %34 = vector.load %arg2[%c0_29, %33, %c0_30, %c0_31] : memref<1x18x18x128xbf16, #tpu.memory_space<vmem>>, vector<1x8x16x128xbf16>
    %35 = vector.shape_cast %34 : vector<1x8x16x128xbf16> to vector<8x16x128xbf16>
    %36 = vector.shape_cast %35 : vector<8x16x128xbf16> to vector<128x128xbf16>
    %c3 = arith.constant 3 : index
    %c0_32 = arith.constant 0 : index
    %c0_33 = arith.constant 0 : index
    %37 = vector.load %arg3[%c3, %c0_32, %c0_33] : memref<9x128x128xbf16, #tpu.memory_space<vmem>>, vector<1x128x128xbf16>
    %38 = vector.shape_cast %37 : vector<1x128x128xbf16> to vector<128x128xbf16>
    %cst_34 = arith.constant dense<0.000000e+00> : vector<128x128xf32>
    %39 = tpu.matmul %36, %38, %cst_34 {dimension_numbers = #tpu.dot_dimension_numbers<[1], [0], [0], [1], [0, 0, 1, 1], [], []>} : vector<128x128xbf16>, vector<128x128xbf16>, vector<128x128xf32> -> vector<128x128xf32>
    %c0_35 = arith.constant 0 : index
    %c0_36 = arith.constant 0 : index
    %40 = vector.load %arg6[%c0_35, %c0_36] : memref<128x128xf32, #tpu.memory_space<vmem>>, vector<128x128xf32>
    %41 = arith.addf %40, %39 : vector<128x128xf32>
    %c0_37 = arith.constant 0 : index
    %c0_38 = arith.constant 0 : index
    %42 = vector.load %arg6[%c0_37, %c0_38] : memref<128x128xf32, #tpu.memory_space<vmem>>, vector<128x128xf32>
    tpu.vector_store %arg6[%c0_37, %c0_38], %41 {strides = array<i32>} : memref<128x128xf32, #tpu.memory_space<vmem>>, vector<128x128xf32>,
    %c1_i32_39 = arith.constant 1 : i32
    %43 = arith.addi %0, %c1_i32_39 : i32
    %c0_40 = arith.constant 0 : index
    %44 = arith.index_cast %43 : i32 to index
    %c1_41 = arith.constant 1 : index
    %c0_42 = arith.constant 0 : index
    %45 = vector.load %arg2[%c0_40, %44, %c1_41, %c0_42] : memref<1x18x18x128xbf16, #tpu.memory_space<vmem>>, vector<1x8x16x128xbf16>
    %46 = vector.shape_cast %45 : vector<1x8x16x128xbf16> to vector<8x16x128xbf16>
    %47 = vector.shape_cast %46 : vector<8x16x128xbf16> to vector<128x128xbf16>
    %c4 = arith.constant 4 : index
    %c0_43 = arith.constant 0 : index
    %c0_44 = arith.constant 0 : index
    %48 = vector.load %arg3[%c4, %c0_43, %c0_44] : memref<9x128x128xbf16, #tpu.memory_space<vmem>>, vector<1x128x128xbf16>
    %49 = vector.shape_cast %48 : vector<1x128x128xbf16> to vector<128x128xbf16>
    %cst_45 = arith.constant dense<0.000000e+00> : vector<128x128xf32>
    %50 = tpu.matmul %47, %49, %cst_45 {dimension_numbers = #tpu.dot_dimension_numbers<[1], [0], [0], [1], [0, 0, 1, 1], [], []>} : vector<128x128xbf16>, vector<128x128xbf16>, vector<128x128xf32> -> vector<128x128xf32>
    %c0_46 = arith.constant 0 : index
    %c0_47 = arith.constant 0 : index
    %51 = vector.load %arg6[%c0_46, %c0_47] : memref<128x128xf32, #tpu.memory_space<vmem>>, vector<128x128xf32>
    %52 = arith.addf %51, %50 : vector<128x128xf32>
    %c0_48 = arith.constant 0 : index
    %c0_49 = arith.constant 0 : index
    %53 = vector.load %arg6[%c0_48, %c0_49] : memref<128x128xf32, #tpu.memory_space<vmem>>, vector<128x128xf32>
    tpu.vector_store %arg6[%c0_48, %c0_49], %52 {strides = array<i32>} : memref<128x128xf32, #tpu.memory_space<vmem>>, vector<128x128xf32>,
    %c1_i32_50 = arith.constant 1 : i32
    %54 = arith.addi %0, %c1_i32_50 : i32
    %c0_51 = arith.constant 0 : index
    %55 = arith.index_cast %54 : i32 to index
    %c2_52 = arith.constant 2 : index
    %c0_53 = arith.constant 0 : index
    %56 = vector.load %arg2[%c0_51, %55, %c2_52, %c0_53] : memref<1x18x18x128xbf16, #tpu.memory_space<vmem>>, vector<1x8x16x128xbf16>
    %57 = vector.shape_cast %56 : vector<1x8x16x128xbf16> to vector<8x16x128xbf16>
    %58 = vector.shape_cast %57 : vector<8x16x128xbf16> to vector<128x128xbf16>
    %c5 = arith.constant 5 : index
    %c0_54 = arith.constant 0 : index
    %c0_55 = arith.constant 0 : index
    %59 = vector.load %arg3[%c5, %c0_54, %c0_55] : memref<9x128x128xbf16, #tpu.memory_space<vmem>>, vector<1x128x128xbf16>
    %60 = vector.shape_cast %59 : vector<1x128x128xbf16> to vector<128x128xbf16>
    %cst_56 = arith.constant dense<0.000000e+00> : vector<128x128xf32>
    %61 = tpu.matmul %58, %60, %cst_56 {dimension_numbers = #tpu.dot_dimension_numbers<[1], [0], [0], [1], [0, 0, 1, 1], [], []>} : vector<128x128xbf16>, vector<128x128xbf16>, vector<128x128xf32> -> vector<128x128xf32>
    %c0_57 = arith.constant 0 : index
    %c0_58 = arith.constant 0 : index
    %62 = vector.load %arg6[%c0_57, %c0_58] : memref<128x128xf32, #tpu.memory_space<vmem>>, vector<128x128xf32>
    %63 = arith.addf %62, %61 : vector<128x128xf32>
    %c0_59 = arith.constant 0 : index
    %c0_60 = arith.constant 0 : index
    %64 = vector.load %arg6[%c0_59, %c0_60] : memref<128x128xf32, #tpu.memory_space<vmem>>, vector<128x128xf32>
    tpu.vector_store %arg6[%c0_59, %c0_60], %63 {strides = array<i32>} : memref<128x128xf32, #tpu.memory_space<vmem>>, vector<128x128xf32>,
    %c2_i32 = arith.constant 2 : i32
    %65 = arith.addi %0, %c2_i32 : i32
    %c0_61 = arith.constant 0 : index
    %66 = arith.index_cast %65 : i32 to index
    %c0_62 = arith.constant 0 : index
    %c0_63 = arith.constant 0 : index
    %67 = vector.load %arg2[%c0_61, %66, %c0_62, %c0_63] : memref<1x18x18x128xbf16, #tpu.memory_space<vmem>>, vector<1x8x16x128xbf16>
    %68 = vector.shape_cast %67 : vector<1x8x16x128xbf16> to vector<8x16x128xbf16>
    %69 = vector.shape_cast %68 : vector<8x16x128xbf16> to vector<128x128xbf16>
    %c6 = arith.constant 6 : index
    %c0_64 = arith.constant 0 : index
    %c0_65 = arith.constant 0 : index
    %70 = vector.load %arg3[%c6, %c0_64, %c0_65] : memref<9x128x128xbf16, #tpu.memory_space<vmem>>, vector<1x128x128xbf16>
    %71 = vector.shape_cast %70 : vector<1x128x128xbf16> to vector<128x128xbf16>
    %cst_66 = arith.constant dense<0.000000e+00> : vector<128x128xf32>
    %72 = tpu.matmul %69, %71, %cst_66 {dimension_numbers = #tpu.dot_dimension_numbers<[1], [0], [0], [1], [0, 0, 1, 1], [], []>} : vector<128x128xbf16>, vector<128x128xbf16>, vector<128x128xf32> -> vector<128x128xf32>
    %c0_67 = arith.constant 0 : index
    %c0_68 = arith.constant 0 : index
    %73 = vector.load %arg6[%c0_67, %c0_68] : memref<128x128xf32, #tpu.memory_space<vmem>>, vector<128x128xf32>
    %74 = arith.addf %73, %72 : vector<128x128xf32>
    %c0_69 = arith.constant 0 : index
    %c0_70 = arith.constant 0 : index
    %75 = vector.load %arg6[%c0_69, %c0_70] : memref<128x128xf32, #tpu.memory_space<vmem>>, vector<128x128xf32>
    tpu.vector_store %arg6[%c0_69, %c0_70], %74 {strides = array<i32>} : memref<128x128xf32, #tpu.memory_space<vmem>>, vector<128x128xf32>,
    %c2_i32_71 = arith.constant 2 : i32
    %76 = arith.addi %0, %c2_i32_71 : i32
    %c0_72 = arith.constant 0 : index
    %77 = arith.index_cast %76 : i32 to index
    %c1_73 = arith.constant 1 : index
    %c0_74 = arith.constant 0 : index
    %78 = vector.load %arg2[%c0_72, %77, %c1_73, %c0_74] : memref<1x18x18x128xbf16, #tpu.memory_space<vmem>>, vector<1x8x16x128xbf16>
    %79 = vector.shape_cast %78 : vector<1x8x16x128xbf16> to vector<8x16x128xbf16>
    %80 = vector.shape_cast %79 : vector<8x16x128xbf16> to vector<128x128xbf16>
    %c7 = arith.constant 7 : index
    %c0_75 = arith.constant 0 : index
    %c0_76 = arith.constant 0 : index
    %81 = vector.load %arg3[%c7, %c0_75, %c0_76] : memref<9x128x128xbf16, #tpu.memory_space<vmem>>, vector<1x128x128xbf16>
    %82 = vector.shape_cast %81 : vector<1x128x128xbf16> to vector<128x128xbf16>
    %cst_77 = arith.constant dense<0.000000e+00> : vector<128x128xf32>
    %83 = tpu.matmul %80, %82, %cst_77 {dimension_numbers = #tpu.dot_dimension_numbers<[1], [0], [0], [1], [0, 0, 1, 1], [], []>} : vector<128x128xbf16>, vector<128x128xbf16>, vector<128x128xf32> -> vector<128x128xf32>
    %c0_78 = arith.constant 0 : index
    %c0_79 = arith.constant 0 : index
    %84 = vector.load %arg6[%c0_78, %c0_79] : memref<128x128xf32, #tpu.memory_space<vmem>>, vector<128x128xf32>
    %85 = arith.addf %84, %83 : vector<128x128xf32>
    %c0_80 = arith.constant 0 : index
    %c0_81 = arith.constant 0 : index
    %86 = vector.load %arg6[%c0_80, %c0_81] : memref<128x128xf32, #tpu.memory_space<vmem>>, vector<128x128xf32>
    tpu.vector_store %arg6[%c0_80, %c0_81], %85 {strides = array<i32>} : memref<128x128xf32, #tpu.memory_space<vmem>>, vector<128x128xf32>,
    %c2_i32_82 = arith.constant 2 : i32
    %87 = arith.addi %0, %c2_i32_82 : i32
    %c0_83 = arith.constant 0 : index
    %88 = arith.index_cast %87 : i32 to index
    %c2_84 = arith.constant 2 : index
    %c0_85 = arith.constant 0 : index
    %89 = vector.load %arg2[%c0_83, %88, %c2_84, %c0_85] : memref<1x18x18x128xbf16, #tpu.memory_space<vmem>>, vector<1x8x16x128xbf16>
    %90 = vector.shape_cast %89 : vector<1x8x16x128xbf16> to vector<8x16x128xbf16>
    %91 = vector.shape_cast %90 : vector<8x16x128xbf16> to vector<128x128xbf16>
    %c8 = arith.constant 8 : index
    %c0_86 = arith.constant 0 : index
    %c0_87 = arith.constant 0 : index
    %92 = vector.load %arg3[%c8, %c0_86, %c0_87] : memref<9x128x128xbf16, #tpu.memory_space<vmem>>, vector<1x128x128xbf16>
    %93 = vector.shape_cast %92 : vector<1x128x128xbf16> to vector<128x128xbf16>
    %cst_88 = arith.constant dense<0.000000e+00> : vector<128x128xf32>
    %94 = tpu.matmul %91, %93, %cst_88 {dimension_numbers = #tpu.dot_dimension_numbers<[1], [0], [0], [1], [0, 0, 1, 1], [], []>} : vector<128x128xbf16>, vector<128x128xbf16>, vector<128x128xf32> -> vector<128x128xf32>
    %c0_89 = arith.constant 0 : index
    %c0_90 = arith.constant 0 : index
    %95 = vector.load %arg6[%c0_89, %c0_90] : memref<128x128xf32, #tpu.memory_space<vmem>>, vector<128x128xf32>
    %96 = arith.addf %95, %94 : vector<128x128xf32>
    %c0_91 = arith.constant 0 : index
    %c0_92 = arith.constant 0 : index
    %97 = vector.load %arg6[%c0_91, %c0_92] : memref<128x128xf32, #tpu.memory_space<vmem>>, vector<128x128xf32>
    tpu.vector_store %arg6[%c0_91, %c0_92], %96 {strides = array<i32>} : memref<128x128xf32, #tpu.memory_space<vmem>>, vector<128x128xf32>,
    %c0_93 = arith.constant 0 : index
    %c0_94 = arith.constant 0 : index
    %98 = vector.load %arg6[%c0_93, %c0_94] : memref<128x128xf32, #tpu.memory_space<vmem>>, vector<128x128xf32>
    %99 = vector.shape_cast %98 : vector<128x128xf32> to vector<8x16x128xf32>
    %100 = arith.truncf %99 : vector<8x16x128xf32> to vector<8x16x128xbf16>
    %c0_95 = arith.constant 0 : index
    %c0_96 = arith.constant 0 : index
    %c0_97 = arith.constant 0 : index
    %c0_98 = arith.constant 0 : index
    %101 = vector.load %arg4[%c0_95, %c0_96, %c0_97, %c0_98] : memref<1x8x16x128xbf16, #tpu.memory_space<vmem>>, vector<1x8x16x128xbf16>
    %102 = vector.shape_cast %101 : vector<1x8x16x128xbf16> to vector<8x16x128xbf16>
    %103 = vector.shape_cast %100 : vector<8x16x128xbf16> to vector<1x8x16x128xbf16>
    tpu.vector_store %arg4[%c0_95, %c0_96, %c0_97, %c0_98], %103 {strides = array<i32>} : memref<1x8x16x128xbf16, #tpu.memory_space<vmem>>, vector<1x8x16x128xbf16>,
    %cst_99 = arith.constant dense<0.000000e+00> : vector<128xf32>
    %104 = vector.multi_reduction <add>, %98, %cst_99 [0] : vector<128x128xf32> to vector<128xf32>
    %105 = vector.shape_cast %104 : vector<128xf32> to vector<1x128xf32>
    %106 = arith.mulf %98, %98 : vector<128x128xf32>
    %cst_100 = arith.constant dense<0.000000e+00> : vector<128xf32>
    %107 = vector.multi_reduction <add>, %106, %cst_100 [0] : vector<128x128xf32> to vector<128xf32>
    %108 = vector.shape_cast %107 : vector<128xf32> to vector<1x128xf32>
    %109 = tpu.concatenate %105, %108 in 0 : vector<1x128xf32>, vector<1x128xf32> -> vector<2x128xf32>
    %110 = vector.shape_cast %109 : vector<2x128xf32> to vector<1x2x128xf32>
    %c0_101 = arith.constant 0 : index
    %c0_102 = arith.constant 0 : index
    %c0_103 = arith.constant 0 : index
    %111 = vector.load %arg5[%c0_101, %c0_102, %c0_103] : memref<1x2x128xf32, #tpu.memory_space<vmem>>, vector<1x2x128xf32>
    tpu.vector_store %arg5[%c0_101, %c0_102, %c0_103], %110 {strides = array<i32>} : memref<1x2x128xf32, #tpu.memory_space<vmem>>, vector<1x2x128xf32>,
    return
  }
  func.func @transform_0(%arg0: i32, %arg1: i32) -> (i32, i32, i32, i32) {
    %c0_i32 = arith.constant 0 : i32
    %c0_i32_0 = arith.constant 0 : i32
    %c0_i32_1 = arith.constant 0 : i32
    %c0_i32_2 = arith.constant 0 : i32
    return %arg0, %c0_i32, %c0_i32_0, %c0_i32_1 : i32, i32, i32, i32
  }
  func.func @transform_1(%arg0: i32, %arg1: i32) -> (i32, i32, i32) {
    %c0_i32 = arith.constant 0 : i32
    %c0_i32_0 = arith.constant 0 : i32
    %c0_i32_1 = arith.constant 0 : i32
    %c0_i32_2 = arith.constant 0 : i32
    return %c0_i32, %c0_i32_0, %c0_i32_1 : i32, i32, i32
  }
  func.func @transform_2(%arg0: i32, %arg1: i32) -> (i32, i32, i32, i32) {
    %c0_i32 = arith.constant 0 : i32
    %c0_i32_0 = arith.constant 0 : i32
    %c0_i32_1 = arith.constant 0 : i32
    return %arg0, %arg1, %c0_i32, %c0_i32_0 : i32, i32, i32, i32
  }
  func.func @transform_3(%arg0: i32, %arg1: i32) -> (i32, i32, i32) {
    %c2_i32 = arith.constant 2 : i32
    %0 = arith.muli %arg0, %c2_i32 : i32
    %1 = arith.addi %0, %arg1 : i32
    %c0_i32 = arith.constant 0 : i32
    %c0_i32_0 = arith.constant 0 : i32
    %c0_i32_1 = arith.constant 0 : i32
    return %1, %c0_i32, %c0_i32_0 : i32, i32, i32
  }
}

module attributes {stable_mosaic.version = 11 : i64} {
  func.func @_conv2_kernel(%arg0: i32, %arg1: i32, %arg2: memref<1x16x16x128xbf16, #tpu.memory_space<vmem>>, %arg3: memref<9x128x128xbf16, #tpu.memory_space<vmem>>, %arg4: memref<1x128xf32, #tpu.memory_space<vmem>>, %arg5: memref<1x128xf32, #tpu.memory_space<vmem>>, %arg6: memref<1x8x16x128xbf16, #tpu.memory_space<vmem>>, %arg7: memref<1x2x128xf32, #tpu.memory_space<vmem>>, %arg8: memref<10x18x128xbf16, #tpu.memory_space<vmem>>, %arg9: memref<128x128xf32, #tpu.memory_space<vmem>>) attributes {dimension_semantics = [#tpu.dimension_semantics<parallel>, #tpu.dimension_semantics<arbitrary>], iteration_bounds = array<i64: 2, 2>, scalar_prefetch = 0 : i64, scratch_operands = 2 : i64, tpu.core_type = #tpu.core_type<tc>, window_params = [{transform_indices = @transform_0, window_bounds = array<i64: 1, 16, 16, 128>}, {pipeline_mode = #tpu.pipeline_mode<synchronous>, transform_indices = @transform_1, window_bounds = array<i64: 9, 128, 128>}, {pipeline_mode = #tpu.pipeline_mode<synchronous>, transform_indices = @transform_2, window_bounds = array<i64: 1, 128>}, {pipeline_mode = #tpu.pipeline_mode<synchronous>, transform_indices = @transform_3, window_bounds = array<i64: 1, 128>}, {transform_indices = @transform_4, window_bounds = array<i64: 1, 8, 16, 128>}, {transform_indices = @transform_5, window_bounds = array<i64: 1, 2, 128>}]} {
    %c8_i32 = arith.constant 8 : i32
    %0 = arith.muli %arg1, %c8_i32 : i32
    %c0 = arith.constant 0 : index
    %c0_0 = arith.constant 0 : index
    %1 = vector.load %arg4[%c0, %c0_0] : memref<1x128xf32, #tpu.memory_space<vmem>>, vector<1x128xf32>
    %2 = vector.shape_cast %1 : vector<1x128xf32> to vector<1x1x128xf32>
    %c0_1 = arith.constant 0 : index
    %c0_2 = arith.constant 0 : index
    %3 = vector.load %arg5[%c0_1, %c0_2] : memref<1x128xf32, #tpu.memory_space<vmem>>, vector<1x128xf32>
    %4 = vector.shape_cast %3 : vector<1x128xf32> to vector<1x1x128xf32>
    %cst = arith.constant 0.000000e+00 : bf16
    %5 = vector.broadcast %cst : bf16 to vector<10x18x128xbf16>
    %c0_3 = arith.constant 0 : index
    %c0_4 = arith.constant 0 : index
    %c0_5 = arith.constant 0 : index
    %6 = vector.load %arg8[%c0_3, %c0_4, %c0_5] : memref<10x18x128xbf16, #tpu.memory_space<vmem>>, vector<10x18x128xbf16>
    tpu.vector_store %arg8[%c0_3, %c0_4, %c0_5], %5 {strides = array<i32>} : memref<10x18x128xbf16, #tpu.memory_space<vmem>>, vector<10x18x128xbf16>,
    %c0_6 = arith.constant 0 : index
    %7 = arith.index_cast %0 : i32 to index
    %c0_7 = arith.constant 0 : index
    %c0_8 = arith.constant 0 : index
    %8 = vector.load %arg2[%c0_6, %7, %c0_7, %c0_8] : memref<1x16x16x128xbf16, #tpu.memory_space<vmem>>, vector<1x8x16x128xbf16>
    %9 = vector.shape_cast %8 : vector<1x8x16x128xbf16> to vector<8x16x128xbf16>
    %10 = arith.extf %9 : vector<8x16x128xbf16> to vector<8x16x128xf32>
    %11 = vector.broadcast %2 : vector<1x1x128xf32> to vector<8x16x128xf32>
    %12 = arith.mulf %10, %11 : vector<8x16x128xf32>
    %13 = vector.broadcast %4 : vector<1x1x128xf32> to vector<8x16x128xf32>
    %14 = arith.addf %12, %13 : vector<8x16x128xf32>
    %cst_9 = arith.constant 0.000000e+00 : f32
    %15 = vector.broadcast %cst_9 : f32 to vector<8x16x128xf32>
    %16 = arith.maximumf %14, %15 : vector<8x16x128xf32>
    %17 = arith.truncf %16 : vector<8x16x128xf32> to vector<8x16x128xbf16>
    %c1 = arith.constant 1 : index
    %c1_10 = arith.constant 1 : index
    %c0_11 = arith.constant 0 : index
    %18 = vector.load %arg8[%c1, %c1_10, %c0_11] : memref<10x18x128xbf16, #tpu.memory_space<vmem>>, vector<8x16x128xbf16>
    tpu.vector_store %arg8[%c1, %c1_10, %c0_11], %17 {strides = array<i32>} : memref<10x18x128xbf16, #tpu.memory_space<vmem>>, vector<8x16x128xbf16>,
    %c0_i32 = arith.constant 0 : i32
    %19 = arith.cmpi sgt, %arg1, %c0_i32 : i32
    %20 = arith.extui %19 : i1 to i32
    %c0_i32_12 = arith.constant 0 : i32
    %21 = arith.cmpi ne, %20, %c0_i32_12 : i32
    scf.if %21 {
      %c1_i32_115 = arith.constant 1 : i32
      %109 = arith.subi %0, %c1_i32_115 : i32
      %c0_116 = arith.constant 0 : index
      %110 = arith.index_cast %109 : i32 to index
      %c0_117 = arith.constant 0 : index
      %c0_118 = arith.constant 0 : index
      %111 = vector.load %arg2[%c0_116, %110, %c0_117, %c0_118] : memref<1x16x16x128xbf16, #tpu.memory_space<vmem>>, vector<1x1x16x128xbf16>
      %112 = vector.shape_cast %111 : vector<1x1x16x128xbf16> to vector<1x16x128xbf16>
      %113 = arith.extf %112 : vector<1x16x128xbf16> to vector<1x16x128xf32>
      %114 = vector.broadcast %2 : vector<1x1x128xf32> to vector<1x16x128xf32>
      %115 = arith.mulf %113, %114 : vector<1x16x128xf32>
      %116 = vector.broadcast %4 : vector<1x1x128xf32> to vector<1x16x128xf32>
      %117 = arith.addf %115, %116 : vector<1x16x128xf32>
      %cst_119 = arith.constant 0.000000e+00 : f32
      %118 = vector.broadcast %cst_119 : f32 to vector<1x16x128xf32>
      %119 = arith.maximumf %117, %118 : vector<1x16x128xf32>
      %120 = arith.truncf %119 : vector<1x16x128xf32> to vector<1x16x128xbf16>
      %c0_120 = arith.constant 0 : index
      %c1_121 = arith.constant 1 : index
      %c0_122 = arith.constant 0 : index
      %121 = vector.load %arg8[%c0_120, %c1_121, %c0_122] : memref<10x18x128xbf16, #tpu.memory_space<vmem>>, vector<1x16x128xbf16>
      tpu.vector_store %arg8[%c0_120, %c1_121, %c0_122], %120 {strides = array<i32>} : memref<10x18x128xbf16, #tpu.memory_space<vmem>>, vector<1x16x128xbf16>,
    } else {
    }
    %c1_i32 = arith.constant 1 : i32
    %22 = arith.cmpi slt, %arg1, %c1_i32 : i32
    %23 = arith.extui %22 : i1 to i32
    %c0_i32_13 = arith.constant 0 : i32
    %24 = arith.cmpi ne, %23, %c0_i32_13 : i32
    scf.if %24 {
      %c8_i32_115 = arith.constant 8 : i32
      %109 = arith.addi %0, %c8_i32_115 : i32
      %c0_116 = arith.constant 0 : index
      %110 = arith.index_cast %109 : i32 to index
      %c0_117 = arith.constant 0 : index
      %c0_118 = arith.constant 0 : index
      %111 = vector.load %arg2[%c0_116, %110, %c0_117, %c0_118] : memref<1x16x16x128xbf16, #tpu.memory_space<vmem>>, vector<1x1x16x128xbf16>
      %112 = vector.shape_cast %111 : vector<1x1x16x128xbf16> to vector<1x16x128xbf16>
      %113 = arith.extf %112 : vector<1x16x128xbf16> to vector<1x16x128xf32>
      %114 = vector.broadcast %2 : vector<1x1x128xf32> to vector<1x16x128xf32>
      %115 = arith.mulf %113, %114 : vector<1x16x128xf32>
      %116 = vector.broadcast %4 : vector<1x1x128xf32> to vector<1x16x128xf32>
      %117 = arith.addf %115, %116 : vector<1x16x128xf32>
      %cst_119 = arith.constant 0.000000e+00 : f32
      %118 = vector.broadcast %cst_119 : f32 to vector<1x16x128xf32>
      %119 = arith.maximumf %117, %118 : vector<1x16x128xf32>
      %120 = arith.truncf %119 : vector<1x16x128xf32> to vector<1x16x128xbf16>
      %c9 = arith.constant 9 : index
      %c1_120 = arith.constant 1 : index
      %c0_121 = arith.constant 0 : index
      %121 = vector.load %arg8[%c9, %c1_120, %c0_121] : memref<10x18x128xbf16, #tpu.memory_space<vmem>>, vector<1x16x128xbf16>
      tpu.vector_store %arg8[%c9, %c1_120, %c0_121], %120 {strides = array<i32>} : memref<10x18x128xbf16, #tpu.memory_space<vmem>>, vector<1x16x128xbf16>,
    } else {
    }
    %c0_14 = arith.constant 0 : index
    %c0_15 = arith.constant 0 : index
    %c0_16 = arith.constant 0 : index
    %25 = vector.load %arg8[%c0_14, %c0_15, %c0_16] : memref<10x18x128xbf16, #tpu.memory_space<vmem>>, vector<8x16x128xbf16>
    %26 = vector.shape_cast %25 : vector<8x16x128xbf16> to vector<128x128xbf16>
    %c0_17 = arith.constant 0 : index
    %c0_18 = arith.constant 0 : index
    %c0_19 = arith.constant 0 : index
    %27 = vector.load %arg3[%c0_17, %c0_18, %c0_19] : memref<9x128x128xbf16, #tpu.memory_space<vmem>>, vector<1x128x128xbf16>
    %28 = vector.shape_cast %27 : vector<1x128x128xbf16> to vector<128x128xbf16>
    %cst_20 = arith.constant dense<0.000000e+00> : vector<128x128xf32>
    %29 = tpu.matmul %26, %28, %cst_20 {dimension_numbers = #tpu.dot_dimension_numbers<[1], [0], [0], [1], [0, 0, 1, 1], [], []>} : vector<128x128xbf16>, vector<128x128xbf16>, vector<128x128xf32> -> vector<128x128xf32>
    %c0_21 = arith.constant 0 : index
    %c0_22 = arith.constant 0 : index
    %30 = vector.load %arg9[%c0_21, %c0_22] : memref<128x128xf32, #tpu.memory_space<vmem>>, vector<128x128xf32>
    tpu.vector_store %arg9[%c0_21, %c0_22], %29 {strides = array<i32>} : memref<128x128xf32, #tpu.memory_space<vmem>>, vector<128x128xf32>,
    %c0_23 = arith.constant 0 : index
    %c1_24 = arith.constant 1 : index
    %c0_25 = arith.constant 0 : index
    %31 = vector.load %arg8[%c0_23, %c1_24, %c0_25] : memref<10x18x128xbf16, #tpu.memory_space<vmem>>, vector<8x16x128xbf16>
    %32 = vector.shape_cast %31 : vector<8x16x128xbf16> to vector<128x128xbf16>
    %c1_26 = arith.constant 1 : index
    %c0_27 = arith.constant 0 : index
    %c0_28 = arith.constant 0 : index
    %33 = vector.load %arg3[%c1_26, %c0_27, %c0_28] : memref<9x128x128xbf16, #tpu.memory_space<vmem>>, vector<1x128x128xbf16>
    %34 = vector.shape_cast %33 : vector<1x128x128xbf16> to vector<128x128xbf16>
    %cst_29 = arith.constant dense<0.000000e+00> : vector<128x128xf32>
    %35 = tpu.matmul %32, %34, %cst_29 {dimension_numbers = #tpu.dot_dimension_numbers<[1], [0], [0], [1], [0, 0, 1, 1], [], []>} : vector<128x128xbf16>, vector<128x128xbf16>, vector<128x128xf32> -> vector<128x128xf32>
    %c0_30 = arith.constant 0 : index
    %c0_31 = arith.constant 0 : index
    %36 = vector.load %arg9[%c0_30, %c0_31] : memref<128x128xf32, #tpu.memory_space<vmem>>, vector<128x128xf32>
    %37 = arith.addf %36, %35 : vector<128x128xf32>
    %c0_32 = arith.constant 0 : index
    %c0_33 = arith.constant 0 : index
    %38 = vector.load %arg9[%c0_32, %c0_33] : memref<128x128xf32, #tpu.memory_space<vmem>>, vector<128x128xf32>
    tpu.vector_store %arg9[%c0_32, %c0_33], %37 {strides = array<i32>} : memref<128x128xf32, #tpu.memory_space<vmem>>, vector<128x128xf32>,
    %c0_34 = arith.constant 0 : index
    %c2 = arith.constant 2 : index
    %c0_35 = arith.constant 0 : index
    %39 = vector.load %arg8[%c0_34, %c2, %c0_35] : memref<10x18x128xbf16, #tpu.memory_space<vmem>>, vector<8x16x128xbf16>
    %40 = vector.shape_cast %39 : vector<8x16x128xbf16> to vector<128x128xbf16>
    %c2_36 = arith.constant 2 : index
    %c0_37 = arith.constant 0 : index
    %c0_38 = arith.constant 0 : index
    %41 = vector.load %arg3[%c2_36, %c0_37, %c0_38] : memref<9x128x128xbf16, #tpu.memory_space<vmem>>, vector<1x128x128xbf16>
    %42 = vector.shape_cast %41 : vector<1x128x128xbf16> to vector<128x128xbf16>
    %cst_39 = arith.constant dense<0.000000e+00> : vector<128x128xf32>
    %43 = tpu.matmul %40, %42, %cst_39 {dimension_numbers = #tpu.dot_dimension_numbers<[1], [0], [0], [1], [0, 0, 1, 1], [], []>} : vector<128x128xbf16>, vector<128x128xbf16>, vector<128x128xf32> -> vector<128x128xf32>
    %c0_40 = arith.constant 0 : index
    %c0_41 = arith.constant 0 : index
    %44 = vector.load %arg9[%c0_40, %c0_41] : memref<128x128xf32, #tpu.memory_space<vmem>>, vector<128x128xf32>
    %45 = arith.addf %44, %43 : vector<128x128xf32>
    %c0_42 = arith.constant 0 : index
    %c0_43 = arith.constant 0 : index
    %46 = vector.load %arg9[%c0_42, %c0_43] : memref<128x128xf32, #tpu.memory_space<vmem>>, vector<128x128xf32>
    tpu.vector_store %arg9[%c0_42, %c0_43], %45 {strides = array<i32>} : memref<128x128xf32, #tpu.memory_space<vmem>>, vector<128x128xf32>,
    %c1_44 = arith.constant 1 : index
    %c0_45 = arith.constant 0 : index
    %c0_46 = arith.constant 0 : index
    %47 = vector.load %arg8[%c1_44, %c0_45, %c0_46] : memref<10x18x128xbf16, #tpu.memory_space<vmem>>, vector<8x16x128xbf16>
    %48 = vector.shape_cast %47 : vector<8x16x128xbf16> to vector<128x128xbf16>
    %c3 = arith.constant 3 : index
    %c0_47 = arith.constant 0 : index
    %c0_48 = arith.constant 0 : index
    %49 = vector.load %arg3[%c3, %c0_47, %c0_48] : memref<9x128x128xbf16, #tpu.memory_space<vmem>>, vector<1x128x128xbf16>
    %50 = vector.shape_cast %49 : vector<1x128x128xbf16> to vector<128x128xbf16>
    %cst_49 = arith.constant dense<0.000000e+00> : vector<128x128xf32>
    %51 = tpu.matmul %48, %50, %cst_49 {dimension_numbers = #tpu.dot_dimension_numbers<[1], [0], [0], [1], [0, 0, 1, 1], [], []>} : vector<128x128xbf16>, vector<128x128xbf16>, vector<128x128xf32> -> vector<128x128xf32>
    %c0_50 = arith.constant 0 : index
    %c0_51 = arith.constant 0 : index
    %52 = vector.load %arg9[%c0_50, %c0_51] : memref<128x128xf32, #tpu.memory_space<vmem>>, vector<128x128xf32>
    %53 = arith.addf %52, %51 : vector<128x128xf32>
    %c0_52 = arith.constant 0 : index
    %c0_53 = arith.constant 0 : index
    %54 = vector.load %arg9[%c0_52, %c0_53] : memref<128x128xf32, #tpu.memory_space<vmem>>, vector<128x128xf32>
    tpu.vector_store %arg9[%c0_52, %c0_53], %53 {strides = array<i32>} : memref<128x128xf32, #tpu.memory_space<vmem>>, vector<128x128xf32>,
    %c1_54 = arith.constant 1 : index
    %c1_55 = arith.constant 1 : index
    %c0_56 = arith.constant 0 : index
    %55 = vector.load %arg8[%c1_54, %c1_55, %c0_56] : memref<10x18x128xbf16, #tpu.memory_space<vmem>>, vector<8x16x128xbf16>
    %56 = vector.shape_cast %55 : vector<8x16x128xbf16> to vector<128x128xbf16>
    %c4 = arith.constant 4 : index
    %c0_57 = arith.constant 0 : index
    %c0_58 = arith.constant 0 : index
    %57 = vector.load %arg3[%c4, %c0_57, %c0_58] : memref<9x128x128xbf16, #tpu.memory_space<vmem>>, vector<1x128x128xbf16>
    %58 = vector.shape_cast %57 : vector<1x128x128xbf16> to vector<128x128xbf16>
    %cst_59 = arith.constant dense<0.000000e+00> : vector<128x128xf32>
    %59 = tpu.matmul %56, %58, %cst_59 {dimension_numbers = #tpu.dot_dimension_numbers<[1], [0], [0], [1], [0, 0, 1, 1], [], []>} : vector<128x128xbf16>, vector<128x128xbf16>, vector<128x128xf32> -> vector<128x128xf32>
    %c0_60 = arith.constant 0 : index
    %c0_61 = arith.constant 0 : index
    %60 = vector.load %arg9[%c0_60, %c0_61] : memref<128x128xf32, #tpu.memory_space<vmem>>, vector<128x128xf32>
    %61 = arith.addf %60, %59 : vector<128x128xf32>
    %c0_62 = arith.constant 0 : index
    %c0_63 = arith.constant 0 : index
    %62 = vector.load %arg9[%c0_62, %c0_63] : memref<128x128xf32, #tpu.memory_space<vmem>>, vector<128x128xf32>
    tpu.vector_store %arg9[%c0_62, %c0_63], %61 {strides = array<i32>} : memref<128x128xf32, #tpu.memory_space<vmem>>, vector<128x128xf32>,
    %c1_64 = arith.constant 1 : index
    %c2_65 = arith.constant 2 : index
    %c0_66 = arith.constant 0 : index
    %63 = vector.load %arg8[%c1_64, %c2_65, %c0_66] : memref<10x18x128xbf16, #tpu.memory_space<vmem>>, vector<8x16x128xbf16>
    %64 = vector.shape_cast %63 : vector<8x16x128xbf16> to vector<128x128xbf16>
    %c5 = arith.constant 5 : index
    %c0_67 = arith.constant 0 : index
    %c0_68 = arith.constant 0 : index
    %65 = vector.load %arg3[%c5, %c0_67, %c0_68] : memref<9x128x128xbf16, #tpu.memory_space<vmem>>, vector<1x128x128xbf16>
    %66 = vector.shape_cast %65 : vector<1x128x128xbf16> to vector<128x128xbf16>
    %cst_69 = arith.constant dense<0.000000e+00> : vector<128x128xf32>
    %67 = tpu.matmul %64, %66, %cst_69 {dimension_numbers = #tpu.dot_dimension_numbers<[1], [0], [0], [1], [0, 0, 1, 1], [], []>} : vector<128x128xbf16>, vector<128x128xbf16>, vector<128x128xf32> -> vector<128x128xf32>
    %c0_70 = arith.constant 0 : index
    %c0_71 = arith.constant 0 : index
    %68 = vector.load %arg9[%c0_70, %c0_71] : memref<128x128xf32, #tpu.memory_space<vmem>>, vector<128x128xf32>
    %69 = arith.addf %68, %67 : vector<128x128xf32>
    %c0_72 = arith.constant 0 : index
    %c0_73 = arith.constant 0 : index
    %70 = vector.load %arg9[%c0_72, %c0_73] : memref<128x128xf32, #tpu.memory_space<vmem>>, vector<128x128xf32>
    tpu.vector_store %arg9[%c0_72, %c0_73], %69 {strides = array<i32>} : memref<128x128xf32, #tpu.memory_space<vmem>>, vector<128x128xf32>,
    %c2_74 = arith.constant 2 : index
    %c0_75 = arith.constant 0 : index
    %c0_76 = arith.constant 0 : index
    %71 = vector.load %arg8[%c2_74, %c0_75, %c0_76] : memref<10x18x128xbf16, #tpu.memory_space<vmem>>, vector<8x16x128xbf16>
    %72 = vector.shape_cast %71 : vector<8x16x128xbf16> to vector<128x128xbf16>
    %c6 = arith.constant 6 : index
    %c0_77 = arith.constant 0 : index
    %c0_78 = arith.constant 0 : index
    %73 = vector.load %arg3[%c6, %c0_77, %c0_78] : memref<9x128x128xbf16, #tpu.memory_space<vmem>>, vector<1x128x128xbf16>
    %74 = vector.shape_cast %73 : vector<1x128x128xbf16> to vector<128x128xbf16>
    %cst_79 = arith.constant dense<0.000000e+00> : vector<128x128xf32>
    %75 = tpu.matmul %72, %74, %cst_79 {dimension_numbers = #tpu.dot_dimension_numbers<[1], [0], [0], [1], [0, 0, 1, 1], [], []>} : vector<128x128xbf16>, vector<128x128xbf16>, vector<128x128xf32> -> vector<128x128xf32>
    %c0_80 = arith.constant 0 : index
    %c0_81 = arith.constant 0 : index
    %76 = vector.load %arg9[%c0_80, %c0_81] : memref<128x128xf32, #tpu.memory_space<vmem>>, vector<128x128xf32>
    %77 = arith.addf %76, %75 : vector<128x128xf32>
    %c0_82 = arith.constant 0 : index
    %c0_83 = arith.constant 0 : index
    %78 = vector.load %arg9[%c0_82, %c0_83] : memref<128x128xf32, #tpu.memory_space<vmem>>, vector<128x128xf32>
    tpu.vector_store %arg9[%c0_82, %c0_83], %77 {strides = array<i32>} : memref<128x128xf32, #tpu.memory_space<vmem>>, vector<128x128xf32>,
    %c2_84 = arith.constant 2 : index
    %c1_85 = arith.constant 1 : index
    %c0_86 = arith.constant 0 : index
    %79 = vector.load %arg8[%c2_84, %c1_85, %c0_86] : memref<10x18x128xbf16, #tpu.memory_space<vmem>>, vector<8x16x128xbf16>
    %80 = vector.shape_cast %79 : vector<8x16x128xbf16> to vector<128x128xbf16>
    %c7 = arith.constant 7 : index
    %c0_87 = arith.constant 0 : index
    %c0_88 = arith.constant 0 : index
    %81 = vector.load %arg3[%c7, %c0_87, %c0_88] : memref<9x128x128xbf16, #tpu.memory_space<vmem>>, vector<1x128x128xbf16>
    %82 = vector.shape_cast %81 : vector<1x128x128xbf16> to vector<128x128xbf16>
    %cst_89 = arith.constant dense<0.000000e+00> : vector<128x128xf32>
    %83 = tpu.matmul %80, %82, %cst_89 {dimension_numbers = #tpu.dot_dimension_numbers<[1], [0], [0], [1], [0, 0, 1, 1], [], []>} : vector<128x128xbf16>, vector<128x128xbf16>, vector<128x128xf32> -> vector<128x128xf32>
    %c0_90 = arith.constant 0 : index
    %c0_91 = arith.constant 0 : index
    %84 = vector.load %arg9[%c0_90, %c0_91] : memref<128x128xf32, #tpu.memory_space<vmem>>, vector<128x128xf32>
    %85 = arith.addf %84, %83 : vector<128x128xf32>
    %c0_92 = arith.constant 0 : index
    %c0_93 = arith.constant 0 : index
    %86 = vector.load %arg9[%c0_92, %c0_93] : memref<128x128xf32, #tpu.memory_space<vmem>>, vector<128x128xf32>
    tpu.vector_store %arg9[%c0_92, %c0_93], %85 {strides = array<i32>} : memref<128x128xf32, #tpu.memory_space<vmem>>, vector<128x128xf32>,
    %c2_94 = arith.constant 2 : index
    %c2_95 = arith.constant 2 : index
    %c0_96 = arith.constant 0 : index
    %87 = vector.load %arg8[%c2_94, %c2_95, %c0_96] : memref<10x18x128xbf16, #tpu.memory_space<vmem>>, vector<8x16x128xbf16>
    %88 = vector.shape_cast %87 : vector<8x16x128xbf16> to vector<128x128xbf16>
    %c8 = arith.constant 8 : index
    %c0_97 = arith.constant 0 : index
    %c0_98 = arith.constant 0 : index
    %89 = vector.load %arg3[%c8, %c0_97, %c0_98] : memref<9x128x128xbf16, #tpu.memory_space<vmem>>, vector<1x128x128xbf16>
    %90 = vector.shape_cast %89 : vector<1x128x128xbf16> to vector<128x128xbf16>
    %cst_99 = arith.constant dense<0.000000e+00> : vector<128x128xf32>
    %91 = tpu.matmul %88, %90, %cst_99 {dimension_numbers = #tpu.dot_dimension_numbers<[1], [0], [0], [1], [0, 0, 1, 1], [], []>} : vector<128x128xbf16>, vector<128x128xbf16>, vector<128x128xf32> -> vector<128x128xf32>
    %c0_100 = arith.constant 0 : index
    %c0_101 = arith.constant 0 : index
    %92 = vector.load %arg9[%c0_100, %c0_101] : memref<128x128xf32, #tpu.memory_space<vmem>>, vector<128x128xf32>
    %93 = arith.addf %92, %91 : vector<128x128xf32>
    %c0_102 = arith.constant 0 : index
    %c0_103 = arith.constant 0 : index
    %94 = vector.load %arg9[%c0_102, %c0_103] : memref<128x128xf32, #tpu.memory_space<vmem>>, vector<128x128xf32>
    tpu.vector_store %arg9[%c0_102, %c0_103], %93 {strides = array<i32>} : memref<128x128xf32, #tpu.memory_space<vmem>>, vector<128x128xf32>,
    %c0_104 = arith.constant 0 : index
    %c0_105 = arith.constant 0 : index
    %95 = vector.load %arg9[%c0_104, %c0_105] : memref<128x128xf32, #tpu.memory_space<vmem>>, vector<128x128xf32>
    %96 = vector.shape_cast %95 : vector<128x128xf32> to vector<8x16x128xf32>
    %97 = arith.truncf %96 : vector<8x16x128xf32> to vector<8x16x128xbf16>
    %c0_106 = arith.constant 0 : index
    %c0_107 = arith.constant 0 : index
    %c0_108 = arith.constant 0 : index
    %c0_109 = arith.constant 0 : index
    %98 = vector.load %arg6[%c0_106, %c0_107, %c0_108, %c0_109] : memref<1x8x16x128xbf16, #tpu.memory_space<vmem>>, vector<1x8x16x128xbf16>
    %99 = vector.shape_cast %98 : vector<1x8x16x128xbf16> to vector<8x16x128xbf16>
    %100 = vector.shape_cast %97 : vector<8x16x128xbf16> to vector<1x8x16x128xbf16>
    tpu.vector_store %arg6[%c0_106, %c0_107, %c0_108, %c0_109], %100 {strides = array<i32>} : memref<1x8x16x128xbf16, #tpu.memory_space<vmem>>, vector<1x8x16x128xbf16>,
    %cst_110 = arith.constant dense<0.000000e+00> : vector<128xf32>
    %101 = vector.multi_reduction <add>, %95, %cst_110 [0] : vector<128x128xf32> to vector<128xf32>
    %102 = vector.shape_cast %101 : vector<128xf32> to vector<1x128xf32>
    %103 = arith.mulf %95, %95 : vector<128x128xf32>
    %cst_111 = arith.constant dense<0.000000e+00> : vector<128xf32>
    %104 = vector.multi_reduction <add>, %103, %cst_111 [0] : vector<128x128xf32> to vector<128xf32>
    %105 = vector.shape_cast %104 : vector<128xf32> to vector<1x128xf32>
    %106 = tpu.concatenate %102, %105 in 0 : vector<1x128xf32>, vector<1x128xf32> -> vector<2x128xf32>
    %107 = vector.shape_cast %106 : vector<2x128xf32> to vector<1x2x128xf32>
    %c0_112 = arith.constant 0 : index
    %c0_113 = arith.constant 0 : index
    %c0_114 = arith.constant 0 : index
    %108 = vector.load %arg7[%c0_112, %c0_113, %c0_114] : memref<1x2x128xf32, #tpu.memory_space<vmem>>, vector<1x2x128xf32>
    tpu.vector_store %arg7[%c0_112, %c0_113, %c0_114], %107 {strides = array<i32>} : memref<1x2x128xf32, #tpu.memory_space<vmem>>, vector<1x2x128xf32>,
    return
  }
  func.func @transform_0(%arg0: i32, %arg1: i32) -> (i32, i32, i32, i32) {
    %c0_i32 = arith.constant 0 : i32
    %c0_i32_0 = arith.constant 0 : i32
    %c0_i32_1 = arith.constant 0 : i32
    %c0_i32_2 = arith.constant 0 : i32
    return %arg0, %c0_i32, %c0_i32_0, %c0_i32_1 : i32, i32, i32, i32
  }
  func.func @transform_1(%arg0: i32, %arg1: i32) -> (i32, i32, i32) {
    %c0_i32 = arith.constant 0 : i32
    %c0_i32_0 = arith.constant 0 : i32
    %c0_i32_1 = arith.constant 0 : i32
    %c0_i32_2 = arith.constant 0 : i32
    return %c0_i32, %c0_i32_0, %c0_i32_1 : i32, i32, i32
  }
  func.func @transform_2(%arg0: i32, %arg1: i32) -> (i32, i32) {
    %c0_i32 = arith.constant 0 : i32
    %c0_i32_0 = arith.constant 0 : i32
    %c0_i32_1 = arith.constant 0 : i32
    return %c0_i32, %c0_i32_0 : i32, i32
  }
  func.func @transform_3(%arg0: i32, %arg1: i32) -> (i32, i32) {
    %c0_i32 = arith.constant 0 : i32
    %c0_i32_0 = arith.constant 0 : i32
    %c0_i32_1 = arith.constant 0 : i32
    return %c0_i32, %c0_i32_0 : i32, i32
  }
  func.func @transform_4(%arg0: i32, %arg1: i32) -> (i32, i32, i32, i32) {
    %c0_i32 = arith.constant 0 : i32
    %c0_i32_0 = arith.constant 0 : i32
    %c0_i32_1 = arith.constant 0 : i32
    return %arg0, %arg1, %c0_i32, %c0_i32_0 : i32, i32, i32, i32
  }
  func.func @transform_5(%arg0: i32, %arg1: i32) -> (i32, i32, i32) {
    %c2_i32 = arith.constant 2 : i32
    %0 = arith.muli %arg0, %c2_i32 : i32
    %1 = arith.addi %0, %arg1 : i32
    %c0_i32 = arith.constant 0 : i32
    %c0_i32_0 = arith.constant 0 : i32
    %c0_i32_1 = arith.constant 0 : i32
    return %1, %c0_i32, %c0_i32_0 : i32, i32, i32
  }
}

module attributes {stable_mosaic.version = 11 : i64} {
  func.func @_bn2_add_relu_kernel(%arg0: i32, %arg1: i32, %arg2: memref<1x8x16x128xbf16, #tpu.memory_space<vmem>>, %arg3: memref<1x18x18x128xbf16, #tpu.memory_space<vmem>>, %arg4: memref<1x128xf32, #tpu.memory_space<vmem>>, %arg5: memref<1x128xf32, #tpu.memory_space<vmem>>, %arg6: memref<1x8x16x128xf32, #tpu.memory_space<vmem>>) attributes {dimension_semantics = [#tpu.dimension_semantics<parallel>, #tpu.dimension_semantics<arbitrary>], iteration_bounds = array<i64: 2, 2>, scalar_prefetch = 0 : i64, scratch_operands = 0 : i64, tpu.core_type = #tpu.core_type<tc>, window_params = [{transform_indices = @transform_0, window_bounds = array<i64: 1, 8, 16, 128>}, {transform_indices = @transform_1, window_bounds = array<i64: 1, 18, 18, 128>}, {pipeline_mode = #tpu.pipeline_mode<synchronous>, transform_indices = @transform_2, window_bounds = array<i64: 1, 128>}, {pipeline_mode = #tpu.pipeline_mode<synchronous>, transform_indices = @transform_3, window_bounds = array<i64: 1, 128>}, {transform_indices = @transform_4, window_bounds = array<i64: 1, 8, 16, 128>}]} {
    %c8_i32 = arith.constant 8 : i32
    %0 = arith.muli %arg1, %c8_i32 : i32
    %c0 = arith.constant 0 : index
    %c0_0 = arith.constant 0 : index
    %1 = vector.load %arg4[%c0, %c0_0] : memref<1x128xf32, #tpu.memory_space<vmem>>, vector<1x128xf32>
    %2 = vector.shape_cast %1 : vector<1x128xf32> to vector<1x1x128xf32>
    %c0_1 = arith.constant 0 : index
    %c0_2 = arith.constant 0 : index
    %3 = vector.load %arg5[%c0_1, %c0_2] : memref<1x128xf32, #tpu.memory_space<vmem>>, vector<1x128xf32>
    %4 = vector.shape_cast %3 : vector<1x128xf32> to vector<1x1x128xf32>
    %c1_i32 = arith.constant 1 : i32
    %5 = arith.addi %0, %c1_i32 : i32
    %c0_3 = arith.constant 0 : index
    %6 = arith.index_cast %5 : i32 to index
    %c1 = arith.constant 1 : index
    %c0_4 = arith.constant 0 : index
    %7 = vector.load %arg3[%c0_3, %6, %c1, %c0_4] : memref<1x18x18x128xbf16, #tpu.memory_space<vmem>>, vector<1x8x16x128xbf16>
    %8 = vector.shape_cast %7 : vector<1x8x16x128xbf16> to vector<8x16x128xbf16>
    %9 = arith.extf %8 : vector<8x16x128xbf16> to vector<8x16x128xf32>
    %c0_5 = arith.constant 0 : index
    %c0_6 = arith.constant 0 : index
    %c0_7 = arith.constant 0 : index
    %c0_8 = arith.constant 0 : index
    %10 = vector.load %arg2[%c0_5, %c0_6, %c0_7, %c0_8] : memref<1x8x16x128xbf16, #tpu.memory_space<vmem>>, vector<1x8x16x128xbf16>
    %11 = vector.shape_cast %10 : vector<1x8x16x128xbf16> to vector<8x16x128xbf16>
    %12 = arith.extf %11 : vector<8x16x128xbf16> to vector<8x16x128xf32>
    %13 = vector.broadcast %2 : vector<1x1x128xf32> to vector<8x16x128xf32>
    %14 = arith.mulf %12, %13 : vector<8x16x128xf32>
    %15 = vector.broadcast %4 : vector<1x1x128xf32> to vector<8x16x128xf32>
    %16 = arith.addf %14, %15 : vector<8x16x128xf32>
    %17 = arith.addf %16, %9 : vector<8x16x128xf32>
    %cst = arith.constant 0.000000e+00 : f32
    %18 = vector.broadcast %cst : f32 to vector<8x16x128xf32>
    %19 = arith.maximumf %17, %18 : vector<8x16x128xf32>
    %c0_9 = arith.constant 0 : index
    %c0_10 = arith.constant 0 : index
    %c0_11 = arith.constant 0 : index
    %c0_12 = arith.constant 0 : index
    %20 = vector.load %arg6[%c0_9, %c0_10, %c0_11, %c0_12] : memref<1x8x16x128xf32, #tpu.memory_space<vmem>>, vector<1x8x16x128xf32>
    %21 = vector.shape_cast %20 : vector<1x8x16x128xf32> to vector<8x16x128xf32>
    %22 = vector.shape_cast %19 : vector<8x16x128xf32> to vector<1x8x16x128xf32>
    tpu.vector_store %arg6[%c0_9, %c0_10, %c0_11, %c0_12], %22 {strides = array<i32>} : memref<1x8x16x128xf32, #tpu.memory_space<vmem>>, vector<1x8x16x128xf32>,
    return
  }
  func.func @transform_0(%arg0: i32, %arg1: i32) -> (i32, i32, i32, i32) {
    %c0_i32 = arith.constant 0 : i32
    %c0_i32_0 = arith.constant 0 : i32
    %c0_i32_1 = arith.constant 0 : i32
    return %arg0, %arg1, %c0_i32, %c0_i32_0 : i32, i32, i32, i32
  }
  func.func @transform_1(%arg0: i32, %arg1: i32) -> (i32, i32, i32, i32) {
    %c0_i32 = arith.constant 0 : i32
    %c0_i32_0 = arith.constant 0 : i32
    %c0_i32_1 = arith.constant 0 : i32
    %c0_i32_2 = arith.constant 0 : i32
    return %arg0, %c0_i32, %c0_i32_0, %c0_i32_1 : i32, i32, i32, i32
  }
  func.func @transform_2(%arg0: i32, %arg1: i32) -> (i32, i32) {
    %c0_i32 = arith.constant 0 : i32
    %c0_i32_0 = arith.constant 0 : i32
    %c0_i32_1 = arith.constant 0 : i32
    return %c0_i32, %c0_i32_0 : i32, i32
  }
  func.func @transform_3(%arg0: i32, %arg1: i32) -> (i32, i32) {
    %c0_i32 = arith.constant 0 : i32
    %c0_i32_0 = arith.constant 0 : i32
    %c0_i32_1 = arith.constant 0 : i32
    return %c0_i32, %c0_i32_0 : i32, i32
  }
  func.func @transform_4(%arg0: i32, %arg1: i32) -> (i32, i32, i32, i32) {
    %c0_i32 = arith.constant 0 : i32
    %c0_i32_0 = arith.constant 0 : i32
    %c0_i32_1 = arith.constant 0 : i32
    return %arg0, %arg1, %c0_i32, %c0_i32_0 : i32, i32, i32, i32
  }
}

</mosaic_0001>

<bundles_post_ra>
// kernel: basic_block_forward.5
= control target key start
LH: loop header
LB: loop body
LE: loop exit
PB: predicated region body
PF: predicated region fallthrough
CT: control target
= control target key end

     0   :  { %s846_s15 = smov 0   ;;  %s848_s16 = smov 0   ;;  %s1012_s0 = inlined_call_operand.vmem [shape: bf16[2,16,16,128], index: 0, kind: input, shape index: {}]   ;;  %s1013_s1 = inlined_call_operand.vmem [shape: bf16[2,18,18,128], index: 1, kind: input, shape index: {}]   ;;  %s1014_s2 = inlined_call_operand.vmem [shape: f32[1,128], index: 2, kind: input, shape index: {}]   ;;  %s1015_s3 = inlined_call_operand.vmem [shape: f32[1,128], index: 3, kind: input, shape index: {}]   ;;  %s1016_s4 = inlined_call_operand.vmem [shape: f32[2,16,16,128], index: 4, kind: output, shape index: {}]  }
   0x1   :  { %s850_s17 = smov 0   ;;  %s852_s18 = smov 0  }
   0x2   :  { %s854_s19 = smov 0  }
   0x3 LB: > { %s23_s20 = sadd.s32 1, %s811_s17  ;;  %s26_s21 = sadd.s32 1, %s815_s18  ;;  %s819_s19 = sphi %s854_s19, %s14_s19   ;;  %s815_s18 = sphi %s852_s18, %s1020_s18   ;;  %s811_s17 = sphi %s850_s17, %s1019_s17   ;;  %s807_s16 = sphi %s848_s16, %s1018_s16   ;;  %s803_s15 = sphi %s846_s15, %s1017_s15  }
   0x4   : > { %p24_p0 = scmp.ge.s32.totalorder %s23_s20, 2  ;;  %p641_p1 = scmp.ge.s32.totalorder %s819_s19, 1 }
   0x5   : > { %p194_p2 = scmp.lt.s32.totalorder %s819_s19, 5 }
   0x6   : > { %s1022_s20 = smov (%p24_p0, %s23_s20), 0  ;;  %s1024_s21 = smov (!%p24_p0, %s26_s21), %s815_s18 }
   0x7   : > { %p195_p3 = pnand %p641_p1, %p194_p2  ;;  %p28_p4 = scmp.ge.s32.totalorder %s1024_s21, 2 }
   0x8   : > { %s642_s22 = sshll.u32 (!%p195_p3), %s803_s15, 3  ;;  %p236_p5 = scmp.lt.s32.totalorder (!%p195_p3), %s807_s16, 1  ;;  %v894_v0 = vld [vmem:[%s1014_s2] ss:$0 sm:$0xff] (!%p195_p3)  ;;  %vm417_vm0 = vcmask (!%p195_p3), 1046528  }
   0x9   : > { %s1026_s21 = smov (%p28_p4, %s1024_s21), 0  ;;  %198 = sbr.rel (%p195_p3) target bundleno = 65 (0x41), region = 36 }
   0xa   : > { %p238_p6 = scmp.lt.s32.totalorder (!%p195_p3), %s642_s22, 15  ;;  %s652_s26 = smul.u32 (!%p195_p3), 96, %s803_s15  ;;  %v906_v10 = vld [vmem:[%s1015_s3] ss:$0 sm:$0xff] (!%p195_p3) }
  0x10   : > { %s1028_s16 = smov (!%p236_p5, %s807_s16), 1  ;;  %s1030_s22 = smov (!%p238_p6, %s642_s22), 15 }
  0x11   : > { %s644_s23 = sshll.u32 %s1028_s16, 5  ;;  %s740_s24 = smul.u32 216, %s1028_s16 }
  0x12   : > { %s643_s25 = sshll.u32 %s1030_s22, 1 }
  0x13   : > { %s880_s27 = sadd.s32 %s644_s23, %s643_s25  ;;  %s250_s30 = scalar_lea.vmem %s1013_s1, %s740_s24 }
  0x14   : > { %s645_s5 = sshll.u32 %s880_s27, 2  ;;  %s896_s11 = scalar_lea.vmem %s250_s30, %s652_s26 }
  0x15   : > { %s889_s8 = scalar_lea.vmem %s1012_s0, %s645_s5  ;;  %v653_v3 = vld [vmem:[%s896_s11 + $0xc] sm:$0xff]   ;;  %v655_v5 = vld [vmem:[%s896_s11 + $0x14] sm:$0x1]  ;;  %v729_v7 = vld [vmem:[%s896_s11 + $0x18] sm:$0xff]   ;;  %s650_s14 = sshll.u32 %s880_s27, 3 }
  0x16   : > { %v698_v1 = vld [vmem:[%s889_s8] sm:$0xff]   ;;  %v733_v2 = vld [vmem:[%s889_s8 + $0x8] sm:$0xff]   ;;  %v293_v11 = vunpack.c.l.bf16 %v653_v3  ;;  %v294_v12 = vunpack.c.h.bf16 %v653_v3  ;;  %v295_v13 = vunpack.c.l.bf16 %v655_v5  ;;  %v683_v14 = vunpack.c.l.bf16 %v729_v7  ;;  %v734_v33 = vld [vmem:[%s889_s8 + $0x10] sm:$0xff]   ;;  %s926_s22 = scalar_lea.vmem %s1016_s4, %s650_s14 }
  0x17   : > { %v699_v4 = vunpack.c.l.bf16 %v698_v1  ;;  %v700_v6 = vunpack.c.h.bf16 %v698_v1  ;;  %v703_v8 = vunpack.c.l.bf16 %v733_v2  ;;  %v704_v9 = vunpack.c.h.bf16 %v733_v2  ;;  %v658_v19 = vld [vmem:[%s896_s11 + $0x20] sm:$0x1]  ;;  %v659_v24 = vld [vmem:[%s896_s11 + $0x24] sm:$0xff]   ;;  %v661_v38 = vld [vmem:[%s896_s11 + $0x2c] sm:$0x1] }
  0x18   : > { %v684_v17 = vunpack.c.h.bf16 %v729_v7  ;;  %v418_v20 = vrot.slane %v293_v11, 1  ;;  %v419_v21 = vrot.slane %v294_v12, 1  ;;  %v421_v22 = vrot.slane %v295_v13, 1  ;;  %v730_v43 = vld [vmem:[%s896_s11 + $0x30] sm:$0xff]   ;;  %v735_v48 = vld [vmem:[%s889_s8 + $0x18] sm:$0xff]  }
  0x19   : > { %v355_v15 = vmul.f32 %v699_v4, %v894_v0  ;;  %v356_v16 = vmul.f32 %v700_v6, %v894_v0  ;;  %v357_v18 = vmul.f32 %v703_v8, %v894_v0  ;;  %v423_v23 = vrot.slane %v683_v14, 1  ;;  %v664_v57 = vld [vmem:[%s896_s11 + $0x38] sm:$0x1]  ;;  %v665_v62 = vld [vmem:[%s896_s11 + $0x3c] sm:$0xff]  }
  0x1a   : > { %v424_v28 = vrot.slane %v684_v17, 1  ;;  %v420_v29 = vsel %vm417_vm0, %v418_v20, %v419_v21  ;;  %v422_v30 = vsel %vm417_vm0, %v419_v21, %v421_v22  ;;  %v298_v31 = vunpack.c.l.bf16 %v658_v19  ;;  %v736_v8 = vld [vmem:[%s889_s8 + $0x20] sm:$0xff]  }
  0x1b   : > { %v377_v25 = vadd.f32 %v906_v10, %v355_v15  ;;  %v378_v26 = vadd.f32 %v906_v10, %v356_v16  ;;  %v379_v27 = vadd.f32 %v906_v10, %v357_v18  ;;  %v358_v32 = vmul.f32 %v704_v9, %v894_v0  ;;  %v667_v18 = vld [vmem:[%s896_s11 + $0x44] sm:$0x1] }
  0x1c   : > { %v425_v36 = vsel %vm417_vm0, %v423_v23, %v424_v28  ;;  %v299_v37 = vunpack.c.l.bf16 %v659_v24  ;;  %v426_v41 = vrot.slane %v298_v31, 1  ;;  %v300_v42 = vunpack.c.h.bf16 %v659_v24  ;;  %v731_v23 = vld [vmem:[%s896_s11 + $0x48] sm:$0xff]  }
  0x1d   : > { %v474_v34 = vadd.f32 %v420_v29, %v377_v25  ;;  %v475_v35 = vadd.f32 %v422_v30, %v378_v26  ;;  %v476_v39 = vadd.f32 %v425_v36, %v379_v27  ;;  %v380_v40 = vadd.f32 %v906_v10, %v358_v32  ;;  %v737_v32 = vld [vmem:[%s889_s8 + $0x28] sm:$0xff]  }
  0x1e   : > { %v707_v46 = vunpack.c.l.bf16 %v734_v33  ;;  %v428_v47 = vrot.slane %v299_v37, 1  ;;  %v427_v50 = vsel %vm417_vm0, %v424_v28, %v426_v41  ;;  %v429_v51 = vrot.slane %v300_v42, 1 }
  0x1f   : > { %v490_v44 = vmax.f32 %v474_v34, 0.0  ;;  %v491_v45 = vmax.f32 %v475_v35, 0.0  ;;  %v492_v49 = vmax.f32 %v476_v39, 0.0  ;;  %v301_v52 = vunpack.c.l.bf16 %v661_v38 }
  0x20   : > { %v477_v53 = vadd.f32 %v427_v50, %v380_v40  ;;  %v359_v54 = vmul.f32 %v707_v46, %v894_v0  ;;  %v708_v55 = vunpack.c.h.bf16 %v734_v33  ;;  %v687_v56 = vunpack.c.l.bf16 %v730_v43  ;;  %v670_v33 = vld [vmem:[%s896_s11 + $0x50] sm:$0x1]  ;;  %v671_v46 = vld [vmem:[%s896_s11 + $0x54] sm:$0xff]  }
  0x21   : > { %506 = vst [vmem:[%s926_s22] sm:$0xff] %v490_v44  ;;  %507 = vst [vmem:[%s926_s22 + $0x8] sm:$0xff] %v491_v45  ;;  %v430_v58 = vsel %vm417_vm0, %v428_v47, %v429_v51  ;;  %v431_v59 = vrot.slane %v301_v52, 1  ;;  %v688_v60 = vunpack.c.h.bf16 %v730_v43  ;;  %v711_v61 = vunpack.c.l.bf16 %v735_v48 }
  0x22   : > { %508 = vst [vmem:[%s926_s22 + $0x10] sm:$0xff] %v492_v49  ;;  %v493_v63 = vmax.f32 %v477_v53, 0.0  ;;  %v381_v1 = vadd.f32 %v906_v10, %v359_v54  ;;  %v360_v2 = vmul.f32 %v708_v55, %v894_v0  ;;  %v433_v3 = vrot.slane %v687_v56, 1  ;;  %v738_v55 = vld [vmem:[%s889_s8 + $0x30] sm:$0xff]   ;;  %v673_v56 = vld [vmem:[%s896_s11 + $0x5c] sm:$0x1] }
  0x23   : > { %v432_v4 = vsel %vm417_vm0, %v429_v51, %v431_v59  ;;  %v361_v5 = vmul.f32 %v711_v61, %v894_v0  ;;  %v434_v6 = vrot.slane %v688_v60, 1  ;;  %v304_v7 = vunpack.c.l.bf16 %v664_v57 }
  0x24   : > { %509 = vst [vmem:[%s926_s22 + $0x18] sm:$0xff] %v493_v63  ;;  %v478_v9 = vadd.f32 %v430_v58, %v381_v1  ;;  %v382_v11 = vadd.f32 %v906_v10, %v360_v2  ;;  %v712_v12 = vunpack.c.h.bf16 %v735_v48  ;;  %v305_v13 = vunpack.c.l.bf16 %v665_v62  ;;  %v732_v2 = vld [vmem:[%s896_s11 + $0x60] sm:$0xff]  }
  0x25   : > { %v383_v14 = vadd.f32 %v906_v10, %v361_v5  ;;  %v435_v15 = vsel %vm417_vm0, %v433_v3, %v434_v6  ;;  %v436_v16 = vrot.slane %v304_v7, 1  ;;  %v306_v17 = vunpack.c.h.bf16 %v665_v62 }
  0x26   : > { %v494_v19 = vmax.f32 %v478_v9, 0.0  ;;  %v479_v20 = vadd.f32 %v432_v4, %v382_v11  ;;  %v362_v21 = vmul.f32 %v712_v12, %v894_v0  ;;  %v715_v22 = vunpack.c.l.bf16 %v736_v8  ;;  %v739_v12 = vld [vmem:[%s889_s8 + $0x38] sm:$0xff]  }
  0x27   : > { %v480_v24 = vadd.f32 %v435_v15, %v383_v14  ;;  %v437_v25 = vsel %vm417_vm0, %v434_v6, %v436_v16  ;;  %v438_v26 = vrot.slane %v305_v13, 1  ;;  %v439_v27 = vrot.slane %v306_v17, 1  ;;  %v676_v17 = vld [vmem:[%s896_s11 + $0x68] sm:$0x1] }
  0x28   : > { %510 = vst [vmem:[%s926_s22 + $0x20] sm:$0xff] %v494_v19  ;;  %v495_v28 = vmax.f32 %v479_v20, 0.0  ;;  %v384_v29 = vadd.f32 %v906_v10, %v362_v21  ;;  %v363_v30 = vmul.f32 %v715_v22, %v894_v0  ;;  %v307_v31 = vunpack.c.l.bf16 %v667_v18 }
  0x29   : > { %v496_v34 = vmax.f32 %v480_v24, 0.0  ;;  %v440_v35 = vsel %vm417_vm0, %v438_v26, %v439_v27  ;;  %v716_v36 = vunpack.c.h.bf16 %v736_v8  ;;  %v691_v37 = vunpack.c.l.bf16 %v731_v23 }
  0x2a   : > { %511 = vst [vmem:[%s926_s22 + $0x28] sm:$0xff] %v495_v28  ;;  %v481_v38 = vadd.f32 %v437_v25, %v384_v29  ;;  %v385_v39 = vadd.f32 %v906_v10, %v363_v30  ;;  %v441_v40 = vrot.slane %v307_v31, 1  ;;  %v692_v41 = vunpack.c.h.bf16 %v731_v23 }
  0x2b   : > { %512 = vst [vmem:[%s926_s22 + $0x30] sm:$0xff] %v496_v34  ;;  %v364_v42 = vmul.f32 %v716_v36, %v894_v0  ;;  %v719_v43 = vunpack.c.l.bf16 %v737_v32  ;;  %v443_v44 = vrot.slane %v691_v37, 1  ;;  %v310_v45 = vunpack.c.l.bf16 %v670_v33 }
  0x2c   : > { %v497_v47 = vmax.f32 %v481_v38, 0.0  ;;  %v482_v48 = vadd.f32 %v440_v35, %v385_v39  ;;  %v442_v49 = vsel %vm417_vm0, %v439_v27, %v441_v40  ;;  %v444_v50 = vrot.slane %v692_v41, 1 }
  0x2d   : > { %v386_v51 = vadd.f32 %v906_v10, %v364_v42  ;;  %v365_v52 = vmul.f32 %v719_v43, %v894_v0  ;;  %v720_v53 = vunpack.c.h.bf16 %v737_v32  ;;  %v446_v54 = vrot.slane %v310_v45, 1 }
  0x2e   : > { %513 = vst [vmem:[%s926_s22 + $0x38] sm:$0xff] %v497_v47  ;;  %v498_v57 = vmax.f32 %v482_v48, 0.0  ;;  %v445_v58 = vsel %vm417_vm0, %v443_v44, %v444_v50  ;;  %v311_v59 = vunpack.c.l.bf16 %v671_v46  ;;  %v312_v60 = vunpack.c.h.bf16 %v671_v46 }
  0x2f   : > { %v483_v61 = vadd.f32 %v442_v49, %v386_v51  ;;  %v387_v62 = vadd.f32 %v906_v10, %v365_v52  ;;  %v366_v63 = vmul.f32 %v720_v53, %v894_v0  ;;  %v447_v1 = vsel %vm417_vm0, %v444_v50, %v446_v54 }
  0x30   : > { %514 = vst [vmem:[%s926_s22 + $0x40] sm:$0xff] %v498_v57  ;;  %v723_v3 = vunpack.c.l.bf16 %v738_v55  ;;  %v448_v4 = vrot.slane %v311_v59, 1  ;;  %v449_v5 = vrot.slane %v312_v60, 1  ;;  %v313_v6 = vunpack.c.l.bf16 %v673_v56 }
  0x31   : > { %v499_v7 = vmax.f32 %v483_v61, 0.0  ;;  %v484_v8 = vadd.f32 %v445_v58, %v387_v62  ;;  %v388_v9 = vadd.f32 %v906_v10, %v366_v63  ;;  %v724_v11 = vunpack.c.h.bf16 %v738_v55 }
  0x32   : > { %v367_v13 = vmul.f32 %v723_v3, %v894_v0  ;;  %v450_v14 = vsel %vm417_vm0, %v448_v4, %v449_v5  ;;  %v451_v15 = vrot.slane %v313_v6, 1  ;;  %v695_v16 = vunpack.c.l.bf16 %v732_v2 }
  0x33   : > { %515 = vst [vmem:[%s926_s22 + $0x48] sm:$0xff] %v499_v7  ;;  %v500_v18 = vmax.f32 %v484_v8, 0.0  ;;  %v485_v19 = vadd.f32 %v447_v1, %v388_v9  ;;  %v368_v20 = vmul.f32 %v724_v11, %v894_v0  ;;  %v696_v21 = vunpack.c.h.bf16 %v732_v2 }
  0x34   : > { %v389_v22 = vadd.f32 %v906_v10, %v367_v13  ;;  %v452_v23 = vsel %vm417_vm0, %v449_v5, %v451_v15  ;;  %v727_v24 = vunpack.c.l.bf16 %v739_v12  ;;  %v453_v25 = vrot.slane %v695_v16, 1 }
  0x35   : > { %516 = vst [vmem:[%s926_s22 + $0x50] sm:$0xff] %v500_v18  ;;  %v501_v26 = vmax.f32 %v485_v19, 0.0  ;;  %v390_v27 = vadd.f32 %v906_v10, %v368_v20  ;;  %v454_v28 = vrot.slane %v696_v21, 1  ;;  %v316_v29 = vunpack.c.l.bf16 %v676_v17 }
  0x36   : > { %v486_v30 = vadd.f32 %v450_v14, %v389_v22  ;;  %v369_v31 = vmul.f32 %v727_v24, %v894_v0  ;;  %v728_v32 = vunpack.c.h.bf16 %v739_v12 }
  0x37   : > { %517 = vst [vmem:[%s926_s22 + $0x58] sm:$0xff] %v501_v26  ;;  %v487_v33 = vadd.f32 %v452_v23, %v390_v27  ;;  %v455_v34 = vsel %vm417_vm0, %v453_v25, %v454_v28  ;;  %v456_v35 = vrot.slane %v316_v29, 1 }
  0x38   : > { %v502_v36 = vmax.f32 %v486_v30, 0.0  ;;  %v391_v37 = vadd.f32 %v906_v10, %v369_v31  ;;  %v370_v38 = vmul.f32 %v728_v32, %v894_v0 }
  0x39   : > { %v503_v39 = vmax.f32 %v487_v33, 0.0  ;;  %v457_v40 = vsel %vm417_vm0, %v454_v28, %v456_v35 }
  0x3a   : > { %518 = vst [vmem:[%s926_s22 + $0x60] sm:$0xff] %v502_v36  ;;  %v488_v41 = vadd.f32 %v455_v34, %v391_v37  ;;  %v392_v42 = vadd.f32 %v906_v10, %v370_v38 }
  0x3b   : > { %519 = vst [vmem:[%s926_s22 + $0x68] sm:$0xff] %v503_v39 }
  0x3c   : > { %v504_v43 = vmax.f32 %v488_v41, 0.0  ;;  %v489_v44 = vadd.f32 %v457_v40, %v392_v42 }
  0x3e   : > { %520 = vst [vmem:[%s926_s22 + $0x70] sm:$0xff] %v504_v43  ;;  %v505_v45 = vmax.f32 %v489_v44, 0.0 }
  0x40   : > { %521 = vst [vmem:[%s926_s22 + $0x78] sm:$0xff] %v505_v45 }
  0x41 PF: > { %s14_s19 = sadd.s32 1, %s819_s19   ;;  %s1017_s15 = smov %s811_s17 }
  0x42   : > { %p11_p7 = scmp.ge.s32.totalorder %s14_s19, 6   ;;  %s1018_s16 = smov %s815_s18 }
  0x43   : > { %s1019_s17 = smov %s1022_s20  ;;  %s1020_s18 = smov %s1026_s21 }
  0x44   :  { %13 = sbr.rel (!%p11_p7) target bundleno = 3 (0x3), region = 70 }

// kernel: basic_block_forward.4
= control target key start
LH: loop header
LB: loop body
LE: loop exit
PB: predicated region body
PF: predicated region fallthrough
CT: control target
= control target key end

     0   :  { %s5559_s18 = smov 0   ;;  %s5561_s19 = smov 0   ;;  %s6301_s0 = inlined_call_operand.vmem [shape: bf16[2,16,16,128], index: 0, kind: input, shape index: {}]   ;;  %s6302_s1 = inlined_call_operand.vmem [shape: bf16[9,128,128], index: 1, kind: input, shape index: {}]   ;;  %s6303_s2 = inlined_call_operand.vmem [shape: f32[1,128], index: 2, kind: input, shape index: {}]   ;;  %s6304_s3 = inlined_call_operand.vmem [shape: f32[1,128], index: 3, kind: input, shape index: {}]   ;;  %s6305_s4 = inlined_call_operand.vmem [shape: bf16[2,16,16,128], index: 4, kind: output, shape index: {0}]   ;;  %s6306_s5 = inlined_call_operand.vmem [shape: f32[4,2,128], index: 5, kind: output, shape index: {1}]  }
   0x1   :  { %s5563_s20 = smov 0   ;;  %s5565_s21 = smov 0  }
   0x2   :  { %s5567_s22 = smov 0  }
   0x3 LB: > { %s25_s23 = sadd.s32 1, %s5518_s20  ;;  %s28_s24 = sadd.s32 1, %s5522_s21  ;;  %s5526_s22 = sphi %s5567_s22, %s16_s22   ;;  %s5522_s21 = sphi %s5565_s21, %s6320_s21   ;;  %s5518_s20 = sphi %s5563_s20, %s6319_s20   ;;  %s5514_s19 = sphi %s5561_s19, %s6318_s19   ;;  %s5510_s18 = sphi %s5559_s18, %s6317_s18  }
   0x4   : > { %p26_p0 = scmp.ge.s32.totalorder %s25_s23, 2  ;;  %p4282_p1 = scmp.ge.s32.totalorder %s5526_s22, 1 }
   0x5   : > { %p208_p2 = scmp.lt.s32.totalorder %s5526_s22, 5 }
   0x6   : > { %s6322_s23 = smov (%p26_p0, %s25_s23), 0  ;;  %s6324_s24 = smov (!%p26_p0, %s28_s24), %s5522_s21 }
   0x7   : > { %p209_p3 = pnand %p4282_p1, %p208_p2  ;;  %p30_p4 = scmp.ge.s32.totalorder %s6324_s24, 2 }
   0x8   : > { %s4289_s25 = sshll.u32 (!%p209_p3), %s5514_s19, 1  ;;  %p247_p5 = scmp.lt.s32.totalorder (!%p209_p3), %s5514_s19, 1  ;;  %v5528_v0 = vmov (!%p209_p3), 0   ;;  %v5620_v1 = vld [vmem:[%s6303_s2] ss:$0 sm:$0xff] (!%p209_p3)  ;;  %vm612_vm0 = vcmask (!%p209_p3), 1043456  }
   0x9   : > { %s6326_s24 = smov (%p30_p4, %s6324_s24), 0  ;;  %212 = sbr.rel (%p209_p3) target bundleno = 542 (0x21e), region = 36 }
   0xa   : > { %278 = vst [vmem:[#allocation2 + $0xc] sm:$0xf] (!%p209_p3), %v5528_v0  ;;  %275 = vst [vmem:[#allocation2] sm:$0xf] (!%p209_p3), %v5528_v0  ;;  %s264_s26 = sadd.s32 (!%p209_p3), %s5510_s18, %s4289_s25  ;;  %s5599_s27 = sshll.u32 (!%p209_p3), %s5510_s18, 3  ;;  %vm619_vm4 = vcmask (!%p209_p3), 1040384  }
   0xb   : > { %276 = vst [vmem:[#allocation2 + $0x4] sm:$0xf] (!%p209_p3), %v5528_v0  ;;  %277 = vst [vmem:[#allocation2 + $0x8] sm:$0x1] (!%p209_p3), %v5528_v0  ;;  %p265_p6 = scmp.lt.s32.totalorder (!%p209_p3), %s264_s26, 3  ;;  %p255_p7 = scmp.lt.s32.totalorder (!%p209_p3), %s5599_s27, 15 }
   0xc   : > { %279 = vst [vmem:[#allocation2 + $0x10] sm:$0xf] (!%p209_p3), %v5528_v0  ;;  %280 = vst [vmem:[#allocation2 + $0x14] sm:$0x1] (!%p209_p3), %v5528_v0  ;;  %s4641_s12 = sshll.u32 (!%p209_p3), %s5510_s18, 6  ;;  %p4312_p8 = scmp.le.s32.totalorder (!%p209_p3), %s5510_s18, 0 }
   0xd   : > { %281 = vst [vmem:[#allocation2 + $0x18] sm:$0xf] (!%p209_p3), %v5528_v0  ;;  %282 = vst [vmem:[#allocation2 + $0x1c] sm:$0xf] (!%p209_p3), %v5528_v0  ;;  %vm613_vm1 = vsmask.f32 (!%p209_p3), 7938 }
   0xe   : > { %283 = vst [vmem:[#allocation2 + $0x20] sm:$0x1] (!%p209_p3), %v5528_v0  ;;  %284 = vst [vmem:[#allocation2 + $0x24] sm:$0xf] (!%p209_p3), %v5528_v0  ;;  %v5632_v10 = vld [vmem:[%s6304_s3] ss:$0 sm:$0xff] (!%p209_p3) }
   0xf   : > { %285 = vst [vmem:[#allocation2 + $0x28] sm:$0xf] (!%p209_p3), %v5528_v0  ;;  %286 = vst [vmem:[#allocation2 + $0x2c] sm:$0x1] (!%p209_p3), %v5528_v0  ;;  %vm448_vm2 = vsmask.f32 (!%p209_p3), 256 }
  0x10   : > { %287 = vst [vmem:[#allocation2 + $0x30] sm:$0xf] %v5528_v0  ;;  %288 = vst [vmem:[#allocation2 + $0x34] sm:$0xf] %v5528_v0  ;;  %s6328_s19 = smov (!%p247_p5, %s5514_s19), 1  ;;  %s6330_s26 = smov (!%p265_p6, %s264_s26), 3 }
  0x11   : > { %289 = vst [vmem:[#allocation2 + $0x38] sm:$0x1] %v5528_v0  ;;  %290 = vst [vmem:[#allocation2 + $0x3c] sm:$0xf] %v5528_v0  ;;  %s4639_s28 = sshll.u32 %s6328_s19, 7  ;;  %s4287_s29 = sshll.u32 %s6328_s19, 5 }
  0x12   : > { %291 = vst [vmem:[#allocation2 + $0x40] sm:$0xf] %v5528_v0  ;;  %292 = vst [vmem:[#allocation2 + $0x44] sm:$0x1] %v5528_v0  ;;  %s4290_s30 = sshll.u32 %s6330_s26, 1  ;;  %s5608_s8 = scalar_lea.vmem %s6301_s0, %s4639_s28 }
  0x13   : > { %293 = vst [vmem:[#allocation2 + $0x48] sm:$0xf] %v5528_v0  ;;  %294 = vst [vmem:[#allocation2 + $0x4c] sm:$0xf] %v5528_v0  ;;  %s5613_s11 = scalar_lea.vmem %s6306_s5, %s4290_s30  ;;  %s5623_s16 = scalar_lea.vmem %s5608_s8, %s4641_s12  ;;  %vm449_vm3 = vsmask.f32 4368 }
  0x14   : > { %295 = vst [vmem:[#allocation2 + $0x50] sm:$0x1] %v5528_v0  ;;  %296 = vst [vmem:[#allocation2 + $0x54] sm:$0xf] %v5528_v0  ;;  %s256_s13 = scalar_select %p255_p7, %s5599_s27, 15  ;;  %v4681_v2 = vld [vmem:[%s5623_s16] sm:$0xff]  }
  0x15   : > { %297 = vst [vmem:[#allocation2 + $0x58] sm:$0xf] %v5528_v0  ;;  %298 = vst [vmem:[#allocation2 + $0x5c] sm:$0x1] %v5528_v0  ;;  %v4760_v3 = vld [vmem:[%s5623_s16 + $0x8] sm:$0xff]   ;;  %v4761_v4 = vld [vmem:[%s5623_s16 + $0x10] sm:$0xff]   ;;  %v4682_v5 = vunpack.c.l.bf16 %v4681_v2  ;;  %v4683_v6 = vunpack.c.h.bf16 %v4681_v2 }
  0x16   : > { %299 = vst [vmem:[#allocation2 + $0x60] sm:$0xf] %v5528_v0  ;;  %300 = vst [vmem:[#allocation2 + $0x64] sm:$0xf] %v5528_v0  ;;  %s4286_s17 = sshll.u32 %s256_s13, 1  ;;  %v4686_v7 = vunpack.c.l.bf16 %v4760_v3  ;;  %v4687_v8 = vunpack.c.h.bf16 %v4760_v3  ;;  %v4762_v9 = vld [vmem:[%s5623_s16 + $0x18] sm:$0xff]   ;;  %v4690_v11 = vunpack.c.l.bf16 %v4761_v4  ;;  %v4691_v12 = vunpack.c.h.bf16 %v4761_v4 }
  0x17   : > { %301 = vst [vmem:[#allocation2 + $0x68] sm:$0x1] %v5528_v0  ;;  %302 = vst [vmem:[#allocation2 + $0x6c] sm:$0xf] %v5528_v0  ;;  %s259_s19 = sadd.s32 %s4287_s29, %s4286_s17  ;;  %v4694_v13 = vunpack.c.l.bf16 %v4762_v9  ;;  %v4695_v14 = vunpack.c.h.bf16 %v4762_v9  ;;  %v346_v15 = vmul.f32 %v4682_v5, %v5620_v1  ;;  %v347_v16 = vmul.f32 %v4683_v6, %v5620_v1  ;;  %v615_v57 = vld [vmem:[#allocation2 + $0xc] sm:$0xf] }
  0x18   : > { %303 = vst [vmem:[#allocation2 + $0x70] sm:$0xf] %v5528_v0  ;;  %304 = vst [vmem:[#allocation2 + $0x74] sm:$0x1] %v5528_v0  ;;  %s4288_s25 = sshll.u32 %s259_s19, 2  ;;  %v348_v17 = vmul.f32 %v4686_v7, %v5620_v1  ;;  %v349_v18 = vmul.f32 %v4687_v8, %v5620_v1  ;;  %v350_v19 = vmul.f32 %v4690_v11, %v5620_v1  ;;  %s4313_s7 = sadd.s32 (!%p4312_p8), 4294967295, %s5599_s27 }
  0x19   : > { %s5637_s6 = scalar_lea.vmem %s6305_s4, %s4288_s25  ;;  %v351_v20 = vmul.f32 %v4691_v12, %v5620_v1  ;;  %v352_v21 = vmul.f32 %v4694_v13, %v5620_v1  ;;  %v353_v22 = vmul.f32 %v4695_v14, %v5620_v1  ;;  %v368_v23 = vadd.f32 %v5632_v10, %v346_v15  ;;  %vm5661_vm5 = vmand %vm612_vm0, %vm613_vm1  ;;  %v621_v63 = vld [vmem:[#allocation2 + $0x14] sm:$0x1]  ;;  %v624_v9 = vld [vmem:[#allocation2 + $0x18] sm:$0xf]  ;;  %s4658_s9 = sshll.u32 (!%p4312_p8), %s4313_s7, 3 }
  0x1a   : > { %v369_v24 = vadd.f32 %v5632_v10, %v347_v16  ;;  %v370_v25 = vadd.f32 %v5632_v10, %v348_v17  ;;  %v371_v26 = vadd.f32 %v5632_v10, %v349_v18  ;;  %v372_v27 = vadd.f32 %v5632_v10, %v350_v19  ;;  %vm5667_vm6 = vmor %vm448_vm2, %vm449_vm3  ;;  %v628_v11 = vld [vmem:[#allocation2 + $0x20] sm:$0x1]  ;;  %s680_s10 = scalar_lea.vmem (!%p4312_p8), %s5608_s8, %s4658_s9 }
  0x1b   : > { %v373_v28 = vadd.f32 %v5632_v10, %v351_v20  ;;  %v374_v29 = vadd.f32 %v5632_v10, %v352_v21  ;;  %v375_v30 = vadd.f32 %v5632_v10, %v353_v22  ;;  %v384_v31 = vmax.f32 %v368_v23, 0.0  ;;  %vm5673_vm7 = vmand %vm619_vm4, %vm448_vm2  ;;  %v631_v23 = vld [vmem:[#allocation2 + $0x24] sm:$0xf] }
  0x1c   : > { %v385_v32 = vmax.f32 %v369_v24, 0.0  ;;  %v386_v33 = vmax.f32 %v370_v25, 0.0  ;;  %v387_v34 = vmax.f32 %v371_v26, 0.0  ;;  %v388_v35 = vmax.f32 %v372_v27, 0.0  ;;  %v4763_v25 = vld [vmem:[%s5623_s16 + $0x20] sm:$0xff]  }
  0x1d   : > { %v389_v36 = vmax.f32 %v373_v28, 0.0  ;;  %v390_v37 = vmax.f32 %v374_v29, 0.0  ;;  %v391_v38 = vmax.f32 %v375_v30, 0.0  ;;  %v4642_v39 = vpack.c.bf16 %v384_v31, %v384_v31  ;;  %v635_v28 = vld [vmem:[#allocation2 + $0x2c] sm:$0x1] }
  0x1e   : > { %v4643_v40 = vpack.c.bf16 %v385_v32, %v385_v32  ;;  %v4644_v41 = vpack.c.bf16 %v386_v33, %v386_v33  ;;  %v4645_v42 = vpack.c.bf16 %v387_v34, %v387_v34  ;;  %v4646_v43 = vpack.c.bf16 %v388_v35, %v388_v35  ;;  %v4764_v31 = vld [vmem:[%s5623_s16 + $0x28] sm:$0xff]  }
  0x1f   : > { %v4647_v44 = vpack.c.bf16 %v389_v36, %v389_v36  ;;  %v5655_v45 = vpack.c.bf16 %v390_v37, %v390_v37  ;;  %v5657_v46 = vpack.c.bf16 %v391_v38, %v391_v38  ;;  %v452_v47 = vshrl.u32 %v4642_v39, 16 }
  0x20   : > { %v455_v48 = vshll.u32 %v4642_v39, 16  ;;  %v460_v49 = vshrl.u32 %v4643_v40, 16  ;;  %v463_v50 = vshll.u32 %v4643_v40, 16  ;;  %v469_v52 = vshrl.u32 %v4644_v41, 16 }
  0x21   : > { %v472_v53 = vshll.u32 %v4644_v41, 16  ;;  %v477_v54 = vshrl.u32 %v4645_v42, 16  ;;  %v480_v55 = vshll.u32 %v4645_v42, 16  ;;  %v454_v56 = vrot.slane %v452_v47, 7  ;;  %v638_v42 = vld [vmem:[#allocation2 + $0x30] sm:$0xf] }
  0x22   : > { %v462_v59 = vrot.slane %v460_v49, 7  ;;  %v486_v60 = vshrl.u32 %v4646_v43, 16  ;;  %v489_v61 = vshll.u32 %v4646_v43, 16  ;;  %v471_v0 = vrot.slane %v469_v52, 7 }
  0x23   : > { %v479_v2 = vrot.slane %v477_v54, 7  ;;  %v494_v3 = vshrl.u32 %v4647_v44, 16  ;;  %v497_v4 = vshll.u32 %v4647_v44, 16  ;;  %v457_v5 = vor.u32 %v455_v48, %v454_v56  ;;  %v642_v48 = vld [vmem:[#allocation2 + $0x38] sm:$0x1] }
  0x24   : > { %v458_v6 = vrot.slane %v454_v56, 4  ;;  %v465_v7 = vor.u32 %v463_v50, %v462_v59  ;;  %v467_v8 = vrot.slane %v462_v59, 4  ;;  %v474_v12 = vor.u32 %v472_v53, %v471_v0 }
  0x25   : > { %v475_v13 = vrot.slane %v471_v0, 4  ;;  %v482_v14 = vor.u32 %v480_v55, %v479_v2  ;;  %v484_v15 = vrot.slane %v479_v2, 4  ;;  %v616_v16 = vsel %vm5661_vm5, %v457_v5, %v615_v57 }
  0x26   : > { %v466_v17 = vsel %vm5667_vm6, %v458_v6, %v465_v7  ;;  %v622_v18 = vsel %vm5673_vm7, %v467_v8, %v621_v63  ;;  %v488_v19 = vrot.slane %v486_v60, 7  ;;  %617 = vst [vmem:[#allocation2 + $0xc] sm:$0xf] %v616_v16  ;;  %v625_v20 = vsel %vm5661_vm5, %v474_v12, %v624_v9 }
  0x27   : > { %618 = vst [vmem:[#allocation2 + $0x10] sm:$0xf] %v466_v17  ;;  %623 = vst [vmem:[#allocation2 + $0x14] sm:$0x1] %v622_v18  ;;  %v483_v21 = vsel %vm5667_vm6, %v475_v13, %v482_v14  ;;  %v629_v22 = vsel %vm5673_vm7, %v484_v15, %v628_v11  ;;  %v496_v24 = vrot.slane %v494_v3, 7  ;;  %v503_v29 = vshrl.u32 %v5655_v45, 16 }
  0x28   : > { %626 = vst [vmem:[#allocation2 + $0x18] sm:$0xf] %v625_v20  ;;  %627 = vst [vmem:[#allocation2 + $0x1c] sm:$0xf] %v483_v21  ;;  %v491_v26 = vor.u32 %v489_v61, %v488_v19  ;;  %v492_v27 = vrot.slane %v488_v19, 4  ;;  %v506_v30 = vshll.u32 %v5655_v45, 16  ;;  %v4698_v38 = vunpack.c.l.bf16 %v4763_v25 }
  0x29   : > { %630 = vst [vmem:[#allocation2 + $0x20] sm:$0x1] %v629_v22  ;;  %v499_v32 = vor.u32 %v497_v4, %v496_v24  ;;  %v501_v33 = vrot.slane %v496_v24, 4  ;;  %v511_v34 = vshrl.u32 %v5657_v46, 16  ;;  %v514_v35 = vshll.u32 %v5657_v46, 16  ;;  %v4765_v45 = vld [vmem:[%s5623_s16 + $0x30] sm:$0xff]  }
  0x2a   : > { %v632_v36 = vsel %vm5661_vm5, %v491_v26, %v631_v23  ;;  %v505_v37 = vrot.slane %v503_v29, 7  ;;  %v4699_v39 = vunpack.c.h.bf16 %v4763_v25  ;;  %v4702_v44 = vunpack.c.l.bf16 %v4764_v31  ;;  %v4766_v61 = vld [vmem:[%s5623_s16 + $0x38] sm:$0xff]  }
  0x2b   : > { %633 = vst [vmem:[#allocation2 + $0x24] sm:$0xf] %v632_v36  ;;  %v500_v40 = vsel %vm5667_vm6, %v492_v27, %v499_v32  ;;  %v636_v41 = vsel %vm5673_vm7, %v501_v33, %v635_v28  ;;  %v513_v43 = vrot.slane %v511_v34, 7  ;;  %v354_v49 = vmul.f32 %v4698_v38, %v5620_v1  ;;  %v649_v34 = vld [vmem:[#allocation2 + $0x44] sm:$0x1] }
  0x2c   : > { %634 = vst [vmem:[#allocation2 + $0x28] sm:$0xf] %v500_v40  ;;  %637 = vst [vmem:[#allocation2 + $0x2c] sm:$0x1] %v636_v41  ;;  %v508_v46 = vor.u32 %v506_v30, %v505_v37  ;;  %v509_v47 = vrot.slane %v505_v37, 4  ;;  %v355_v50 = vmul.f32 %v4699_v39, %v5620_v1  ;;  %v356_v54 = vmul.f32 %v4702_v44, %v5620_v1 }
  0x2d   : > { %v516_v52 = vor.u32 %v514_v35, %v513_v43  ;;  %v518_v53 = vrot.slane %v513_v43, 4  ;;  %v4703_v55 = vunpack.c.h.bf16 %v4764_v31  ;;  %v376_v57 = vadd.f32 %v5632_v10, %v354_v49  ;;  %v645_v30 = vld [vmem:[#allocation2 + $0x3c] sm:$0xf]  ;;  %v652_v43 = vld [vmem:[#allocation2 + $0x48] sm:$0xf] }
  0x2e   : > { %v639_v56 = vsel %vm5661_vm5, %v508_v46, %v638_v42  ;;  %v377_v59 = vadd.f32 %v5632_v10, %v355_v50  ;;  %v4706_v60 = vunpack.c.l.bf16 %v4765_v45  ;;  %v378_v2 = vadd.f32 %v5632_v10, %v356_v54 }
  0x2f   : > { %640 = vst [vmem:[#allocation2 + $0x30] sm:$0xf] %v639_v56  ;;  %v517_v63 = vsel %vm5667_vm6, %v509_v47, %v516_v52  ;;  %v643_v0 = vsel %vm5673_vm7, %v518_v53, %v642_v48  ;;  %v357_v3 = vmul.f32 %v4703_v55, %v5620_v1  ;;  %v392_v4 = vmax.f32 %v376_v57, 0.0  ;;  %v656_v52 = vld [vmem:[#allocation2 + $0x50] sm:$0x1] }
  0x30   : > { %641 = vst [vmem:[#allocation2 + $0x34] sm:$0xf] %v517_v63  ;;  %644 = vst [vmem:[#allocation2 + $0x38] sm:$0x1] %v643_v0  ;;  %v393_v5 = vmax.f32 %v377_v59, 0.0  ;;  %v358_v6 = vmul.f32 %v4706_v60, %v5620_v1  ;;  %v4707_v7 = vunpack.c.h.bf16 %v4765_v45  ;;  %v394_v8 = vmax.f32 %v378_v2, 0.0 }
  0x31   : > { %v379_v9 = vadd.f32 %v5632_v10, %v357_v3  ;;  %v4710_v11 = vunpack.c.l.bf16 %v4766_v61  ;;  %v4711_v12 = vunpack.c.h.bf16 %v4766_v61  ;;  %v4650_v13 = vpack.c.bf16 %v392_v4, %v392_v4  ;;  %v659_v59 = vld [vmem:[#allocation2 + $0x54] sm:$0xf] }
  0x32   : > { %v4651_v14 = vpack.c.bf16 %v393_v5, %v393_v5  ;;  %v380_v15 = vadd.f32 %v5632_v10, %v358_v6  ;;  %v359_v16 = vmul.f32 %v4707_v7, %v5620_v1  ;;  %v4652_v17 = vpack.c.bf16 %v394_v8, %v394_v8 }
  0x33   : > { %v395_v18 = vmax.f32 %v379_v9, 0.0  ;;  %v360_v19 = vmul.f32 %v4710_v11, %v5620_v1  ;;  %v361_v20 = vmul.f32 %v4711_v12, %v5620_v1  ;;  %v520_v21 = vshrl.u32 %v4650_v13, 16 }
  0x34   : > { %v523_v22 = vshll.u32 %v4650_v13, 16  ;;  %v528_v23 = vshrl.u32 %v4651_v14, 16  ;;  %v531_v24 = vshll.u32 %v4651_v14, 16  ;;  %v537_v25 = vshrl.u32 %v4652_v17, 16 }
  0x35   : > { %v540_v26 = vshll.u32 %v4652_v17, 16  ;;  %v4653_v27 = vpack.c.bf16 %v395_v18, %v395_v18  ;;  %v396_v28 = vmax.f32 %v380_v15, 0.0  ;;  %v522_v29 = vrot.slane %v520_v21, 7  ;;  %v663_v17 = vld [vmem:[#allocation2 + $0x5c] sm:$0x1] }
  0x36   : > { %v530_v31 = vrot.slane %v528_v23, 7  ;;  %v381_v32 = vadd.f32 %v5632_v10, %v359_v16  ;;  %v382_v33 = vadd.f32 %v5632_v10, %v360_v19  ;;  %v539_v35 = vrot.slane %v537_v25, 7  ;;  %v666_v18 = vld [vmem:[#allocation2 + $0x60] sm:$0xf] }
  0x37   : > { %v545_v36 = vshrl.u32 %v4653_v27, 16  ;;  %v548_v37 = vshll.u32 %v4653_v27, 16  ;;  %v4654_v38 = vpack.c.bf16 %v396_v28, %v396_v28  ;;  %v525_v39 = vor.u32 %v523_v22, %v522_v29 }
  0x38   : > { %v526_v40 = vrot.slane %v522_v29, 4  ;;  %v533_v41 = vor.u32 %v531_v24, %v530_v31  ;;  %v535_v42 = vrot.slane %v530_v31, 4  ;;  %v542_v44 = vor.u32 %v540_v26, %v539_v35  ;;  %v670_v29 = vld [vmem:[#allocation2 + $0x68] sm:$0x1] }
  0x39   : > { %v543_v45 = vrot.slane %v539_v35, 4  ;;  %v547_v46 = vrot.slane %v545_v36, 7  ;;  %v554_v47 = vshrl.u32 %v4654_v38, 16  ;;  %v646_v48 = vsel %vm5661_vm5, %v525_v39, %v645_v30 }
  0x3a   : > { %v534_v49 = vsel %vm5667_vm6, %v526_v40, %v533_v41  ;;  %v650_v50 = vsel %vm5673_vm7, %v535_v42, %v649_v34  ;;  %v557_v53 = vshll.u32 %v4654_v38, 16  ;;  %647 = vst [vmem:[#allocation2 + $0x3c] sm:$0xf] %v646_v48  ;;  %v653_v54 = vsel %vm5661_vm5, %v542_v44, %v652_v43  ;;  %v4713_v34 = vld [vmem:[%s680_s10] sm:$0xff] (!%p4312_p8)  }
  0x3b   : > { %648 = vst [vmem:[#allocation2 + $0x40] sm:$0xf] %v534_v49  ;;  %651 = vst [vmem:[#allocation2 + $0x44] sm:$0x1] %v650_v50  ;;  %v550_v55 = vor.u32 %v548_v37, %v547_v46  ;;  %v552_v56 = vrot.slane %v547_v46, 4  ;;  %v556_v57 = vrot.slane %v554_v47, 7  ;;  %v383_v63 = vadd.f32 %v5632_v10, %v361_v20 }
  0x3c   : > { %654 = vst [vmem:[#allocation2 + $0x48] sm:$0xf] %v653_v54  ;;  %v397_v60 = vmax.f32 %v381_v32, 0.0  ;;  %v398_v61 = vmax.f32 %v382_v33, 0.0  ;;  %v4714_v35 = vunpack.c.l.bf16 (!%p4312_p8), %v4713_v34  ;;  %v4715_v36 = vunpack.c.h.bf16 (!%p4312_p8), %v4713_v34 }
  0x3d   : > { %v551_v0 = vsel %vm5667_vm6, %v543_v45, %v550_v55  ;;  %v657_v2 = vsel %vm5673_vm7, %v552_v56, %v656_v52  ;;  %v559_v3 = vor.u32 %v557_v53, %v556_v57  ;;  %v399_v6 = vmax.f32 %v383_v63, 0.0  ;;  %v717_v52 = vld [vmem:[#allocation2] sm:$0xf] (!%p4312_p8)  ;;  %v721_v53 = vld [vmem:[#allocation2 + $0x8] sm:$0x1] (!%p4312_p8) }
  0x3e   : > { %655 = vst [vmem:[#allocation2 + $0x4c] sm:$0xf] %v551_v0  ;;  %658 = vst [vmem:[#allocation2 + $0x50] sm:$0x1] %v657_v2  ;;  %v4655_v4 = vpack.c.bf16 %v397_v60, %v397_v60  ;;  %v4656_v5 = vpack.c.bf16 %v398_v61, %v398_v61  ;;  %v560_v14 = vrot.slane %v556_v57, 4  ;;  %v685_v37 = vmul.f32 (!%p4312_p8), %v4714_v35, %v5620_v1 }
  0x3f   : > { %v660_v7 = vsel %vm5661_vm5, %v559_v3, %v659_v59  ;;  %v4657_v13 = vpack.c.bf16 %v399_v6, %v399_v6  ;;  %v686_v38 = vmul.f32 (!%p4312_p8), %v4715_v36, %v5620_v1 }
  0x40   : > { %661 = vst [vmem:[#allocation2 + $0x54] sm:$0xf] %v660_v7  ;;  %v562_v8 = vshrl.u32 %v4655_v4, 16  ;;  %v565_v9 = vshll.u32 %v4655_v4, 16  ;;  %v571_v11 = vshrl.u32 %v4656_v5, 16  ;;  %v574_v12 = vshll.u32 %v4656_v5, 16 }
  0x41   : > { %v579_v19 = vshrl.u32 %v4657_v13, 16  ;;  %v582_v20 = vshll.u32 %v4657_v13, 16  ;;  %v687_v39 = vadd.f32 (!%p4312_p8), %v5632_v10, %v685_v37  ;;  %v688_v40 = vadd.f32 (!%p4312_p8), %v5632_v10, %v686_v38 }
  0x42   : > { %v564_v15 = vrot.slane %v562_v8, 7  ;;  %v573_v16 = vrot.slane %v571_v11, 7 }
  0x43   : > { %v581_v25 = vrot.slane %v579_v19, 7  ;;  %676 = sbr.rel (%p4312_p8) target bundleno = 80 (0x50), region = 40  ;;  %v689_v41 = vmax.f32 (!%p4312_p8), %v687_v39, 0.0  ;;  %v690_v42 = vmax.f32 (!%p4312_p8), %v688_v40, 0.0 }
  0x44   : > { %v567_v21 = vor.u32 %v565_v9, %v564_v15  ;;  %v569_v22 = vrot.slane %v564_v15, 4  ;;  %v576_v23 = vor.u32 %v574_v12, %v573_v16  ;;  %v577_v24 = vrot.slane %v573_v16, 4 }
  0x45   : > { %v584_v30 = vor.u32 %v582_v20, %v581_v25  ;;  %v586_v31 = vrot.slane %v581_v25, 4  ;;  %v4659_v43 = vpack.c.bf16 (!%p4312_p8), %v689_v41, %v689_v41  ;;  %v4660_v44 = vpack.c.bf16 (!%p4312_p8), %v690_v42, %v690_v42 }
  0x46   : > { %v568_v26 = vsel %vm5667_vm6, %v560_v14, %v567_v21  ;;  %v664_v27 = vsel %vm5673_vm7, %v569_v22, %v663_v17  ;;  %v667_v28 = vsel %vm5661_vm5, %v576_v23, %v666_v18 }
  0x47   : > { %662 = vst [vmem:[#allocation2 + $0x58] sm:$0xf] %v568_v26  ;;  %665 = vst [vmem:[#allocation2 + $0x5c] sm:$0x1] %v664_v27  ;;  %v585_v32 = vsel %vm5667_vm6, %v577_v24, %v584_v30  ;;  %v671_v33 = vsel %vm5673_vm7, %v586_v31, %v670_v29  ;;  %v698_v45 = vshrl.u32 (!%p4312_p8), %v4659_v43, 16  ;;  %v701_v46 = vshll.u32 (!%p4312_p8), %v4659_v43, 16 }
  0x48   : > { %668 = vst [vmem:[#allocation2 + $0x60] sm:$0xf] %v667_v28  ;;  %669 = vst [vmem:[#allocation2 + $0x64] sm:$0xf] %v585_v32  ;;  %v706_v47 = vshrl.u32 (!%p4312_p8), %v4660_v44, 16  ;;  %v709_v48 = vshll.u32 (!%p4312_p8), %v4660_v44, 16 }
  0x49   : > { %672 = vst [vmem:[#allocation2 + $0x68] sm:$0x1] %v671_v33  ;;  %v700_v49 = vrot.slane (!%p4312_p8), %v698_v45, 7 }
  0x4a   : > { %v708_v50 = vrot.slane %v706_v47, 7 }
  0x4b   : > { %v703_v54 = vor.u32 %v701_v46, %v700_v49  ;;  %v704_v55 = vrot.slane %v700_v49, 4 }
  0x4c   : > { %v711_v56 = vor.u32 %v709_v48, %v708_v50  ;;  %v713_v57 = vrot.slane %v708_v50, 4 }
  0x4d   : > { %v718_v59 = vsel %vm5661_vm5, %v703_v54, %v717_v52 }
  0x4e   : > { %v712_v60 = vsel %vm5667_vm6, %v704_v55, %v711_v56  ;;  %v722_v61 = vsel %vm5673_vm7, %v713_v57, %v721_v53  ;;  %719 = vst [vmem:[#allocation2] sm:$0xf] %v718_v59 }
  0x4f   : > { %720 = vst [vmem:[#allocation2 + $0x4] sm:$0xf] %v712_v60  ;;  %723 = vst [vmem:[#allocation2 + $0x8] sm:$0x1] %v722_v61 }
  0x50 PF: > { %p4318_p9 = scmp.ge.s32.totalorder %s5510_s18, 1 }
  0x51   : > { %v4767_v63 = vld [vmem:[%s5623_s16 + $0x40] sm:$0xff] (!%p4318_p9)   ;;  %v769_v18 = vld [vmem:[#allocation2 + $0x6c] sm:$0xf] (!%p4318_p9)  ;;  %v773_v19 = vld [vmem:[#allocation2 + $0x74] sm:$0x1] (!%p4318_p9) }
  0x52   : > { %727 = sbr.rel (%p4318_p9) target bundleno = 101 (0x65), region = 44  ;;  %v4718_v0 = vunpack.c.l.bf16 (!%p4318_p9), %v4767_v63  ;;  %v4719_v2 = vunpack.c.h.bf16 (!%p4318_p9), %v4767_v63 }
  0x54   : > { %v736_v3 = vmul.f32 (!%p4318_p9), %v4718_v0, %v5620_v1  ;;  %v737_v4 = vmul.f32 (!%p4318_p9), %v4719_v2, %v5620_v1 }
  0x56   : > { %v738_v5 = vadd.f32 (!%p4318_p9), %v5632_v10, %v736_v3  ;;  %v739_v6 = vadd.f32 (!%p4318_p9), %v5632_v10, %v737_v4 }
  0x58   : > { %v740_v7 = vmax.f32 (!%p4318_p9), %v738_v5, 0.0  ;;  %v741_v8 = vmax.f32 (!%p4318_p9), %v739_v6, 0.0 }
  0x5a   : > { %v4662_v9 = vpack.c.bf16 %v740_v7, %v740_v7  ;;  %v4663_v11 = vpack.c.bf16 %v741_v8, %v741_v8 }
  0x5c   : > { %v749_v12 = vshrl.u32 %v4662_v9, 16  ;;  %v752_v13 = vshll.u32 %v4662_v9, 16  ;;  %v757_v14 = vshrl.u32 %v4663_v11, 16  ;;  %v760_v15 = vshll.u32 %v4663_v11, 16 }
  0x5e   : > { %v751_v16 = vrot.slane %v749_v12, 7  ;;  %v759_v17 = vrot.slane %v757_v14, 7 }
  0x60   : > { %v754_v20 = vor.u32 %v752_v13, %v751_v16  ;;  %v755_v21 = vrot.slane %v751_v16, 4  ;;  %v762_v22 = vor.u32 %v760_v15, %v759_v17  ;;  %v764_v1 = vrot.slane %v759_v17, 4 }
  0x62   : > { %v770_v23 = vsel %vm5661_vm5, %v754_v20, %v769_v18  ;;  %v763_v10 = vsel %vm5667_vm6, %v755_v21, %v762_v22  ;;  %v774_v24 = vsel %vm5673_vm7, %v764_v1, %v773_v19 }
  0x63   : > { %771 = vst [vmem:[#allocation2 + $0x6c] sm:$0xf] %v770_v23  ;;  %772 = vst [vmem:[#allocation2 + $0x70] sm:$0xf] %v763_v10 }
  0x64   : > { %775 = vst [vmem:[#allocation2 + $0x74] sm:$0x1] %v774_v24 }
  0x65 PF: > { %v5392_v25 = vld [vmem:[%s6302_s1] sm:$0xff]   ;;  %v5394_v51 = vld [vmem:[%s6302_s1 + $0x8] sm:$0xff]   ;;  %v5396_v62 = vld [vmem:[%s6302_s1 + $0x10] sm:$0xff]   ;;  %vm1041_vm8 = vsmask.f32 3328  ;;  %vm1526_vm11 = vcmask 1042432  }
  0x66   : > { %v5393_v26 = vld [vmem:[%s6302_s1 + $0x100] sm:$0xff]   ;;  %4919 = vmatprep.subr.bf16.mxu1 %v5392_v25  ;;  %v5395_v58 = vld [vmem:[%s6302_s1 + $0x108] sm:$0xff]   ;;  %v5397_v27 = vld [vmem:[%s6302_s1 + $0x110] sm:$0xff]   ;;  %vm1042_vm9 = vsmask.f32 7440  ;;  %vm1527_vm12 = vcmask 1046532  }
  0x67   : > { %5047 = vmatprep.subr.bf16.mxu0 %v5393_v26  ;;  %4920 = vmatpush3.bf16.msra.mxu1 %v5392_v25  ;;  %v5398_v28 = vld [vmem:[%s6302_s1 + $0x18] sm:$0xff]   ;;  %v5400_v30 = vld [vmem:[%s6302_s1 + $0x20] sm:$0xff]   ;;  %v5402_v32 = vld [vmem:[%s6302_s1 + $0x28] sm:$0xff]  }
  0x68   : > { %5048 = vmatpush3.bf16.msra.mxu0 %v5393_v26  ;;  %4921 = vmatprep.subr.bf16.mxu1 %v5394_v51  ;;  %v5399_v29 = vld [vmem:[%s6302_s1 + $0x118] sm:$0xff]   ;;  %v5401_v31 = vld [vmem:[%s6302_s1 + $0x120] sm:$0xff]   ;;  %v5403_v33 = vld [vmem:[%s6302_s1 + $0x128] sm:$0xff]  }
  0x69   : > { %5049 = vmatprep.subr.bf16.mxu0 %v5395_v58  ;;  %v5408_v34 = vld [vmem:[#allocation2] sm:$0xff]   ;;  %v2101_v35 = vld [vmem:[#allocation2 + $0xc] sm:$0xf]  ;;  %v2102_v36 = vld [vmem:[#allocation2 + $0x10] sm:$0xf] }
  0x6a   : > { %4935 = vmatprep.mubr.bf16.mxu1 %v5408_v34  ;;  %v2103_v37 = vld [vmem:[#allocation2 + $0x14] sm:$0x1]  ;;  %v2126_v38 = vshrl.u32 %v2101_v35, 16  ;;  %v2129_v39 = vshll.u32 %v2101_v35, 16  ;;  %v2135_v41 = vshll.u32 %v2102_v36, 16  ;;  %v2139_v42 = vshrl.u32 %v2102_v36, 16  ;;  %vm5821_vm10 = vmor %vm1041_vm8, %vm1042_vm9 }
  0x6b   : > { %4922 = vmatpush3.bf16.msra.mxu1 %v5394_v51  ;;  %v5404_v40 = vld [vmem:[%s6302_s1 + $0x30] sm:$0xff]   ;;  %v2145_v43 = vshll.u32 %v2103_v37, 16  ;;  %v2104_v52 = vld [vmem:[#allocation2 + $0x18] sm:$0xf]  ;;  %v2105_v53 = vld [vmem:[#allocation2 + $0x1c] sm:$0xf] }
  0x6c   : > { %5050 = vmatpush3.bf16.msra.mxu0 %v5395_v58  ;;  %4923 = vmatprep.subr.bf16.mxu1 %v5396_v62  ;;  %v2128_v44 = vrot.slane %v2126_v38, 4  ;;  %v2131_v45 = vrot.slane %v2129_v39, 5  ;;  %v5405_v46 = vld [vmem:[%s6302_s1 + $0x130] sm:$0xff]   ;;  %v2137_v47 = vrot.slane %v2135_v41, 5  ;;  %v2141_v48 = vrot.slane %v2139_v42, 4  ;;  %v5406_v55 = vld [vmem:[%s6302_s1 + $0x38] sm:$0xff]   ;;  %vm5913_vm13 = vmor %vm1526_vm11, %vm1527_vm12 }
  0x6d   : > { %5051 = vmatprep.subr.bf16.mxu0 %v5397_v27  ;;  %v2147_v49 = vrot.slane %v2145_v43, 5  ;;  %v2106_v54 = vld [vmem:[#allocation2 + $0x20] sm:$0x1]  ;;  %v2150_v59 = vshrl.u32 %v2104_v52, 16  ;;  %v2153_v60 = vshll.u32 %v2104_v52, 16  ;;  %v2159_v61 = vshll.u32 %v2105_v53, 16 }
  0x6e   : > { %v2132_v50 = vor.u32 %v2131_v45, %v2128_v44  ;;  %v2142_v57 = vor.u32 %v2141_v48, %v2137_v47  ;;  %v5407_v63 = vld [vmem:[%s6302_s1 + $0x138] sm:$0xff]   ;;  %v2163_v2 = vshrl.u32 %v2105_v53, 16  ;;  %v2169_v3 = vshll.u32 %v2106_v54, 16  ;;  %v5410_v12 = vld [vmem:[%s6302_s1 + $0x40] sm:$0xff]   ;;  %v5409_v15 = vld [vmem:[#allocation2 + $0xc] sm:$0xff]  }
  0x6f   : > { %4924 = vmatpush3.bf16.msra.mxu1 %v5396_v62  ;;  %v2152_v5 = vrot.slane %v2150_v59, 4  ;;  %v2155_v6 = vrot.slane %v2153_v60, 5  ;;  %v2161_v7 = vrot.slane %v2159_v61, 5  ;;  %v5411_v18 = vld [vmem:[%s6302_s1 + $0x140] sm:$0xff]   ;;  %v2108_v21 = vld [vmem:[#allocation2 + $0x28] sm:$0xf] }
  0x70   : > { %5052 = vmatpush3.bf16.msra.mxu0 %v5397_v27  ;;  %4925 = vmatprep.subr.bf16.mxu1 %v5398_v28  ;;  %v2133_v0 = vrot.slane %v2132_v50, 4  ;;  %v2143_v4 = vrot.slane %v2142_v57, 4  ;;  %v2165_v9 = vrot.slane %v2163_v2, 4  ;;  %v2171_v17 = vrot.slane %v2169_v3, 5  ;;  %v2107_v19 = vld [vmem:[#allocation2 + $0x24] sm:$0xf] }
  0x71   : > { %5053 = vmatprep.subr.bf16.mxu0 %v5399_v29  ;;  %v2156_v13 = vor.u32 %v2155_v6, %v2152_v5  ;;  %v2109_v22 = vld [vmem:[#allocation2 + $0x2c] sm:$0x1]  ;;  %v2174_v1 = vshrl.u32 %v2107_v19, 16  ;;  %v2177_v10 = vshll.u32 %v2107_v19, 16  ;;  %v2183_v24 = vshll.u32 %v2108_v21, 16  ;;  %v5416_v38 = vld [vmem:[%s6302_s1 + $0x50] sm:$0xff]  }
  0x72   : > { %v2138_v8 = vsel %vm5821_vm10, %v2133_v0, %v2137_v47  ;;  %v2148_v11 = vsel %vm5821_vm10, %v2143_v4, %v2147_v49  ;;  %v2166_v16 = vor.u32 %v2165_v9, %v2161_v7  ;;  %v2187_v25 = vshrl.u32 %v2108_v21, 16  ;;  %v5412_v51 = vld [vmem:[%s6302_s1 + $0x48] sm:$0xff]   ;;  %v2110_v35 = vld [vmem:[#allocation2 + $0x30] sm:$0xf]  ;;  %v2111_v39 = vld [vmem:[#allocation2 + $0x34] sm:$0xf] }
  0x73   : > { %4926 = vmatpush3.bf16.msra.mxu1 %v5398_v28  ;;  %v4461_v14 = vcombine.low %v2138_v8, %v2148_v11  ;;  %v2157_v20 = vrot.slane %v2156_v13, 4  ;;  %v2176_v58 = vrot.slane %v2174_v1, 4  ;;  %v2193_v62 = vshll.u32 %v2109_v22, 16  ;;  %v5413_v28 = vld [vmem:[%s6302_s1 + $0x148] sm:$0xff]   ;;  %v5420_v57 = vld [vmem:[#allocation2 + $0x30] sm:$0xff]   ;;  %v5419_v3 = vld [vmem:[%s6302_s1 + $0x158] sm:$0xff]  }
  0x74   : > { %5054 = vmatpush3.bf16.msra.mxu0 %v5399_v29  ;;  %4927 = vmatprep.subr.bf16.mxu1 %v5400_v30  ;;  %v2167_v23 = vrot.slane %v2166_v16, 4  ;;  %v2179_v29 = vrot.slane %v2177_v10, 5  ;;  %v2198_v41 = vshrl.u32 %v2110_v35, 16  ;;  %v2201_v42 = vshll.u32 %v2110_v35, 16  ;;  %v5415_v49 = vld [vmem:[#allocation2 + $0x24] sm:$0xff]  }
  0x75   : > { %5055 = vmatprep.subr.bf16.mxu0 %v5401_v31  ;;  %5063 = vmatprep.mubr.bf16.mxu0 %v4461_v14  ;;  %v2162_v26 = vsel %vm5821_vm10, %v2157_v20, %v2161_v7  ;;  %v2195_v34 = vrot.slane %v2193_v62, 5  ;;  %v2207_v43 = vshll.u32 %v2111_v39, 16  ;;  %v2211_v44 = vshrl.u32 %v2111_v39, 16  ;;  %v2113_v4 = vld [vmem:[#allocation2 + $0x3c] sm:$0xf]  ;;  %v5422_v21 = vld [vmem:[%s6302_s1 + $0x60] sm:$0xff]  }
  0x76   : > { %v2172_v27 = vsel %vm5821_vm10, %v2167_v23, %v2171_v17  ;;  %v2180_v36 = vor.u32 %v2179_v29, %v2176_v58  ;;  %v2200_v50 = vrot.slane %v2198_v41, 4  ;;  %v2203_v52 = vrot.slane %v2201_v42, 5  ;;  %v2114_v6 = vld [vmem:[#allocation2 + $0x40] sm:$0xf]  ;;  %v2115_v7 = vld [vmem:[#allocation2 + $0x44] sm:$0x1] }
  0x77   : > { %4928 = vmatpush3.bf16.msra.mxu1 %v5400_v30  ;;  %v2185_v30 = vrot.slane %v2183_v24, 5  ;;  %v2209_v53 = vrot.slane %v2207_v43, 5  ;;  %v2213_v54 = vrot.slane %v2211_v44, 4  ;;  %v2222_v8 = vshrl.u32 %v2113_v4, 16  ;;  %v2116_v23 = vld [vmem:[#allocation2 + $0x48] sm:$0xf] }
  0x78   : > { %5056 = vmatpush3.bf16.msra.mxu0 %v5401_v31  ;;  %4929 = vmatprep.subr.bf16.mxu1 %v5402_v32  ;;  %v2189_v31 = vrot.slane %v2187_v25, 4  ;;  %v2181_v47 = vrot.slane %v2180_v36, 4  ;;  %v2204_v61 = vor.u32 %v2203_v52, %v2200_v50  ;;  %v2225_v11 = vshll.u32 %v2113_v4, 16  ;;  %v5423_v10 = vld [vmem:[%s6302_s1 + $0x160] sm:$0xff]   ;;  %v5424_v35 = vld [vmem:[%s6302_s1 + $0x68] sm:$0xff]  }
  0x79   : > { %5057 = vmatprep.subr.bf16.mxu0 %v5403_v33  ;;  %v2214_v2 = vor.u32 %v2213_v54, %v2209_v53  ;;  %v2235_v13 = vshrl.u32 %v2114_v6, 16  ;;  %v2241_v16 = vshll.u32 %v2115_v7, 16  ;;  %v2246_v58 = vshrl.u32 %v2116_v23, 16  ;;  %v5425_v36 = vld [vmem:[%s6302_s1 + $0x168] sm:$0xff]  }
  0x7a   : > { %v2190_v37 = vor.u32 %v2189_v31, %v2185_v30  ;;  %v2186_v59 = vsel %vm5821_vm10, %v2181_v47, %v2185_v30  ;;  %v2205_v5 = vrot.slane %v2204_v61, 4  ;;  %v2249_v62 = vshll.u32 %v2116_v23, 16  ;;  %v5427_v61 = vld [vmem:[#allocation2 + $0x54] sm:$0xff]  }
  0x7b   : > { %4930 = vmatpush3.bf16.msra.mxu1 %v5402_v32  ;;  %v4462_v32 = vcombine.low %v2162_v26, %v2172_v27  ;;  %v2215_v9 = vrot.slane %v2214_v2, 4  ;;  %v2237_v20 = vrot.slane %v2235_v13, 4  ;;  %v2243_v1 = vrot.slane %v2241_v16, 5  ;;  %v2117_v26 = vld [vmem:[#allocation2 + $0x4c] sm:$0xf]  ;;  %v5421_v27 = vld [vmem:[#allocation2 + $0x3c] sm:$0xff]  }
  0x7c   : > { %5058 = vmatpush3.bf16.msra.mxu0 %v5403_v33  ;;  %4931 = vmatprep.subr.bf16.mxu1 %v5404_v40  ;;  %v5414_v33 = vld [vmem:[#allocation2 + $0x18] sm:$0xff]   ;;  %v2191_v48 = vrot.slane %v2190_v37, 4  ;;  %v2210_v14 = vsel %vm5821_vm10, %v2205_v5, %v2209_v53  ;;  %v2259_v29 = vshrl.u32 %v2117_v26, 16  ;;  %v5429_v5 = vld [vmem:[%s6302_s1 + $0x170] sm:$0xff]   ;;  %v2123_v13 = vld [vmem:[#allocation2 + $0x64] sm:$0xf] }
  0x7d   : > { %5059 = vmatprep.subr.bf16.mxu0 %v5405_v46 }
  0x7e   : > { %v2196_v60 = vsel %vm5821_vm10, %v2191_v48, %v2195_v34  ;;  %v2251_v34 = vrot.slane %v2249_v62, 5  ;;  %v2120_v48 = vld [vmem:[#allocation2 + $0x58] sm:$0xf] }
  0x7f   : > { %4932 = vmatpush3.bf16.msra.mxu1 %v5404_v40  ;;  %v2112_v40 = vld [vmem:[#allocation2 + $0x38] sm:$0x1]  ;;  %v4463_v0 = vcombine.low %v2186_v59, %v2196_v60  ;;  %v2279_v54 = vshll.u32 %v2120_v48, 16 }
  0x80   : > { %5060 = vmatpush3.bf16.msra.mxu0 %v5405_v46  ;;  %4933 = vmatprep.subr.bf16.mxu1 %v5406_v55  ;;  %v2217_v45 = vshll.u32 %v2112_v40, 16  ;;  %v5417_v46 = vld [vmem:[%s6302_s1 + $0x150] sm:$0xff]   ;;  %v5426_v40 = vld [vmem:[#allocation2 + $0x48] sm:$0xff]  }
  0x81   : > { %5061 = vmatprep.subr.bf16.mxu0 %v5407_v63 }
  0x83   : > { %4934 = vmatpush3.bf16.msra.mxu1 %v5406_v55  ;;  %v2219_v55 = vrot.slane %v2217_v45, 5 }
  0x84   : > { %5062 = vmatpush3.bf16.msra.mxu0 %v5407_v63  ;;  %4951 = vmatprep.subr.bf16.mxu1 %v5410_v12  ;;  %v5418_v63 = vld [vmem:[%s6302_s1 + $0x58] sm:$0xff]  }
  0x85   : > { %5079 = vmatprep.subr.bf16.mxu0 %v5411_v18  ;;  %v2220_v17 = vsel %vm5821_vm10, %v2215_v9, %v2219_v55  ;;  %v2283_v55 = vshrl.u32 %v2120_v48, 16  ;;  %v5430_v9 = vld [vmem:[%s6302_s1 + $0x78] sm:$0xff]   ;;  %v5921_v48 = vld [vmem:[%s6302_s1 + $0x180] sm:$0xff]  }
  0x86   : > { %4936 = vmatmul.mubr.bf16.vlgmr.msra.gmra.mrb[0].mxu1 %v5409_v15  ;;  %v2224_v15 = vrot.slane %v2222_v8, 4  ;;  %v4464_v22 = vcombine.low %v2210_v14, %v2220_v17  ;;  %v2122_v8 = vld [vmem:[#allocation2 + $0x60] sm:$0xf]  ;;  %v2124_v14 = vld [vmem:[#allocation2 + $0x68] sm:$0x1]  ;;  %v2303_v17 = vshll.u32 %v2123_v13, 16 }
  0x87   : > { %5064 = vmatmul.mubr.bf16.vlgmr.msra.gmra.mrb[0].mxu0 %v4462_v32  ;;  %4952 = vmatpush3.bf16.msra.mxu1 %v5410_v12  ;;  %v2231_v12 = vshll.u32 %v2114_v6, 16  ;;  %v2285_v4 = vrot.slane %v2283_v55, 4  ;;  %v2297_v16 = vshll.u32 %v2122_v8, 16 }
  0x88   : > { %5080 = vmatpush3.bf16.msra.mxu0 %v5411_v18  ;;  %4953 = vmatprep.subr.bf16.mxu1 %v5412_v51  ;;  %v2227_v18 = vrot.slane %v2225_v11, 5 }
  0x89   : > { %5081 = vmatprep.subr.bf16.mxu0 %v5413_v28  ;;  %4939 = vmatprep.mubr.bf16.mxu1 %v5414_v33  ;;  %v2233_v19 = vrot.slane %v2231_v12, 5  ;;  %v2248_v33 = vrot.slane %v2246_v58, 4  ;;  %v2299_v23 = vrot.slane %v2297_v16, 5 }
  0x8a   : > { %5067 = vmatprep.mubr.bf16.mxu0 %v4463_v0  ;;  %v2228_v24 = vor.u32 %v2227_v18, %v2224_v15  ;;  %v2294_v15 = vshrl.u32 %v2122_v8, 16  ;;  %v2307_v18 = vshrl.u32 %v2123_v13, 16 }
  0x8b   : > { %4954 = vmatpush3.bf16.msra.mxu1 %v5412_v51  ;;  %v2238_v25 = vor.u32 %v2237_v20, %v2233_v19  ;;  %v2118_v51 = vld [vmem:[#allocation2 + $0x50] sm:$0x1]  ;;  %v2252_v43 = vor.u32 %v2251_v34, %v2248_v33  ;;  %v5431_v20 = vld [vmem:[%s6302_s1 + $0x178] sm:$0xff]  }
  0x8c   : > { %5082 = vmatpush3.bf16.msra.mxu0 %v5413_v28  ;;  %4955 = vmatprep.subr.bf16.mxu1 %v5416_v38  ;;  %v2255_v28 = vshll.u32 %v2117_v26, 16  ;;  %v2265_v30 = vshll.u32 %v2118_v51, 16  ;;  %v2229_v31 = vrot.slane %v2228_v24, 4  ;;  %v2309_v24 = vrot.slane %v2307_v18, 4  ;;  %v5903_v26 = vld [vmem:[%s6302_s1 + $0x80] sm:$0xff]  }
  0x8d   : > { %5083 = vmatprep.subr.bf16.mxu0 %v5417_v46  ;;  %v2239_v32 = vrot.slane %v2238_v25, 4  ;;  %v2253_v47 = vrot.slane %v2252_v43, 4 }
  0x8e   : > { %4940 = vmatmul.mubr.bf16.gmra.mrb[4].mxu1 %v5415_v49  ;;  %v2257_v37 = vrot.slane %v2255_v28, 5  ;;  %v2267_v39 = vrot.slane %v2265_v30, 5  ;;  %v2234_v41 = vsel %vm5821_vm10, %v2229_v31, %v2233_v19  ;;  %v2121_v49 = vld [vmem:[#allocation2 + $0x5c] sm:$0x1]  ;;  %v2313_v19 = vshll.u32 %v2124_v14, 16 }
  0x8f   : > { %4956 = vmatpush3.bf16.msra.mxu1 %v5416_v38  ;;  %4943 = vmatprep.mubr.bf16.mxu1 %v5420_v57  ;;  %v2261_v38 = vrot.slane %v2259_v29, 4  ;;  %v2244_v42 = vsel %vm5821_vm10, %v2239_v32, %v2243_v1  ;;  %v2289_v60 = vshll.u32 %v2121_v49, 16  ;;  %v2296_v1 = vrot.slane %v2294_v15, 4  ;;  %v1017_v29 = vld [vmem:[#allocation2] sm:$0xf] }
  0x90   : > { %5084 = vmatpush3.bf16.msra.mxu0 %v5417_v46  ;;  %4957 = vmatprep.subr.bf16.mxu1 %v5418_v63  ;;  %v4465_v44 = vcombine.low %v2234_v41, %v2244_v42  ;;  %v2119_v46 = vld [vmem:[#allocation2 + $0x54] sm:$0xf]  ;;  %v2258_v57 = vsel %vm5821_vm10, %v2253_v47, %v2257_v37  ;;  %v2315_v25 = vrot.slane %v2313_v19, 5  ;;  %v1018_v30 = vld [vmem:[#allocation2 + $0x4] sm:$0xf]  ;;  %v1045_v33 = vshrl.u32 %v1017_v29, 16 }
  0x91   : > { %5085 = vmatprep.subr.bf16.mxu0 %v5419_v3  ;;  %5068 = vmatmul.mubr.bf16.gmra.mrb[4].mxu0 %v4464_v22  ;;  %v2262_v45 = vor.u32 %v2261_v38, %v2257_v37  ;;  %v2270_v50 = vshrl.u32 %v2119_v46, 16  ;;  %v2273_v53 = vshll.u32 %v2119_v46, 16  ;;  %v2291_v7 = vrot.slane %v2289_v60, 5  ;;  %v1019_v31 = vld [vmem:[#allocation2 + $0x8] sm:$0x1] }
  0x92   : > { %5071 = vmatprep.mubr.bf16.mxu0 %v4465_v44  ;;  %v2300_v62 = vor.u32 %v2299_v23, %v2296_v1  ;;  %v1048_v34 = vshll.u32 %v1017_v29, 16  ;;  %v1058_v38 = vshrl.u32 %v1018_v30, 16  ;;  %v1047_v43 = vrot.slane %v1045_v33, 4  ;;  %v2561_v47 = vld [vmem:[#allocation2 + $0x14] sm:$0x1]  ;;  %v5434_v33 = vld [vmem:[%s6302_s1 + $0x88] sm:$0xff]  }
  0x93   : > { %4958 = vmatpush3.bf16.msra.mxu1 %v5418_v63  ;;  %v2263_v52 = vrot.slane %v2262_v45, 4  ;;  %v2272_v59 = vrot.slane %v2270_v50, 4  ;;  %v5428_v63 = vld [vmem:[%s6302_s1 + $0x70] sm:$0xff]   ;;  %v2275_v2 = vrot.slane %v2273_v53, 5  ;;  %v2563_v15 = vld [vmem:[#allocation2 + $0x1c] sm:$0xf] }
  0x94   : > { %5086 = vmatpush3.bf16.msra.mxu0 %v5419_v3  ;;  %4959 = vmatprep.subr.bf16.mxu1 %v5422_v21  ;;  %v2281_v3 = vrot.slane %v2279_v54, 5  ;;  %v2301_v32 = vrot.slane %v2300_v62, 4  ;;  %v1050_v44 = vrot.slane %v1048_v34, 5  ;;  %v1060_v50 = vrot.slane %v1058_v38, 4  ;;  %v1020_v54 = vld [vmem:[#allocation2 + $0xc] sm:$0xf] }
  0x95   : > { %5087 = vmatprep.subr.bf16.mxu0 %v5423_v10  ;;  %v2268_v0 = vsel %vm5821_vm10, %v2263_v52, %v2267_v39  ;;  %v2276_v11 = vor.u32 %v2275_v2, %v2272_v59  ;;  %v1064_v39 = vshll.u32 %v1019_v31, 16  ;;  %v2612_v59 = vrot.slane %v2561_v47, 5  ;;  %v1021_v60 = vld [vmem:[#allocation2 + $0x10] sm:$0xf]  ;;  %v1023_v62 = vld [vmem:[#allocation2 + $0x18] sm:$0xf] }
  0x96   : > { %4944 = vmatmul.mubr.bf16.gmra.mrb[8].mxu1 %v5421_v27  ;;  %v4466_v6 = vcombine.low %v2258_v57, %v2268_v0  ;;  %v2286_v12 = vor.u32 %v2285_v4, %v2281_v3  ;;  %v1051_v57 = vor.u32 %v1050_v44, %v1047_v43  ;;  %v1072_v4 = vshll.u32 %v1020_v54, 16  ;;  %v1025_v31 = vld [vmem:[#allocation2 + $0x20] sm:$0x1]  ;;  %v5435_v34 = vld [vmem:[%s6302_s1 + $0x188] sm:$0xff]   ;;  %v2565_v38 = vld [vmem:[#allocation2 + $0x24] sm:$0xe] }
  0x97   : > { %4960 = vmatpush3.bf16.msra.mxu1 %v5422_v21  ;;  %4947 = vmatprep.mubr.bf16.mxu1 %v5426_v40  ;;  %v2277_v21 = vrot.slane %v2276_v11, 4  ;;  %v2560_v40 = vld [vmem:[#allocation2 + $0x10] sm:$0xf]  ;;  %v1066_v52 = vrot.slane %v1064_v39, 5  ;;  %v1082_v8 = vshrl.u32 %v1021_v60, 16 }
  0x98   : > { %5088 = vmatpush3.bf16.msra.mxu0 %v5423_v10  ;;  %4961 = vmatprep.subr.bf16.mxu1 %v5424_v35  ;;  %v2287_v22 = vrot.slane %v2286_v12, 4  ;;  %v2305_v10 = vrot.slane %v2303_v17, 5  ;;  %v2609_v53 = vrot.slane %v2560_v40, 5  ;;  %v1074_v13 = vrot.slane %v1072_v4, 5  ;;  %v2566_v43 = vld [vmem:[#allocation2 + $0x28] sm:$0xf] }
  0x99   : > { %5089 = vmatprep.subr.bf16.mxu0 %v5425_v36  ;;  %5072 = vmatmul.mubr.bf16.gmra.mrb[8].mxu0 %v4466_v6  ;;  %v2282_v51 = vsel %vm5821_vm10, %v2277_v21, %v2281_v3  ;;  %v1084_v19 = vrot.slane %v1082_v8, 4  ;;  %v2567_v44 = vld [vmem:[#allocation2 + $0x2c] sm:$0x1] }
  0x9a   : > { %v2292_v58 = vsel %vm5821_vm10, %v2287_v22, %v2291_v7  ;;  %v2310_v28 = vor.u32 %v2309_v24, %v2305_v10  ;;  %v2306_v42 = vsel %vm5821_vm10, %v2301_v32, %v2305_v10  ;;  %v2611_v3 = vrot.slane %v2609_v53, 4 }
  0x9b   : > { %4962 = vmatpush3.bf16.msra.mxu1 %v5424_v35  ;;  %v4467_v27 = vcombine.low %v2282_v51, %v2292_v58  ;;  %v1054_v35 = vshll.u32 %v1018_v30, 16  ;;  %v1078_v7 = vshll.u32 %v1021_v60, 16  ;;  %v1024_v30 = vld [vmem:[#allocation2 + $0x1c] sm:$0xf]  ;;  %v1028_v60 = vld [vmem:[#allocation2 + $0x2c] sm:$0x1] }
  0x9c   : > { %5090 = vmatpush3.bf16.msra.mxu0 %v5425_v36  ;;  %4963 = vmatprep.subr.bf16.mxu1 %v5428_v63  ;;  %v2559_v36 = vld [vmem:[#allocation2 + $0xc] sm:$0xe]  ;;  %v2311_v37 = vrot.slane %v2310_v28, 4  ;;  %v2613_v12 = vsel %vm5913_vm13, %v2611_v3, %v2612_v59  ;;  %v4479_v59 = vrot.slane %v2565_v38, 9 }
  0x9d   : > { %5091 = vmatprep.subr.bf16.mxu0 %v5429_v5  ;;  %5075 = vmatprep.mubr.bf16.mxu0 %v4467_v27  ;;  %v4477_v41 = vrot.slane %v2559_v36, 9  ;;  %v1056_v45 = vrot.slane %v1054_v35, 5  ;;  %v1080_v18 = vrot.slane %v1078_v7, 5  ;;  %v1093_v35 = vshrl.u32 %v1023_v62, 16  ;;  %v5436_v7 = vld [vmem:[%s6302_s1 + $0x90] sm:$0xff]  }
  0x9e   : > { %4948 = vmatmul.mubr.bf16.gmra.mrb[12].mxu1 %v5427_v61  ;;  %v2316_v49 = vsel %vm5821_vm10, %v2311_v37, %v2315_v25  ;;  %v1022_v61 = vld [vmem:[#allocation2 + $0x14] sm:$0x1]  ;;  %v2616_v25 = vrot.slane %v2563_v15, 5  ;;  %v1096_v36 = vshll.u32 %v1023_v62, 16  ;;  %v1102_v37 = vshll.u32 %v1024_v30, 16 }
  0x9f   : > { %4964 = vmatpush3.bf16.msra.mxu1 %v5428_v63  ;;  %v4468_v55 = vcombine.low %v2306_v42, %v2316_v49  ;;  %v1069_v63 = vshrl.u32 %v1020_v54, 16  ;;  %v1061_v0 = vor.u32 %v1060_v50, %v1056_v45  ;;  %v2610_v2 = vsel %vm5913_vm13, %v4477_v41, %v2609_v53  ;;  %v1027_v53 = vld [vmem:[#allocation2 + $0x28] sm:$0xf] }
  0xa0   : > { %5092 = vmatpush3.bf16.msra.mxu0 %v5429_v5  ;;  %4965 = vmatprep.subr.bf16.mxu1 %v5430_v9  ;;  %v1052_v5 = vrot.slane %v1051_v57, 4  ;;  %v1088_v14 = vshll.u32 %v1022_v61, 16  ;;  %v4501_v17 = vcombine.low %v2610_v2, %v2613_v12  ;;  %v1085_v24 = vor.u32 %v1084_v19, %v1080_v18 }
  0xa1   : > { %5093 = vmatprep.subr.bf16.mxu0 %v5431_v20  ;;  %5076 = vmatmul.mubr.bf16.gmra.mrb[12].mxu0 %v4468_v55  ;;  %v1071_v6 = vrot.slane %v1069_v63, 4  ;;  %v1062_v11 = vrot.slane %v1061_v0, 4  ;;  %v2618_v29 = vrot.slane %v2616_v25, 4  ;;  %v1106_v41 = vshrl.u32 %v1024_v30, 16 }
  0xa2   : > { %v1057_v16 = vsel %vm5821_vm10, %v1052_v5, %v1056_v45  ;;  %v1090_v1 = vrot.slane %v1088_v14, 5  ;;  %5095 = vmatprep.mubr.bf16.mxu0 %v4501_v17  ;;  %v1086_v27 = vrot.slane %v1085_v24, 4  ;;  %v1112_v42 = vshll.u32 %v1025_v31, 16  ;;  %v2569_v17 = vld [vmem:[#allocation2 + $0x34] sm:$0xf] }
  0xa3   : > { %4966 = vmatpush3.bf16.msra.mxu1 %v5430_v9  ;;  %v2562_v9 = vld [vmem:[#allocation2 + $0x18] sm:$0xe]  ;;  %v1067_v21 = vsel %vm5821_vm10, %v1062_v11, %v1066_v52  ;;  %v1075_v22 = vor.u32 %v1074_v13, %v1071_v6  ;;  %v1095_v49 = vrot.slane %v1093_v35, 4  ;;  %v1098_v50 = vrot.slane %v1096_v36, 5  ;;  %v1026_v52 = vld [vmem:[#allocation2 + $0x24] sm:$0xf] }
  0xa4   : > { %5094 = vmatpush3.bf16.msra.mxu0 %v5431_v20  ;;  %4983 = vmatprep.subr.bf16.mxu1 %v5903_v26  ;;  %v2564_v20 = vld [vmem:[#allocation2 + $0x20] sm:$0x1]  ;;  %v4478_v23 = vrot.slane %v2562_v9, 9  ;;  %v4357_v10 = vcombine.low %v1057_v16, %v1067_v21  ;;  %v1091_v39 = vsel %vm5821_vm10, %v1086_v27, %v1090_v1  ;;  %v1104_v54 = vrot.slane %v1102_v37, 5  ;;  %v2568_v13 = vld [vmem:[#allocation2 + $0x30] sm:$0xe] }
  0xa5   : > { %5111 = vmatprep.subr.bf16.mxu0 %v5921_v48  ;;  %v2619_v51 = vrot.slane %v2564_v20, 5  ;;  %v1076_v58 = vrot.slane %v1075_v22, 4  ;;  %v1108_v55 = vrot.slane %v1106_v41, 4  ;;  %v1114_v57 = vrot.slane %v1112_v42, 5  ;;  %v2570_v21 = vld [vmem:[#allocation2 + $0x38] sm:$0x1] }
  0xa6   : > { %4967 = vmatprep.mubr.bf16.mxu1 %v4357_v10  ;;  %v2617_v28 = vsel %vm5913_vm13, %v4478_v23, %v2616_v25  ;;  %v1099_v61 = vor.u32 %v1098_v50, %v1095_v49  ;;  %v2623_v63 = vrot.slane %v2566_v43, 5  ;;  %v2626_v0 = vrot.slane %v2567_v44, 5  ;;  %v5438_v1 = vld [vmem:[%s6302_s1 + $0x98] sm:$0xff]   ;;  %v5441_v37 = vld [vmem:[%s6302_s1 + $0x1a0] sm:$0xff]  }
  0xa7   : > { %v1081_v32 = vsel %vm5821_vm10, %v1076_v58, %v1080_v18  ;;  %v2620_v40 = vsel %vm5913_vm13, %v2618_v29, %v2619_v51  ;;  %v1117_v2 = vshrl.u32 %v1026_v52, 16  ;;  %v1109_v3 = vor.u32 %v1108_v55, %v1104_v54  ;;  %v5439_v51 = vld [vmem:[%s6302_s1 + $0x198] sm:$0xff]   ;;  %v2572_v43 = vld [vmem:[#allocation2 + $0x40] sm:$0xf]  ;;  %v2573_v50 = vld [vmem:[#allocation2 + $0x44] sm:$0x1] }
  0xa8   : > { %v4358_v45 = vcombine.low %v1081_v32, %v1091_v39  ;;  %v4502_v47 = vcombine.low %v2617_v28, %v2620_v40  ;;  %v1120_v4 = vshll.u32 %v1026_v52, 16  ;;  %v1126_v5 = vshll.u32 %v1027_v53, 16  ;;  %v1029_v32 = vld [vmem:[#allocation2 + $0x30] sm:$0xf]  ;;  %v1031_v35 = vld [vmem:[#allocation2 + $0x38] sm:$0x1] }
  0xa9   : > { %v1130_v6 = vshrl.u32 %v1027_v53, 16  ;;  %v1100_v8 = vrot.slane %v1099_v61, 4  ;;  %v2624_v9 = vsel %vm5913_vm13, %v4479_v59, %v2623_v63  ;;  %v2625_v11 = vrot.slane %v2623_v63, 4  ;;  %v2571_v42 = vld [vmem:[#allocation2 + $0x3c] sm:$0xe] }
  0xaa   : > { %4968 = vmatmul.mubr.bf16.vlgmr.msra.gmra.mrb[0].mxu1 %v4358_v45  ;;  %5096 = vmatmul.mubr.bf16.vlgmr.msra.gmra.mrb[0].mxu0 %v4502_v47  ;;  %v1119_v12 = vrot.slane %v1117_v2, 4  ;;  %v1122_v14 = vrot.slane %v1120_v4, 5  ;;  %v1128_v15 = vrot.slane %v1126_v5, 5  ;;  %v1136_v20 = vshll.u32 %v1028_v60, 16  ;;  %v1032_v52 = vld [vmem:[#allocation2 + $0x3c] sm:$0xf] }
  0xab   : > { %4984 = vmatpush3.bf16.msra.mxu1 %v5903_v26  ;;  %5112 = vmatpush3.bf16.msra.mxu0 %v5921_v48  ;;  %v5437_v26 = vld [vmem:[%s6302_s1 + $0x190] sm:$0xff]   ;;  %v1110_v48 = vrot.slane %v1109_v3, 4  ;;  %v1132_v16 = vrot.slane %v1130_v6, 4  ;;  %v1105_v18 = vsel %vm5821_vm10, %v1100_v8, %v1104_v54  ;;  %v2627_v19 = vsel %vm5913_vm13, %v2625_v11, %v2626_v0  ;;  %v1033_v59 = vld [vmem:[#allocation2 + $0x40] sm:$0xf]  ;;  %v5442_v8 = vld [vmem:[%s6302_s1 + $0xa8] sm:$0xff]  }
  0xac   : > { %4985 = vmatprep.subr.bf16.mxu1 %v5434_v33  ;;  %5113 = vmatprep.subr.bf16.mxu0 %v5435_v34  ;;  %v4480_v22 = vrot.slane %v2568_v13, 9  ;;  %v4503_v10 = vcombine.low %v2624_v9, %v2627_v19  ;;  %v1123_v24 = vor.u32 %v1122_v14, %v1119_v12  ;;  %v2630_v25 = vrot.slane %v2569_v17, 5  ;;  %v5440_v60 = vld [vmem:[%s6302_s1 + $0xa0] sm:$0xff]   ;;  %v5443_v9 = vld [vmem:[%s6302_s1 + $0x1a8] sm:$0xff]  }
  0xad   : > { %v1115_v23 = vsel %vm5821_vm10, %v1110_v48, %v1114_v57  ;;  %v1133_v62 = vor.u32 %v1132_v16, %v1128_v15  ;;  %v1138_v27 = vrot.slane %v1136_v20, 5  ;;  %v2633_v28 = vrot.slane %v2570_v21, 5  ;;  %v1034_v3 = vld [vmem:[#allocation2 + $0x44] sm:$0x1]  ;;  %v2574_v48 = vld [vmem:[#allocation2 + $0x48] sm:$0xe] }
  0xae   : > { %v4359_v58 = vcombine.low %v1105_v18, %v1115_v23  ;;  %5099 = vmatprep.mubr.bf16.mxu0 %v4503_v10  ;;  %v1124_v29 = vrot.slane %v1123_v24, 4  ;;  %v2631_v30 = vsel %vm5913_vm13, %v4480_v22, %v2630_v25  ;;  %v2632_v31 = vrot.slane %v2630_v25, 4  ;;  %v2575_v18 = vld [vmem:[#allocation2 + $0x4c] sm:$0xf] }
  0xaf   : > { %4986 = vmatpush3.bf16.msra.mxu1 %v5434_v33  ;;  %5114 = vmatpush3.bf16.msra.mxu0 %v5435_v34  ;;  %v1134_v33 = vrot.slane %v1133_v62, 4  ;;  %v1030_v34 = vld [vmem:[#allocation2 + $0x34] sm:$0xf]  ;;  %v1141_v36 = vshrl.u32 %v1029_v32, 16  ;;  %v1144_v40 = vshll.u32 %v1029_v32, 16  ;;  %v1160_v57 = vshll.u32 %v1031_v35, 16 }
  0xb0   : > { %4987 = vmatprep.subr.bf16.mxu1 %v5436_v7  ;;  %5115 = vmatprep.subr.bf16.mxu0 %v5437_v26  ;;  %v1129_v38 = vsel %vm5821_vm10, %v1124_v29, %v1128_v15  ;;  %v2634_v39 = vsel %vm5913_vm13, %v2632_v31, %v2633_v28  ;;  %v1150_v41 = vshll.u32 %v1030_v34, 16  ;;  %v1154_v49 = vshrl.u32 %v1030_v34, 16  ;;  %v5445_v29 = vld [vmem:[%s6302_s1 + $0x1b0] sm:$0xff]  }
  0xb1   : > { %4971 = vmatprep.mubr.bf16.mxu1 %v4359_v58  ;;  %v1139_v44 = vsel %vm5821_vm10, %v1134_v33, %v1138_v27  ;;  %v4504_v45 = vcombine.low %v2631_v30, %v2634_v39  ;;  %v1143_v47 = vrot.slane %v1141_v36, 4  ;;  %v1146_v54 = vrot.slane %v1144_v40, 5  ;;  %v1035_v36 = vld [vmem:[#allocation2 + $0x48] sm:$0xf]  ;;  %v1036_v39 = vld [vmem:[#allocation2 + $0x4c] sm:$0xf] }
  0xb2   : > { %v4360_v53 = vcombine.low %v1129_v38, %v1139_v44  ;;  %v1152_v55 = vrot.slane %v1150_v41, 5  ;;  %v1156_v61 = vrot.slane %v1154_v49, 4  ;;  %v4481_v63 = vrot.slane %v2571_v42, 9  ;;  %v1037_v40 = vld [vmem:[#allocation2 + $0x50] sm:$0x1]  ;;  %v5447_v49 = vld [vmem:[%s6302_s1 + $0x1b8] sm:$0xff]  }
  0xb3   : > { %4988 = vmatpush3.bf16.msra.mxu1 %v5436_v7  ;;  %5116 = vmatpush3.bf16.msra.mxu0 %v5437_v26  ;;  %v2637_v0 = vrot.slane %v2572_v43, 5  ;;  %v2640_v2 = vrot.slane %v2573_v50, 5  ;;  %v1147_v4 = vor.u32 %v1146_v54, %v1143_v47  ;;  %v1162_v5 = vrot.slane %v1160_v57, 5  ;;  %v2577_v47 = vld [vmem:[#allocation2 + $0x54] sm:$0xe] }
  0xb4   : > { %4989 = vmatprep.subr.bf16.mxu1 %v5438_v1  ;;  %5117 = vmatprep.subr.bf16.mxu0 %v5439_v51  ;;  %v1165_v6 = vshrl.u32 %v1032_v52, 16  ;;  %v1168_v7 = vshll.u32 %v1032_v52, 16  ;;  %v1157_v11 = vor.u32 %v1156_v61, %v1152_v55  ;;  %v1174_v26 = vshll.u32 %v1033_v59, 16  ;;  %v2579_v57 = vld [vmem:[#allocation2 + $0x5c] sm:$0x1] }
  0xb5   : > { %5100 = vmatmul.mubr.bf16.gmra.mrb[4].mxu0 %v4504_v45  ;;  %4972 = vmatmul.mubr.bf16.gmra.mrb[4].mxu1 %v4360_v53  ;;  %v2638_v12 = vsel %vm5913_vm13, %v4481_v63, %v2637_v0  ;;  %v2639_v13 = vrot.slane %v2637_v0, 4  ;;  %v1148_v14 = vrot.slane %v1147_v4, 4  ;;  %v1178_v17 = vshrl.u32 %v1033_v59, 16  ;;  %v1038_v0 = vld [vmem:[#allocation2 + $0x54] sm:$0xf] }
  0xb6   : > { %v1167_v15 = vrot.slane %v1165_v6, 4  ;;  %v1170_v16 = vrot.slane %v1168_v7, 5  ;;  %v1158_v19 = vrot.slane %v1157_v11, 4  ;;  %v1176_v21 = vrot.slane %v1174_v26, 5  ;;  %v1039_v7 = vld [vmem:[#allocation2 + $0x58] sm:$0xf] }
  0xb7   : > { %5118 = vmatpush3.bf16.msra.mxu0 %v5439_v51  ;;  %4990 = vmatpush3.bf16.msra.mxu1 %v5438_v1  ;;  %v2641_v20 = vsel %vm5913_vm13, %v2639_v13, %v2640_v2  ;;  %v1184_v22 = vshll.u32 %v1034_v3, 16  ;;  %v2576_v1 = vld [vmem:[#allocation2 + $0x50] sm:$0x1]  ;;  %v1153_v23 = vsel %vm5821_vm10, %v1148_v14, %v1152_v55  ;;  %v1180_v25 = vrot.slane %v1178_v17, 4  ;;  %v2578_v55 = vld [vmem:[#allocation2 + $0x58] sm:$0xf] }
  0xb8   : > { %5119 = vmatprep.subr.bf16.mxu0 %v5441_v37  ;;  %4991 = vmatprep.subr.bf16.mxu1 %v5440_v60  ;;  %v4505_v10 = vcombine.low %v2638_v12, %v2641_v20  ;;  %v1171_v24 = vor.u32 %v1170_v16, %v1167_v15  ;;  %v5444_v51 = vld [vmem:[%s6302_s1 + $0xb0] sm:$0xff]   ;;  %v1163_v58 = vsel %vm5821_vm10, %v1158_v19, %v1162_v5  ;;  %v4482_v27 = vrot.slane %v2574_v48, 9  ;;  %v5446_v2 = vld [vmem:[%s6302_s1 + $0xb8] sm:$0xff]   ;;  %v6023_v16 = vld [vmem:[%s6302_s1 + $0xc0] sm:$0xff]  }
  0xb9   : > { %v1186_v62 = vrot.slane %v1184_v22, 5  ;;  %v2644_v28 = vrot.slane %v2575_v18, 5  ;;  %v4361_v30 = vcombine.low %v1153_v23, %v1163_v58  ;;  %v1181_v32 = vor.u32 %v1180_v25, %v1176_v21  ;;  %v1040_v11 = vld [vmem:[#allocation2 + $0x5c] sm:$0x1]  ;;  %v6030_v25 = vld [vmem:[%s6302_s1 + $0x1c0] sm:$0xff]  }
  0xba   : > { %5103 = vmatprep.mubr.bf16.mxu0 %v4505_v10  ;;  %v1172_v31 = vrot.slane %v1171_v24, 4  ;;  %v2647_v33 = vrot.slane %v2576_v1, 5  ;;  %v1189_v41 = vshrl.u32 %v1035_v36, 16  ;;  %v1192_v43 = vshll.u32 %v1035_v36, 16  ;;  %v2581_v24 = vld [vmem:[#allocation2 + $0x64] sm:$0xf] }
  0xbb   : > { %5120 = vmatpush3.bf16.msra.mxu0 %v5441_v37  ;;  %4992 = vmatpush3.bf16.msra.mxu1 %v5440_v60  ;;  %v2645_v34 = vsel %vm5913_vm13, %v4482_v27, %v2644_v28  ;;  %v2646_v35 = vrot.slane %v2644_v28, 4  ;;  %v1182_v38 = vrot.slane %v1181_v32, 4  ;;  %v1198_v44 = vshll.u32 %v1036_v39, 16  ;;  %v2582_v28 = vld [vmem:[#allocation2 + $0x68] sm:$0x1] }
  0xbc   : > { %5121 = vmatprep.subr.bf16.mxu0 %v5443_v9  ;;  %4993 = vmatprep.subr.bf16.mxu1 %v5442_v8  ;;  %v1177_v37 = vsel %vm5821_vm10, %v1172_v31, %v1176_v21  ;;  %v1202_v45 = vshrl.u32 %v1036_v39, 16  ;;  %v1191_v53 = vrot.slane %v1189_v41, 4  ;;  %v1208_v54 = vshll.u32 %v1037_v40, 16  ;;  %v2580_v21 = vld [vmem:[#allocation2 + $0x60] sm:$0xe] }
  0xbd   : > { %4975 = vmatprep.mubr.bf16.mxu1 %v4361_v30  ;;  %v2648_v42 = vsel %vm5913_vm13, %v2646_v35, %v2647_v33  ;;  %v1187_v50 = vsel %vm5821_vm10, %v1182_v38, %v1186_v62  ;;  %v1194_v60 = vrot.slane %v1192_v43, 5  ;;  %v1200_v61 = vrot.slane %v1198_v44, 5  ;;  %v1479_v41 = vld [vmem:[#allocation2 + $0x4] sm:$0xf]  ;;  %v5448_v44 = vld [vmem:[#allocation2 + $0x18] sm:$0xff]  }
  0xbe   : > { %v4506_v52 = vcombine.low %v2645_v34, %v2648_v42  ;;  %v4362_v59 = vcombine.low %v1177_v37, %v1187_v50  ;;  %v1204_v63 = vrot.slane %v1202_v45, 4  ;;  %v1210_v3 = vrot.slane %v1208_v54, 5  ;;  %v1478_v37 = vld [vmem:[#allocation2] sm:$0xe]  ;;  %v1480_v42 = vld [vmem:[#allocation2 + $0x8] sm:$0x1] }
  0xbf   : > { %5122 = vmatpush3.bf16.msra.mxu0 %v5443_v9  ;;  %4994 = vmatpush3.bf16.msra.mxu1 %v5442_v8  ;;  %v4483_v4 = vrot.slane %v2577_v47, 9  ;;  %v2651_v5 = vrot.slane %v2578_v55, 5  ;;  %v2654_v6 = vrot.slane %v2579_v57, 5  ;;  %v1195_v8 = vor.u32 %v1194_v60, %v1191_v53  ;;  %v1481_v53 = vld [vmem:[#allocation2 + $0xc] sm:$0xe] }
  0xc0   : > { %5123 = vmatprep.subr.bf16.mxu0 %v5445_v29  ;;  %4995 = vmatprep.subr.bf16.mxu1 %v5444_v51  ;;  %v1205_v9 = vor.u32 %v1204_v63, %v1200_v61  ;;  %v1213_v12 = vshrl.u32 %v1038_v0, 16  ;;  %v1216_v13 = vshll.u32 %v1038_v0, 16  ;;  %v1222_v14 = vshll.u32 %v1039_v7, 16  ;;  %v1482_v54 = vld [vmem:[#allocation2 + $0x10] sm:$0xf] }
  0xc1   : > { %5104 = vmatmul.mubr.bf16.gmra.mrb[8].mxu0 %v4506_v52  ;;  %4976 = vmatmul.mubr.bf16.gmra.mrb[8].mxu1 %v4362_v59  ;;  %v2652_v26 = vsel %vm5913_vm13, %v4483_v4, %v2651_v5  ;;  %v2653_v48 = vrot.slane %v2651_v5, 4  ;;  %v1226_v15 = vshrl.u32 %v1039_v7, 16  ;;  %v1196_v17 = vrot.slane %v1195_v8, 4  ;;  %v1483_v55 = vld [vmem:[#allocation2 + $0x14] sm:$0x1] }
  0xc2   : > { %v1206_v18 = vrot.slane %v1205_v9, 4  ;;  %v1215_v19 = vrot.slane %v1213_v12, 4  ;;  %v1218_v20 = vrot.slane %v1216_v13, 5  ;;  %v1224_v1 = vrot.slane %v1222_v14, 5  ;;  %v1484_v7 = vld [vmem:[#allocation2 + $0x18] sm:$0xe] }
  0xc3   : > { %5124 = vmatpush3.bf16.msra.mxu0 %v5445_v29  ;;  %4996 = vmatpush3.bf16.msra.mxu1 %v5444_v51  ;;  %v2655_v22 = vsel %vm5913_vm13, %v2653_v48, %v2654_v6  ;;  %v1228_v23 = vrot.slane %v1226_v15, 4  ;;  %v1232_v10 = vshll.u32 %v1040_v11, 16  ;;  %v1201_v51 = vsel %vm5821_vm10, %v1196_v17, %v1200_v61  ;;  %v5450_v6 = vld [vmem:[#allocation2 + $0x24] sm:$0xff]   ;;  %v1485_v8 = vld [vmem:[#allocation2 + $0x1c] sm:$0xf] }
  0xc4   : > { %5125 = vmatprep.subr.bf16.mxu0 %v5447_v49  ;;  %4997 = vmatprep.subr.bf16.mxu1 %v5446_v2  ;;  %v1211_v58 = vsel %vm5821_vm10, %v1206_v18, %v1210_v3  ;;  %v4507_v62 = vcombine.low %v2652_v26, %v2655_v22  ;;  %v1219_v27 = vor.u32 %v1218_v20, %v1215_v19  ;;  %v4484_v32 = vrot.slane %v2580_v21, 9  ;;  %v5452_v11 = vld [vmem:[%s6302_s1 + $0xc8] sm:$0xff]   ;;  %v1486_v12 = vld [vmem:[#allocation2 + $0x20] sm:$0x1]  ;;  %v1487_v17 = vld [vmem:[#allocation2 + $0x24] sm:$0xe] }
  0xc5   : > { %v4363_v29 = vcombine.low %v1201_v51, %v1211_v58  ;;  %v1229_v30 = vor.u32 %v1228_v23, %v1224_v1  ;;  %v1234_v31 = vrot.slane %v1232_v10, 5  ;;  %v2658_v34 = vrot.slane %v2581_v24, 5  ;;  %v5453_v14 = vld [vmem:[%s6302_s1 + $0x1c8] sm:$0xff]   ;;  %v5454_v24 = vld [vmem:[#allocation2 + $0x30] sm:$0xff]  }
  0xc6   : > { %5107 = vmatprep.mubr.bf16.mxu0 %v4507_v62  ;;  %v1220_v33 = vrot.slane %v1219_v27, 4  ;;  %v2661_v35 = vrot.slane %v2582_v28, 5  ;;  %v4373_v43 = vrot.slane %v1478_v37, 9  ;;  %v1531_v47 = vrot.slane %v1479_v41, 5  ;;  %v1488_v20 = vld [vmem:[#allocation2 + $0x28] sm:$0xf] }
  0xc7   : > { %5126 = vmatpush3.bf16.msra.mxu0 %v5447_v49  ;;  %4998 = vmatpush3.bf16.msra.mxu1 %v5446_v2  ;;  %v1230_v36 = vrot.slane %v1229_v30, 4  ;;  %v2659_v39 = vsel %vm5913_vm13, %v4484_v32, %v2658_v34  ;;  %v2660_v40 = vrot.slane %v2658_v34, 4  ;;  %v1534_v49 = vrot.slane %v1480_v42, 5  ;;  %v1489_v21 = vld [vmem:[#allocation2 + $0x2c] sm:$0x1]  ;;  %v5455_v27 = vld [vmem:[%s6302_s1 + $0xd0] sm:$0xff]  }
  0xc8   : > { %5143 = vmatprep.subr.bf16.mxu0 %v6030_v25  ;;  %5015 = vmatprep.subr.bf16.mxu1 %v6023_v16  ;;  %v1225_v38 = vsel %vm5821_vm10, %v1220_v33, %v1224_v1  ;;  %v1532_v59 = vsel %vm5913_vm13, %v4373_v43, %v1531_v47  ;;  %v1533_v60 = vrot.slane %v1531_v47, 4  ;;  %v4374_v61 = vrot.slane %v1481_v53, 9  ;;  %v1491_v32 = vld [vmem:[#allocation2 + $0x34] sm:$0xf]  ;;  %v1492_v33 = vld [vmem:[#allocation2 + $0x38] sm:$0x1] }
  0xc9   : > { %4979 = vmatprep.mubr.bf16.mxu1 %v4363_v29  ;;  %v1235_v45 = vsel %vm5821_vm10, %v1230_v36, %v1234_v31  ;;  %v2662_v52 = vsel %vm5913_vm13, %v2660_v40, %v2661_v35  ;;  %v1538_v63 = vrot.slane %v1482_v54, 5  ;;  %v1541_v0 = vrot.slane %v1483_v55, 5  ;;  %v5456_v29 = vld [vmem:[#allocation2 + $0x3c] sm:$0xff]   ;;  %v1490_v31 = vld [vmem:[#allocation2 + $0x30] sm:$0xe]  ;;  %v5460_v42 = vld [vmem:[#allocation2 + $0x48] sm:$0xff]  }
  0xca   : > { %v4364_v50 = vcombine.low %v1225_v38, %v1235_v45  ;;  %v4508_v57 = vcombine.low %v2659_v39, %v2662_v52  ;;  %v1535_v2 = vsel %vm5913_vm13, %v1533_v60, %v1534_v49  ;;  %v4375_v13 = vrot.slane %v1484_v7, 9  ;;  %v5459_v34 = vld [vmem:[%s6302_s1 + $0x1d8] sm:$0xff]   ;;  %v1494_v39 = vld [vmem:[#allocation2 + $0x40] sm:$0xf]  ;;  %v1495_v43 = vld [vmem:[#allocation2 + $0x44] sm:$0x1] }
  0xcb   : > { %v4397_v3 = vcombine.low %v1532_v59, %v1535_v2  ;;  %v1539_v4 = vsel %vm5913_vm13, %v4374_v61, %v1538_v63  ;;  %v1540_v5 = vrot.slane %v1538_v63, 4  ;;  %v1545_v26 = vrot.slane %v1485_v8, 5  ;;  %v1493_v38 = vld [vmem:[#allocation2 + $0x3c] sm:$0xe]  ;;  %v5461_v53 = vld [vmem:[%s6302_s1 + $0xe0] sm:$0xff]   ;;  %v5464_v61 = vld [vmem:[%s6302_s1 + $0xe8] sm:$0xff]  }
  0xcc   : > { %4980 = vmatmul.mubr.bf16.gmra.mrb[12].mxu1 %v4364_v50  ;;  %5108 = vmatmul.mubr.bf16.gmra.mrb[12].mxu0 %v4508_v57  ;;  %v1548_v15 = vrot.slane %v1486_v12, 5  ;;  %v4376_v22 = vrot.slane %v1487_v17, 9  ;;  %v1552_v1 = vrot.slane %v1488_v20, 5  ;;  %v1555_v23 = vrot.slane %v1489_v21, 5  ;;  %v5462_v57 = vld [vmem:[#allocation2 + $0x54] sm:$0xff]   ;;  %v5463_v59 = vld [vmem:[%s6302_s1 + $0x1e0] sm:$0xff]  }
  0xcd   : > { %5127 = vmatprep.mubr.bf16.mxu0 %v5448_v44  ;;  %4999 = vmatprep.mubr.bf16.mxu1 %v4397_v3  ;;  %v1542_v9 = vsel %vm5913_vm13, %v1540_v5, %v1541_v0  ;;  %v1546_v18 = vsel %vm5913_vm13, %v4375_v13, %v1545_v26  ;;  %v1547_v19 = vrot.slane %v1545_v26, 4  ;;  %v4377_v35 = vrot.slane %v1490_v31, 9  ;;  %v1496_v63 = vld [vmem:[#allocation2 + $0x48] sm:$0xe]  ;;  %v1497_v2 = vld [vmem:[#allocation2 + $0x4c] sm:$0xf] }
  0xce   : > { %v4398_v48 = vcombine.low %v1539_v4, %v1542_v9  ;;  %v1553_v58 = vsel %vm5913_vm13, %v4376_v22, %v1552_v1  ;;  %v1554_v62 = vrot.slane %v1552_v1, 4  ;;  %v1559_v36 = vrot.slane %v1491_v32, 5  ;;  %v5465_v0 = vld [vmem:[%s6302_s1 + $0x1e8] sm:$0xff]   ;;  %v1498_v3 = vld [vmem:[#allocation2 + $0x50] sm:$0x1]  ;;  %v5466_v5 = vld [vmem:[#allocation2 + $0x60] sm:$0xff]  }
  0xcf   : > { %v1549_v10 = vsel %vm5913_vm13, %v1547_v19, %v1548_v15  ;;  %v1562_v37 = vrot.slane %v1492_v33, 5  ;;  %v4378_v44 = vrot.slane %v1493_v38, 9  ;;  %v1566_v45 = vrot.slane %v1494_v39, 5  ;;  %v1499_v8 = vld [vmem:[#allocation2 + $0x54] sm:$0xe]  ;;  %v5468_v22 = vld [vmem:[#allocation2 + $0x6c] sm:$0xff]  }
  0xd0   : > { %v4399_v51 = vcombine.low %v1546_v18, %v1549_v10  ;;  %v1556_v28 = vsel %vm5913_vm13, %v1554_v62, %v1555_v23  ;;  %v1560_v40 = vsel %vm5913_vm13, %v4377_v35, %v1559_v36  ;;  %v1561_v41 = vrot.slane %v1559_v36, 4  ;;  %v1500_v9 = vld [vmem:[#allocation2 + $0x58] sm:$0xf]  ;;  %v5467_v15 = vld [vmem:[%s6302_s1 + $0xf0] sm:$0xff]   ;;  %v3181_v62 = vld [vmem:[#allocation2 + $0x1c] sm:$0xf] }
  0xd1   : > { %v4400_v30 = vcombine.low %v1553_v58, %v1556_v28  ;;  %v1569_v47 = vrot.slane %v1495_v43, 5  ;;  %v1567_v50 = vsel %vm5913_vm13, %v4378_v44, %v1566_v45  ;;  %v1568_v52 = vrot.slane %v1566_v45, 4  ;;  %v5469_v20 = vld [vmem:[%s6302_s1 + $0x1f0] sm:$0xff]   ;;  %v5470_v23 = vld [vmem:[%s6302_s1 + $0xf8] sm:$0xff]   ;;  %v3183_v35 = vld [vmem:[#allocation2 + $0x24] sm:$0xf] }
  0xd2   : > { %v1563_v49 = vsel %vm5913_vm13, %v1561_v41, %v1562_v37  ;;  %v4379_v4 = vrot.slane %v1496_v63, 9  ;;  %v1576_v7 = vrot.slane %v1498_v3, 5  ;;  %v4380_v26 = vrot.slane %v1499_v8, 9  ;;  %v3180_v58 = vld [vmem:[#allocation2 + $0x18] sm:$0xf] }
  0xd3   : > { %v4401_v54 = vcombine.low %v1560_v40, %v1563_v49  ;;  %v1570_v55 = vsel %vm5913_vm13, %v1568_v52, %v1569_v47  ;;  %v3205_v28 = vshrl.u32 %v3180_v58, 16  ;;  %v5473_v37 = vld [vmem:[#allocation2 + $0x18] sm:$0xff]   ;;  %v3184_v38 = vld [vmem:[#allocation2 + $0x28] sm:$0xf]  ;;  %v3185_v39 = vld [vmem:[#allocation2 + $0x2c] sm:$0x1] }
  0xd4   : > { %5000 = vmatmul.mubr.bf16.vlgmr.msra.gmra.mrb[0].mxu1 %v4398_v48  ;;  %5128 = vmatmul.mubr.bf16.vlgmr.msra.gmra.mrb[0].mxu0 %v5450_v6  ;;  %v4402_v60 = vcombine.low %v1567_v50, %v1570_v55  ;;  %v1573_v6 = vrot.slane %v1497_v2, 5  ;;  %v1580_v48 = vrot.slane %v1500_v9, 5  ;;  %v3229_v40 = vshrl.u32 %v3183_v35, 16  ;;  %v5474_v50 = vld [vmem:[%s6302_s1 + $0x200] sm:$0xff]   ;;  %v3186_v3 = vld [vmem:[#allocation2 + $0x30] sm:$0xf] }
  0xd5   : > { %5016 = vmatpush3.bf16.msra.mxu1 %v6023_v16  ;;  %5144 = vmatpush3.bf16.msra.mxu0 %v6030_v25  ;;  %v5457_v16 = vld [vmem:[%s6302_s1 + $0x1d0] sm:$0xff]   ;;  %v5458_v25 = vld [vmem:[%s6302_s1 + $0xd8] sm:$0xff]   ;;  %v3207_v31 = vrot.slane %v3205_v28, 4  ;;  %v3232_v43 = vshll.u32 %v3183_v35, 16  ;;  %v3238_v44 = vshll.u32 %v3184_v38, 16  ;;  %v3242_v47 = vshrl.u32 %v3184_v38, 16 }
  0xd6   : > { %5017 = vmatprep.subr.bf16.mxu1 %v5452_v11  ;;  %5145 = vmatprep.subr.bf16.mxu0 %v5453_v14  ;;  %v1574_v12 = vsel %vm5913_vm13, %v4379_v4, %v1573_v6  ;;  %v1575_v13 = vrot.slane %v1573_v6, 4  ;;  %v1581_v18 = vsel %vm5913_vm13, %v4380_v26, %v1580_v48  ;;  %v1582_v19 = vrot.slane %v1580_v48, 4  ;;  %v3187_v4 = vld [vmem:[#allocation2 + $0x34] sm:$0xf] }
  0xd7   : > { %5003 = vmatprep.mubr.bf16.mxu1 %v4399_v51  ;;  %5131 = vmatprep.mubr.bf16.mxu0 %v5454_v24  ;;  %v5471_v24 = vld [vmem:[%s6302_s1 + $0x1f8] sm:$0xff]   ;;  %v5472_v51 = vld [vmem:[#allocation2 + $0xc] sm:$0xff]   ;;  %v3231_v45 = vrot.slane %v3229_v40, 4  ;;  %v3248_v49 = vshll.u32 %v3185_v39, 16  ;;  %v3240_v55 = vrot.slane %v3238_v44, 5  ;;  %v3253_v8 = vshrl.u32 %v3186_v3, 16 }
  0xd8   : > { %v1577_v17 = vsel %vm5913_vm13, %v1575_v13, %v1576_v7  ;;  %v3188_v7 = vld [vmem:[#allocation2 + $0x38] sm:$0x1]  ;;  %v3256_v9 = vshll.u32 %v3186_v3, 16  ;;  %v3266_v13 = vshrl.u32 %v3187_v4, 16  ;;  %v5480_v40 = vld [vmem:[#allocation2 + $0x3c] sm:$0xff]  }
  0xd9   : > { %5018 = vmatpush3.bf16.msra.mxu1 %v5452_v11  ;;  %5146 = vmatpush3.bf16.msra.mxu0 %v5453_v14  ;;  %v1501_v11 = vld [vmem:[#allocation2 + $0x5c] sm:$0x1]  ;;  %v4403_v21 = vcombine.low %v1574_v12, %v1577_v17  ;;  %v3262_v12 = vshll.u32 %v3187_v4, 16  ;;  %v3272_v26 = vshll.u32 %v3188_v7, 16  ;;  %v5477_v17 = vld [vmem:[#allocation2 + $0x30] sm:$0xff]  }
  0xda   : > { %5019 = vmatprep.subr.bf16.mxu1 %v5455_v27  ;;  %5147 = vmatprep.subr.bf16.mxu0 %v5457_v16  ;;  %v1583_v14 = vrot.slane %v1501_v11, 5  ;;  %v3193_v44 = vld [vmem:[#allocation2 + $0x4c] sm:$0xf]  ;;  %v3195_v4 = vld [vmem:[#allocation2 + $0x54] sm:$0xf] }
  0xdc   : > { %5004 = vmatmul.mubr.bf16.gmra.mrb[4].mxu1 %v4400_v30  ;;  %5132 = vmatmul.mubr.bf16.gmra.mrb[4].mxu0 %v5456_v29  ;;  %v1584_v1 = vsel %vm5913_vm13, %v1582_v19, %v1583_v14  ;;  %v3208_v29 = vshll.u32 %v3180_v58, 16  ;;  %v3218_v30 = vshrl.u32 %v3181_v62, 16  ;;  %v3255_v14 = vrot.slane %v3253_v8, 4 }
  0xdd   : > { %5020 = vmatpush3.bf16.msra.mxu1 %v5455_v27  ;;  %5148 = vmatpush3.bf16.msra.mxu0 %v5457_v16  ;;  %v4404_v10 = vcombine.low %v1581_v18, %v1584_v1  ;;  %v3182_v27 = vld [vmem:[#allocation2 + $0x20] sm:$0x1]  ;;  %v3214_v16 = vshll.u32 %v3181_v62, 16  ;;  %v3189_v18 = vld [vmem:[#allocation2 + $0x3c] sm:$0xf] }
  0xde   : > { %5021 = vmatprep.subr.bf16.mxu1 %v5458_v25  ;;  %5149 = vmatprep.subr.bf16.mxu0 %v5459_v34  ;;  %v3210_v32 = vrot.slane %v3208_v29, 5  ;;  %v3190_v1 = vld [vmem:[#allocation2 + $0x40] sm:$0xf]  ;;  %v3277_v58 = vshrl.u32 %v3189_v18, 16  ;;  %v3280_v62 = vshll.u32 %v3189_v18, 16 }
  0xdf   : > { %5135 = vmatprep.mubr.bf16.mxu0 %v5460_v42  ;;  %5007 = vmatprep.mubr.bf16.mxu1 %v4401_v54  ;;  %v3216_v33 = vrot.slane %v3214_v16, 5  ;;  %v3234_v54 = vrot.slane %v3232_v43, 5  ;;  %v3286_v29 = vshll.u32 %v3190_v1, 16  ;;  %v3290_v16 = vshrl.u32 %v3190_v1, 16  ;;  %v5484_v1 = vld [vmem:[#allocation2 + $0x54] sm:$0xff]  }
  0xe0   : > { %v3211_v41 = vor.u32 %v3210_v32, %v3207_v31  ;;  %v3282_v31 = vrot.slane %v3280_v62, 5 }
  0xe1   : > { %5022 = vmatpush3.bf16.msra.mxu1 %v5458_v25  ;;  %5150 = vmatpush3.bf16.msra.mxu0 %v5459_v34  ;;  %v3224_v25 = vshll.u32 %v3182_v27, 16  ;;  %v3220_v34 = vrot.slane %v3218_v30, 4  ;;  %v3235_v2 = vor.u32 %v3234_v54, %v3231_v45  ;;  %v3292_v35 = vrot.slane %v3290_v16, 4  ;;  %v3194_v45 = vld [vmem:[#allocation2 + $0x50] sm:$0x1] }
  0xe2   : > { %5023 = vmatprep.subr.bf16.mxu1 %v5461_v53  ;;  %5151 = vmatprep.subr.bf16.mxu0 %v5463_v59  ;;  %v3212_v52 = vrot.slane %v3211_v41, 4  ;;  %v3192_v41 = vld [vmem:[#allocation2 + $0x48] sm:$0xf]  ;;  %v3314_v54 = vshrl.u32 %v3193_v44, 16 }
  0xe3   : > { %v3226_v36 = vrot.slane %v3224_v25, 5  ;;  %v3221_v42 = vor.u32 %v3220_v34, %v3216_v33  ;;  %v3236_v11 = vrot.slane %v3235_v2, 4  ;;  %v3279_v25 = vrot.slane %v3277_v58, 4 }
  0xe4   : > { %5008 = vmatmul.mubr.bf16.gmra.mrb[8].mxu1 %v4402_v60  ;;  %5136 = vmatmul.mubr.bf16.gmra.mrb[8].mxu0 %v5462_v57  ;;  %v3244_v57 = vrot.slane %v3242_v47, 4  ;;  %v6128_v60 = vld [vmem:[%s6302_s1 + $0x208] sm:$0xff]   ;;  %v3217_v63 = vsel %vm5821_vm10, %v3212_v52, %v3216_v33  ;;  %v3288_v34 = vrot.slane %v3286_v29, 5  ;;  %v3301_v47 = vshrl.u32 %v3192_v41, 16 }
  0xe5   : > { %5024 = vmatpush3.bf16.msra.mxu1 %v5461_v53  ;;  %5152 = vmatpush3.bf16.msra.mxu0 %v5463_v59  ;;  %v3222_v53 = vrot.slane %v3221_v42, 4  ;;  %v3250_v59 = vrot.slane %v3248_v49, 5  ;;  %v3241_v19 = vsel %vm5821_vm10, %v3236_v11, %v3240_v55  ;;  %v3283_v38 = vor.u32 %v3282_v31, %v3279_v25  ;;  %v3200_v29 = vld [vmem:[#allocation2 + $0x68] sm:$0x1] }
  0xe6   : > { %5025 = vmatprep.subr.bf16.mxu1 %v5464_v61  ;;  %5153 = vmatprep.subr.bf16.mxu0 %v5465_v0  ;;  %v3245_v6 = vor.u32 %v3244_v57, %v3240_v55  ;;  %v3293_v43 = vor.u32 %v3292_v35, %v3288_v34  ;;  %v3304_v49 = vshll.u32 %v3192_v41, 16  ;;  %v5481_v55 = vld [vmem:[#allocation2 + $0x48] sm:$0xff]   ;;  %v3316_v3 = vrot.slane %v3314_v54, 4  ;;  %v5485_v35 = vld [vmem:[#allocation2 + $0x60] sm:$0xff]  }
  0xe7   : > { %5139 = vmatprep.mubr.bf16.mxu0 %v5466_v5  ;;  %5011 = vmatprep.mubr.bf16.mxu1 %v4403_v21  ;;  %v3268_v21 = vrot.slane %v3266_v13, 4  ;;  %v3284_v52 = vrot.slane %v3283_v38, 4  ;;  %v3325_v11 = vshrl.u32 %v3195_v4, 16  ;;  %v3328_v13 = vshll.u32 %v3195_v4, 16  ;;  %v3201_v41 = vld [vmem:[#allocation2 + $0x6c] sm:$0xf] }
  0xe8   : > { %v3246_v48 = vrot.slane %v3245_v6, 4  ;;  %v3294_v57 = vrot.slane %v3293_v43, 4  ;;  %v3376_v54 = vshll.u32 %v3201_v41, 16 }
  0xe9   : > { %5026 = vmatpush3.bf16.msra.mxu1 %v5464_v61  ;;  %5154 = vmatpush3.bf16.msra.mxu0 %v5465_v0  ;;  %v5476_v61 = vld [vmem:[#allocation2 + $0x24] sm:$0xff]   ;;  %v3227_v0 = vsel %vm5821_vm10, %v3222_v53, %v3226_v36  ;;  %v6149_v36 = vld [vmem:[%s6302_s1 + $0x218] sm:$0xff]   ;;  %v3310_v53 = vshll.u32 %v3193_v44, 16 }
  0xea   : > { %5027 = vmatprep.subr.bf16.mxu1 %v5467_v15  ;;  %5155 = vmatprep.subr.bf16.mxu0 %v5469_v20  ;;  %v4565_v5 = vcombine.low %v3217_v63, %v3227_v0  ;;  %v3320_v63 = vshll.u32 %v3194_v45, 16  ;;  %v3289_v0 = vsel %vm5821_vm10, %v3284_v52, %v3288_v34  ;;  %v3368_v34 = vshll.u32 %v3200_v29, 16  ;;  %v3203_v52 = vld [vmem:[#allocation2 + $0x74] sm:$0x1] }
  0xeb   : > { %v3312_v2 = vrot.slane %v3310_v53, 5  ;;  %v3373_v53 = vshrl.u32 %v3201_v41, 16  ;;  %v3655_v41 = vld [vmem:[#allocation2 + $0x5c] sm:$0x1] }
  0xec   : > { %5012 = vmatmul.mubr.bf16.gmra.mrb[12].mxu1 %v4404_v10  ;;  %5140 = vmatmul.mubr.bf16.gmra.mrb[12].mxu0 %v5468_v22  ;;  %v3274_v22 = vrot.slane %v3272_v26, 5  ;;  %v3251_v10 = vsel %vm5821_vm10, %v3246_v48, %v3250_v59  ;;  %v3303_v59 = vrot.slane %v3301_v47, 4  ;;  %v3322_v8 = vrot.slane %v3320_v63, 5  ;;  %v5482_v48 = vld [vmem:[%s6302_s1 + $0x220] sm:$0xff]   ;;  %v3202_v47 = vld [vmem:[#allocation2 + $0x70] sm:$0xf] }
  0xed   : > { %5028 = vmatpush3.bf16.msra.mxu1 %v5467_v15  ;;  %5156 = vmatpush3.bf16.msra.mxu0 %v5469_v20  ;;  %v3258_v15 = vrot.slane %v3256_v9, 5  ;;  %v3264_v20 = vrot.slane %v3262_v12, 5  ;;  %v4566_v27 = vcombine.low %v3241_v19, %v3251_v10  ;;  %v3197_v9 = vld [vmem:[#allocation2 + $0x5c] sm:$0x1]  ;;  %v3317_v12 = vor.u32 %v3316_v3, %v3312_v2 }
  0xee   : > { %5029 = vmatprep.subr.bf16.mxu1 %v5470_v23  ;;  %5157 = vmatprep.subr.bf16.mxu0 %v5471_v24  ;;  %v3344_v19 = vshll.u32 %v3197_v9, 16  ;;  %v3370_v45 = vrot.slane %v3368_v34, 5  ;;  %v3392_v3 = vshll.u32 %v3203_v52, 16  ;;  %v3653_v34 = vld [vmem:[#allocation2 + $0x54] sm:$0xe]  ;;  %v3726_v52 = vrot.slane %v3655_v41, 5 }
  0xef   : > { %5031 = vmatprep.mubr.bf16.mxu1 %v5472_v51  ;;  %5159 = vmatprep.mubr.bf16.mxu0 %v4565_v5  ;;  %v3191_v51 = vld [vmem:[#allocation2 + $0x44] sm:$0x1]  ;;  %v3269_v28 = vor.u32 %v3268_v21, %v3264_v20  ;;  %v3196_v5 = vld [vmem:[#allocation2 + $0x58] sm:$0xf]  ;;  %v3330_v21 = vrot.slane %v3328_v13, 5 }
  0xf0   : > { %v3296_v32 = vshll.u32 %v3191_v51, 16  ;;  %v3334_v26 = vshll.u32 %v3196_v5, 16  ;;  %v3338_v18 = vshrl.u32 %v3196_v5, 16  ;;  %v3346_v51 = vrot.slane %v3344_v19, 5  ;;  %v3651_v19 = vld [vmem:[#allocation2 + $0x4c] sm:$0xf] }
  0xf1   : > { %5030 = vmatpush3.bf16.msra.mxu1 %v5470_v23  ;;  %5158 = vmatpush3.bf16.msra.mxu0 %v5471_v24  ;;  %v6140_v23 = vld [vmem:[%s6302_s1 + $0x210] sm:$0xff]   ;;  %v3259_v24 = vor.u32 %v3258_v15, %v3255_v14  ;;  %v3270_v33 = vrot.slane %v3269_v28, 4  ;;  %v6171_v14 = vld [vmem:[%s6302_s1 + $0x228] sm:$0xff]   ;;  %v3199_v28 = vld [vmem:[#allocation2 + $0x64] sm:$0xf] }
  0xf2   : > { %5207 = vmatprep.subr.bf16.mxu1 %v5474_v50  ;;  %5175 = vmatprep.subr.bf16.mxu0 %v5474_v50  ;;  %v3298_v39 = vrot.slane %v3296_v32, 5  ;;  %v3358_v32 = vshll.u32 %v3199_v28, 16 }
  0xf3   : > { %v3260_v30 = vrot.slane %v3259_v24, 4  ;;  %v3275_v42 = vsel %vm5821_vm10, %v3270_v33, %v3274_v22  ;;  %v3336_v22 = vrot.slane %v3334_v26, 5  ;;  %v3340_v24 = vrot.slane %v3338_v18, 4  ;;  %v3650_v18 = vld [vmem:[#allocation2 + $0x48] sm:$0xe] }
  0xf4   : > { %5032 = vmatmul.mubr.bf16.vlgmr.msra.gmra.mrb[0].mxu1 %v5473_v37  ;;  %5160 = vmatmul.mubr.bf16.vlgmr.msra.gmra.mrb[0].mxu0 %v4566_v27  ;;  %v3299_v6 = vsel %vm5821_vm10, %v3294_v57, %v3298_v39  ;;  %v3198_v27 = vld [vmem:[#allocation2 + $0x60] sm:$0xf]  ;;  %v3362_v33 = vshrl.u32 %v3199_v28, 16  ;;  %v3360_v43 = vrot.slane %v3358_v32, 5 }
  0xf5   : > { %5215 = vmatpush3.bf16.msra.mxu1 %v5474_v50  ;;  %5035 = vmatprep.mubr.bf16.mxu1 %v5476_v61  ;;  %v3265_v37 = vsel %vm5821_vm10, %v3260_v30, %v3264_v20  ;;  %v3306_v61 = vrot.slane %v3304_v49, 5  ;;  %v3318_v20 = vrot.slane %v3317_v12, 4  ;;  %v3341_v30 = vor.u32 %v3340_v24, %v3336_v22  ;;  %v6192_v49 = vld [vmem:[%s6302_s1 + $0x238] sm:$0xff]   ;;  %v3640_v12 = vld [vmem:[#allocation2 + $0x20] sm:$0x1] }
  0xf6   : > { %5208 = vmatprep.subr.bf16.mxu1 %v6128_v60  ;;  %5176 = vmatpush3.bf16.msra.mxu0 %v5474_v50  ;;  %v4567_v50 = vcombine.low %v3265_v37, %v3275_v42  ;;  %v3352_v25 = vshll.u32 %v3198_v27, 16  ;;  %v6183_v37 = vld [vmem:[%s6302_s1 + $0x230] sm:$0xff]   ;;  %v3364_v44 = vrot.slane %v3362_v33, 4 }
  0xf7   : > { %5177 = vmatprep.subr.bf16.mxu0 %v6128_v60  ;;  %v3307_v7 = vor.u32 %v3306_v61, %v3303_v59  ;;  %v3323_v58 = vsel %vm5821_vm10, %v3318_v20, %v3322_v8  ;;  %v3342_v38 = vrot.slane %v3341_v30, 4  ;;  %v3382_v59 = vshll.u32 %v3202_v47, 16  ;;  %v3643_v30 = vld [vmem:[#allocation2 + $0x2c] sm:$0x1] }
  0xf8   : > { %5163 = vmatprep.mubr.bf16.mxu0 %v4567_v50  ;;  %v3365_v57 = vor.u32 %v3364_v44, %v3360_v43  ;;  %v3386_v61 = vshrl.u32 %v3202_v47, 16  ;;  %v3698_v33 = vrot.slane %v3643_v30, 5 }
  0xf9   : > { %5216 = vmatpush3.bf16.msra.mxu1 %v6128_v60  ;;  %v3308_v15 = vrot.slane %v3307_v7, 4  ;;  %v3384_v5 = vrot.slane %v3382_v59, 5  ;;  %v3638_v7 = vld [vmem:[#allocation2 + $0x18] sm:$0xe] }
  0xfa   : > { %5209 = vmatprep.subr.bf16.mxu1 %v6140_v23  ;;  %5178 = vmatpush3.bf16.msra.mxu0 %v6128_v60  ;;  %v4568_v60 = vcombine.low %v3289_v0, %v3299_v6  ;;  %v3375_v0 = vrot.slane %v3373_v53, 4  ;;  %v3366_v4 = vrot.slane %v3365_v57, 4  ;;  %v3388_v6 = vrot.slane %v3386_v61, 4 }
  0xfb   : > { %5179 = vmatprep.subr.bf16.mxu0 %v6140_v23  ;;  %v3313_v10 = vsel %vm5821_vm10, %v3308_v15, %v3312_v2  ;;  %v3378_v2 = vrot.slane %v3376_v54, 5  ;;  %v4581_v13 = vrot.slane %v3638_v7, 9  ;;  %v3648_v7 = vld [vmem:[#allocation2 + $0x40] sm:$0xf] }
  0xfc   : > { %5036 = vmatmul.mubr.bf16.gmra.mrb[4].mxu1 %v5477_v17  ;;  %v3327_v17 = vrot.slane %v3325_v11, 4  ;;  %5164 = vmatmul.mubr.bf16.gmra.mrb[4].mxu0 %v4568_v60  ;;  %v4569_v16 = vcombine.low %v3313_v10, %v3323_v58  ;;  %v3394_v11 = vrot.slane %v3392_v3, 5  ;;  %v3639_v60 = vld [vmem:[#allocation2 + $0x1c] sm:$0xf]  ;;  %v3371_v26 = vsel %vm5821_vm10, %v3366_v4, %v3370_v45 }
  0xfd   : > { %5217 = vmatpush3.bf16.msra.mxu1 %v6140_v23  ;;  %5039 = vmatprep.mubr.bf16.mxu1 %v5480_v40  ;;  %v3354_v40 = vrot.slane %v3352_v25, 5  ;;  %v3379_v9 = vor.u32 %v3378_v2, %v3375_v0  ;;  %v3688_v15 = vrot.slane %v3639_v60, 5  ;;  %v3716_v10 = vrot.slane %v3651_v19, 5  ;;  %v3658_v0 = vld [vmem:[#allocation2 + $0x68] sm:$0x1] }
  0xfe   : > { %5210 = vmatprep.subr.bf16.mxu1 %v6149_v36  ;;  %5180 = vmatpush3.bf16.msra.mxu0 %v6140_v23  ;;  %v3331_v62 = vor.u32 %v3330_v21, %v3327_v17  ;;  %v3349_v23 = vshrl.u32 %v3198_v27, 16  ;;  %v3691_v17 = vrot.slane %v3640_v12, 5  ;;  %v3641_v27 = vld [vmem:[#allocation2 + $0x24] sm:$0xe]  ;;  %v3649_v60 = vld [vmem:[#allocation2 + $0x44] sm:$0x1] }
  0xff   : > { %5181 = vmatprep.subr.bf16.mxu0 %v6149_v36  ;;  %5167 = vmatprep.mubr.bf16.mxu0 %v4569_v16  ;;  %v3380_v21 = vrot.slane %v3379_v9, 4  ;;  %v3690_v58 = vrot.slane %v3688_v15, 4  ;;  %v3718_v29 = vrot.slane %v3716_v10, 4  ;;  %v3642_v16 = vld [vmem:[#allocation2 + $0x28] sm:$0xf]  ;;  %v3709_v12 = vrot.slane %v3648_v7, 5 }
 0x100   : > { %v3332_v31 = vrot.slane %v3331_v62, 4  ;;  %v3351_v39 = vrot.slane %v3349_v23, 4  ;;  %v4582_v23 = vrot.slane %v3641_v27, 9  ;;  %v3695_v32 = vrot.slane %v3642_v16, 5 }
 0x101   : > { %5218 = vmatpush3.bf16.msra.mxu1 %v6149_v36  ;;  %v3385_v28 = vsel %vm5821_vm10, %v3380_v21, %v3384_v5  ;;  %v3712_v21 = vrot.slane %v3649_v60, 5 }
 0x102   : > { %5211 = vmatprep.subr.bf16.mxu1 %v5482_v48  ;;  %5182 = vmatpush3.bf16.msra.mxu0 %v6149_v36  ;;  %v3337_v42 = vsel %vm5821_vm10, %v3332_v31, %v3336_v22  ;;  %v3347_v36 = vsel %vm5821_vm10, %v3342_v38, %v3346_v51  ;;  %v3355_v50 = vor.u32 %v3354_v40, %v3351_v39  ;;  %v3652_v22 = vld [vmem:[#allocation2 + $0x50] sm:$0x1]  ;;  %v3697_v45 = vrot.slane %v3695_v32, 4 }
 0x103   : > { %5183 = vmatprep.subr.bf16.mxu0 %v5482_v48  ;;  %v3689_v51 = vsel %vm5913_vm13, %v4581_v13, %v3688_v15  ;;  %v3719_v62 = vrot.slane %v3652_v22, 5  ;;  %v3692_v31 = vsel %vm5913_vm13, %v3690_v58, %v3691_v17  ;;  %v3696_v44 = vsel %vm5913_vm13, %v4582_v23, %v3695_v32  ;;  %v3659_v15 = vld [vmem:[#allocation2 + $0x6c] sm:$0xe]  ;;  %v3660_v17 = vld [vmem:[#allocation2 + $0x70] sm:$0xf] }
 0x104   : > { %5040 = vmatmul.mubr.bf16.gmra.mrb[8].mxu1 %v5481_v55  ;;  %v4570_v55 = vcombine.low %v3337_v42, %v3347_v36  ;;  %v3356_v63 = vrot.slane %v3355_v50, 4  ;;  %v4605_v39 = vcombine.low %v3689_v51, %v3692_v31  ;;  %v4586_v42 = vrot.slane %v3653_v34, 9  ;;  %v3645_v36 = vld [vmem:[#allocation2 + $0x34] sm:$0xf]  ;;  %v3646_v50 = vld [vmem:[#allocation2 + $0x38] sm:$0x1] }
 0x105   : > { %5219 = vmatpush3.bf16.msra.mxu1 %v5482_v48  ;;  %5043 = vmatprep.mubr.bf16.mxu1 %v5484_v1  ;;  %v4585_v1 = vrot.slane %v3650_v18, 9  ;;  %v3720_v40 = vsel %vm5913_vm13, %v3718_v29, %v3719_v62  ;;  %v3702_v53 = vrot.slane %v3645_v36, 5  ;;  %v3705_v54 = vrot.slane %v3646_v50, 5  ;;  %v3661_v22 = vld [vmem:[#allocation2 + $0x74] sm:$0x1] }
 0x106   : > { %5212 = vmatprep.subr.bf16.mxu1 %v6171_v14  ;;  %5184 = vmatpush3.bf16.msra.mxu0 %v5482_v48  ;;  %v3361_v8 = vsel %vm5821_vm10, %v3356_v63, %v3360_v43  ;;  %v3389_v48 = vor.u32 %v3388_v6, %v3384_v5  ;;  %v3644_v43 = vld [vmem:[#allocation2 + $0x30] sm:$0xe]  ;;  %v3699_v57 = vsel %vm5913_vm13, %v3697_v45, %v3698_v33  ;;  %v3657_v63 = vld [vmem:[#allocation2 + $0x64] sm:$0xf]  ;;  %v3647_v6 = vld [vmem:[#allocation2 + $0x3c] sm:$0xe] }
 0x107   : > { %5168 = vmatmul.mubr.bf16.gmra.mrb[8].mxu0 %v4570_v55  ;;  %5185 = vmatprep.subr.bf16.mxu0 %v6171_v14  ;;  %v4571_v20 = vcombine.low %v3361_v8, %v3371_v26  ;;  %v3656_v55 = vld [vmem:[#allocation2 + $0x60] sm:$0xe]  ;;  %v3704_v4 = vrot.slane %v3702_v53, 4  ;;  %v3730_v5 = vrot.slane %v3657_v63, 5  ;;  %v4606_v8 = vcombine.low %v3696_v44, %v3699_v57 }
 0x108   : > { %v3390_v24 = vrot.slane %v3389_v48, 4  ;;  %v4587_v2 = vrot.slane %v3656_v55, 9  ;;  %v4584_v19 = vrot.slane %v3647_v6, 9  ;;  %v3740_v51 = vrot.slane %v3661_v22, 5 }
 0x109   : > { %5220 = vmatpush3.bf16.msra.mxu1 %v6171_v14  ;;  %5171 = vmatprep.mubr.bf16.mxu0 %v4571_v20  ;;  %v3706_v26 = vsel %vm5913_vm13, %v3704_v4, %v3705_v54  ;;  %v3732_v48 = vrot.slane %v3730_v5, 4  ;;  %v3711_v20 = vrot.slane %v3709_v12, 4 }
 0x10a   : > { %5213 = vmatprep.subr.bf16.mxu1 %v6183_v37  ;;  %5186 = vmatpush3.bf16.msra.mxu0 %v6171_v14  ;;  %v3717_v14 = vsel %vm5913_vm13, %v4585_v1, %v3716_v10  ;;  %v3395_v25 = vsel %vm5821_vm10, %v3390_v24, %v3394_v11  ;;  %v3733_v11 = vrot.slane %v3658_v0, 5  ;;  %v4588_v10 = vrot.slane %v3659_v15, 9 }
 0x10b   : > { %5187 = vmatprep.subr.bf16.mxu0 %v6183_v37  ;;  %v4572_v38 = vcombine.low %v3385_v28, %v3395_v25  ;;  %v4609_v56 = vcombine.low %v3717_v14, %v3720_v40  ;;  %v3737_v24 = vrot.slane %v3660_v17, 5  ;;  %v3710_v28 = vsel %vm5913_vm13, %v4584_v19, %v3709_v12 }
 0x10c   : > { %5044 = vmatmul.mubr.bf16.gmra.mrb[12].mxu1 %v5485_v35  ;;  %v3654_v35 = vld [vmem:[#allocation2 + $0x58] sm:$0xf]  ;;  %v3734_v1 = vsel %vm5913_vm13, %v3732_v48, %v3733_v11  ;;  %v3713_v14 = vsel %vm5913_vm13, %v3711_v20, %v3712_v21 }
 0x10d   : > { %5221 = vmatpush3.bf16.msra.mxu1 %v6183_v37  ;;  %v3723_v47 = vrot.slane %v3654_v35, 5  ;;  %5199 = vmatprep.mubr.bf16.mxu1 %v4609_v56  ;;  %v3738_v62 = vsel %vm5913_vm13, %v4588_v10, %v3737_v24  ;;  %v3739_v27 = vrot.slane %v3737_v24, 4  ;;  %v4608_v30 = vcombine.low %v3710_v28, %v3713_v14 }
 0x10e   : > { %5214 = vmatprep.subr.bf16.mxu1 %v6192_v49  ;;  %5188 = vmatpush3.bf16.msra.mxu0 %v6183_v37  ;;  %v4583_v37 = vrot.slane %v3644_v43, 9 }
 0x10f   : > { %5189 = vmatprep.subr.bf16.mxu0 %v6192_v49  ;;  %5172 = vmatmul.mubr.bf16.gmra.mrb[12].mxu0 %v4572_v38  ;;  %v3724_v59 = vsel %vm5913_vm13, %v4586_v42, %v3723_v47  ;;  %v3725_v61 = vrot.slane %v3723_v47, 4  ;;  %v3741_v29 = vsel %vm5913_vm13, %v3739_v27, %v3740_v51 }
 0x110   : > { %5191 = vmatprep.mubr.bf16.mxu0 %v4605_v39  ;;  %v3703_v3 = vsel %vm5913_vm13, %v4583_v37, %v3702_v53  ;;  %v4612_v16 = vcombine.low %v3738_v62, %v3741_v29 }
 0x111   : > { %5222 = vmatpush3.bf16.msra.mxu1 %v6192_v49  ;;  %v3727_v9 = vsel %vm5913_vm13, %v3725_v61, %v3726_v52  ;;  %v4607_v18 = vcombine.low %v3703_v3, %v3706_v26 }
 0x112   : > { %5190 = vmatpush3.bf16.msra.mxu0 %v6192_v49  ;;  %v4610_v13 = vcombine.low %v3724_v59, %v3727_v9  ;;  %v3731_v49 = vsel %vm5913_vm13, %v4587_v2, %v3730_v5 }
 0x113   : > { %v4611_v58 = vcombine.low %v3731_v49, %v3734_v1 }
 0x114   : > { %5200 = vmatmul.mubr.bf16.vlgmr.msra.gmra.mrb[16].mxu1 %v4610_v13 }
 0x115   : > { %5203 = vmatprep.mubr.bf16.mxu1 %v4611_v58 }
 0x117   : > { %5192 = vmatmul.mubr.bf16.vlgmr.msra.gmra.mrb[0].mxu0 %v4606_v8 }
 0x118   : > { %5195 = vmatprep.mubr.bf16.mxu0 %v4607_v18 }
 0x11c   : > { %5204 = vmatmul.mubr.bf16.gmra.mrb[20].mxu1 %v4612_v16 }
 0x11f   : > { %5196 = vmatmul.mubr.bf16.gmra.mrb[4].mxu0 %v4608_v30 }
 0x1c7   : > { %v5033_v23 = vpop.f32.mrb[0].mxu1 }
 0x1c8   : > { %v1990_v25 = vpop.f32.mrb[1].mxu1 }
 0x1c9   : > { %v5034_v31 = vpop.f32.mrb[2].mxu1 }
 0x1ca   : > { %v1993_v32 = vpop.f32.mrb[3].mxu1 }
 0x1cf   : > { %v6246_v33 = vpop.f32.mrb[4].mxu1 }
 0x1d0   : > { %v6248_v34 = vpop.f32.mrb[5].mxu1 }
 0x1d1   : > { %v6250_v35 = vpop.f32.mrb[6].mxu1 }
 0x1d2   : > { %v6252_v38 = vpop.f32.mrb[7].mxu1 }
 0x1d7   : > { %v5041_v39 = vpop.f32.mrb[8].mxu1 }
 0x1d8   : > { %v2022_v40 = vpop.f32.mrb[9].mxu1 }
 0x1d9   : > { %v5042_v46 = vpop.f32.mrb[10].mxu1 }
 0x1da   : > { %v2025_v41 = vpop.f32.mrb[11].mxu1  ;;  %v5169_v56 = vpop.f32.mrb[8].mxu0 }
 0x1db   : > { %v5231_v45 = vadd.f32 %v5169_v56, %v5041_v39  ;;  %v3559_v47 = vpop.f32.mrb[9].mxu0 }
 0x1dc   : > { %v5233_v50 = vadd.f32 %v3559_v47, %v2022_v40  ;;  %v5170_v52 = vpop.f32.mrb[10].mxu0 }
 0x1dd   : > { %v5235_v37 = vadd.f32 %v5170_v52, %v5042_v46  ;;  %v3562_v53 = vpop.f32.mrb[11].mxu0 }
 0x1de   : > { %v5237_v54 = vadd.f32 %v3562_v53, %v2025_v41 }
 0x1df   : > { %v5045_v42 = vpop.f32.mrb[12].mxu1 }
 0x1e0   : > { %v2038_v43 = vpop.f32.mrb[13].mxu1 }
 0x1e1   : > { %v5046_v44 = vpop.f32.mrb[14].mxu1 }
 0x1e2   : > { %v2041_v36 = vpop.f32.mrb[15].mxu1  ;;  %v5173_v55 = vpop.f32.mrb[12].mxu0 }
 0x1e3   : > { %v5239_v57 = vadd.f32 %v5173_v55, %v5045_v42  ;;  %v3575_v59 = vpop.f32.mrb[13].mxu0 }
 0x1e4   : > { %v5241_v61 = vadd.f32 %v3575_v59, %v2038_v43  ;;  %v5174_v63 = vpop.f32.mrb[14].mxu0 }
 0x1e5   : > { %v5243_v0 = vadd.f32 %v5174_v63, %v5046_v44  ;;  %v3578_v2 = vpop.f32.mrb[15].mxu0 }
 0x1e6   : > { %v5245_v3 = vadd.f32 %v3578_v2, %v2041_v36 }
 0x1e7   : > { %v5201_v4 = vpop.f32.mrb[16].mxu1 }
 0x1e8   : > { %v6254_v5 = vadd.f32 %v5231_v45, %v5201_v4  ;;  %v3905_v6 = vpop.f32.mrb[17].mxu1 }
 0x1e9   : > { %v6256_v8 = vadd.f32 %v5233_v50, %v3905_v6  ;;  %v5202_v9 = vpop.f32.mrb[18].mxu1 }
 0x1ea   : > { %v5193_v7 = vpop.f32.mrb[0].mxu0  ;;  %v6258_v12 = vadd.f32 %v5235_v37, %v5202_v9  ;;  %v3908_v13 = vpop.f32.mrb[19].mxu1  ;;  %v4111_v9 = vmul.f32 %v6254_v5, %v6254_v5 }
 0x1eb   : > { %v5223_v11 = vadd.f32 %v5193_v7, %v5033_v23  ;;  %v3873_v60 = vpop.f32.mrb[1].mxu0  ;;  %v5238_v48 = vadd.f32 %v5237_v54, %v3908_v13 }
 0x1ec   : > { %v5224_v26 = vadd.f32 %v3873_v60, %v1990_v25  ;;  %v5194_v49 = vpop.f32.mrb[2].mxu0  ;;  %v4748_v17 = vpack.c.bf16 %v6258_v12, %v6254_v5  ;;  %v4112_v13 = vmul.f32 %v6258_v12, %v6258_v12 }
 0x1ed   : > { %v5225_v15 = vadd.f32 %v5194_v49, %v5034_v31  ;;  %v3876_v18 = vpop.f32.mrb[3].mxu0  ;;  %v4743_v20 = vpack.c.bf16 %v5238_v48, %v6256_v8  ;;  %v4103_v27 = vmul.f32 %v5223_v11, %v5223_v11  ;;  %v4110_v4 = vmul.f32 %v5238_v48, %v5238_v48 }
 0x1ee   : > { %v5226_v19 = vadd.f32 %v3876_v18, %v1993_v32  ;;  %4772 = vst [vmem:[%s5637_s6 + $0x28] sm:$0xff] %v4748_v17   ;;  %v4101_v22 = vmul.f32 %v5224_v26, %v5224_v26 }
 0x1ef   : > { %v4728_v21 = vpack.c.bf16 %v5225_v15, %v5223_v11  ;;  %4771 = vst [vmem:[%s5637_s6 + $0x20] sm:$0xff] %v4743_v20   ;;  %v5205_v51 = vpop.f32.mrb[20].mxu1  ;;  %v4104_v39 = vmul.f32 %v5225_v15, %v5225_v15 }
 0x1f0   : > { %v4723_v1 = vpack.c.bf16 %v5226_v19, %v5224_v26  ;;  %v4080_v10 = vadd.f32 %v5226_v19, %v5224_v26  ;;  %v4102_v24 = vmul.f32 %v5226_v19, %v5226_v19  ;;  %v5240_v58 = vadd.f32 %v5239_v57, %v5205_v51  ;;  %v3921_v62 = vpop.f32.mrb[21].mxu1 }
 0x1f1   : > { %4768 = vst [vmem:[%s5637_s6 + $0x8] sm:$0xff] %v4728_v21   ;;  %v5242_v16 = vadd.f32 %v5241_v61, %v3921_v62  ;;  %v5206_v30 = vpop.f32.mrb[22].mxu1 }
 0x1f2   : > { %4724 = vst [vmem:[%s5637_s6] sm:$0xff] %v4723_v1   ;;  %v4081_v28 = vadd.f32 %v5223_v11, %v4080_v10  ;;  %v4117_v14 = vadd.f32 %v4102_v24, %v4101_v22  ;;  %v5197_v29 = vpop.f32.mrb[4].mxu0  ;;  %v5244_v31 = vadd.f32 %v5243_v0, %v5206_v30  ;;  %v3924_v32 = vpop.f32.mrb[23].mxu1  ;;  %v4115_v21 = vmul.f32 %v5240_v58, %v5240_v58 }
 0x1f3   : > { %v5227_v23 = vadd.f32 %v5197_v29, %v6246_v33  ;;  %v3889_v25 = vpop.f32.mrb[5].mxu0  ;;  %v5246_v52 = vadd.f32 %v5245_v3, %v3924_v32 }
 0x1f4   : > { %v4118_v40 = vadd.f32 %v4117_v14, %v4103_v27  ;;  %v5228_v46 = vadd.f32 %v3889_v25, %v6248_v34  ;;  %v4082_v41 = vadd.f32 %v5225_v15, %v4081_v28  ;;  %v5198_v42 = vpop.f32.mrb[6].mxu0  ;;  %v4758_v56 = vpack.c.bf16 %v5244_v31, %v5240_v58 }
 0x1f5   : > { %v5229_v43 = vadd.f32 %v5198_v42, %v6250_v35  ;;  %v3892_v44 = vpop.f32.mrb[7].mxu0  ;;  %v4753_v55 = vpack.c.bf16 %v5246_v52, %v5242_v16  ;;  %v4107_v57 = vmul.f32 %v5227_v23, %v5227_v23  ;;  %v4113_v15 = vmul.f32 %v5242_v16, %v5242_v16 }
 0x1f6   : > { %v4083_v45 = vadd.f32 %v5228_v46, %v4082_v41  ;;  %v4105_v47 = vmul.f32 %v5228_v46, %v5228_v46  ;;  %v4119_v33 = vadd.f32 %v4118_v40, %v4104_v39  ;;  %v5230_v36 = vadd.f32 %v3892_v44, %v6252_v38  ;;  %4774 = vst [vmem:[%s5637_s6 + $0x38] sm:$0xff] %v4758_v56  }
 0x1f7   : > { %v4738_v50 = vpack.c.bf16 %v5229_v43, %v5227_v23  ;;  %4773 = vst [vmem:[%s5637_s6 + $0x30] sm:$0xff] %v4753_v55   ;;  %v4108_v61 = vmul.f32 %v5229_v43, %v5229_v43  ;;  %v4109_v38 = vmul.f32 %v6256_v8, %v6256_v8  ;;  %v4114_v19 = vmul.f32 %v5246_v52, %v5246_v52 }
 0x1f8   : > { %v4120_v37 = vadd.f32 %v4119_v33, %v4105_v47  ;;  %v4733_v53 = vpack.c.bf16 %v5230_v36, %v5228_v46  ;;  %v4084_v34 = vadd.f32 %v5230_v36, %v4083_v45  ;;  %v4106_v54 = vmul.f32 %v5230_v36, %v5230_v36 }
 0x1f9   : > { %4770 = vst [vmem:[%s5637_s6 + $0x18] sm:$0xff] %v4738_v50   ;;  %v4116_v1 = vmul.f32 %v5244_v31, %v5244_v31 }
 0x1fa   : > { %4769 = vst [vmem:[%s5637_s6 + $0x10] sm:$0xff] %v4733_v53   ;;  %v4085_v35 = vadd.f32 %v5227_v23, %v4084_v34  ;;  %v4121_v59 = vadd.f32 %v4120_v37, %v4106_v54 }
 0x1fc   : > { %v4086_v63 = vadd.f32 %v5229_v43, %v4085_v35  ;;  %v4122_v0 = vadd.f32 %v4121_v59, %v4107_v57 }
 0x1fe   : > { %v4087_v2 = vadd.f32 %v6256_v8, %v4086_v63  ;;  %v4123_v3 = vadd.f32 %v4122_v0, %v4108_v61 }
 0x200   : > { %v4124_v6 = vadd.f32 %v4123_v3, %v4109_v38  ;;  %v4088_v7 = vadd.f32 %v5238_v48, %v4087_v2 }
 0x202   : > { %v4089_v11 = vadd.f32 %v6254_v5, %v4088_v7  ;;  %v4125_v60 = vadd.f32 %v4124_v6, %v4110_v4 }
 0x204   : > { %v4090_v26 = vadd.f32 %v6258_v12, %v4089_v11  ;;  %v4126_v49 = vadd.f32 %v4125_v60, %v4111_v9 }
 0x206   : > { %v4091_v17 = vadd.f32 %v5242_v16, %v4090_v26  ;;  %v4127_v18 = vadd.f32 %v4126_v49, %v4112_v13 }
 0x208   : > { %v4092_v8 = vadd.f32 %v5246_v52, %v4091_v17  ;;  %v4128_v20 = vadd.f32 %v4127_v18, %v4113_v15 }
 0x20a   : > { %v4093_v48 = vadd.f32 %v5240_v58, %v4092_v8  ;;  %v4129_v22 = vadd.f32 %v4128_v20, %v4114_v19 }
 0x20c   : > { %v4094_v10 = vadd.f32 %v5244_v31, %v4093_v48  ;;  %v4130_v5 = vadd.f32 %v4129_v22, %v4115_v21 }
 0x20e   : > { %v4095_v24 = vrot.slane %v4094_v10, 4  ;;  %v4131_v51 = vadd.f32 %v4130_v5, %v4116_v1 }
 0x210   : > { %v4096_v62 = vadd.f32 %v4095_v24, %v4094_v10  ;;  %v4132_v27 = vrot.slane %v4131_v51, 4 }
 0x212   : > { %v4097_v28 = vrot.slane %v4096_v62, 2  ;;  %v4133_v12 = vadd.f32 %v4132_v27, %v4131_v51 }
 0x214   : > { %v4098_v14 = vadd.f32 %v4097_v28, %v4096_v62  ;;  %v4134_v29 = vrot.slane %v4133_v12, 2 }
 0x216   : > { %v4099_v16 = vrot.slane %v4098_v14, 1  ;;  %v4135_v30 = vadd.f32 %v4134_v29, %v4133_v12 }
 0x218   : > { %v4136_v23 = vrot.slane %v4135_v30, 1  ;;  %v4100_v25 = vadd.f32 %v4099_v16, %v4098_v14 }
 0x21a   : > { %v4137_v32 = vadd.f32 %v4136_v23, %v4135_v30 }
 0x21c   : > { %v4139_v58 = vsel %vm619_vm4, %v4100_v25, %v4137_v32 }
 0x21d   : > { %4140 = vst [vmem:[%s5613_s11] sm:$0x3] %v4139_v58 }
 0x21e PF: > { %s16_s22 = sadd.s32 1, %s5526_s22   ;;  %s6317_s18 = smov %s5518_s20 }
 0x21f   : > { %p13_p10 = scmp.ge.s32.totalorder %s16_s22, 6   ;;  %s6318_s19 = smov %s5522_s21 }
 0x220   : > { %s6319_s20 = smov %s6322_s23  ;;  %s6320_s21 = smov %s6326_s24 }
 0x221   :  { %15 = sbr.rel (!%p13_p10) target bundleno = 3 (0x3), region = 100 }

// kernel: basic_block_forward.3
= control target key start
LH: loop header
LB: loop body
LE: loop exit
PB: predicated region body
PF: predicated region fallthrough
CT: control target
= control target key end

     0   :  { %s5031_s12 = smov 0   ;;  %s5033_s13 = smov 0   ;;  %s5781_s0 = inlined_call_operand.vmem [shape: bf16[2,18,18,128], index: 0, kind: input, shape index: {}]   ;;  %s5782_s1 = inlined_call_operand.vmem [shape: bf16[9,128,128], index: 1, kind: input, shape index: {}]   ;;  %s5783_s2 = inlined_call_operand.vmem [shape: bf16[2,16,16,128], index: 2, kind: output, shape index: {0}]   ;;  %s5784_s3 = inlined_call_operand.vmem [shape: f32[4,2,128], index: 3, kind: output, shape index: {1}]  }
   0x1   :  { %s5035_s14 = smov 0   ;;  %s5037_s15 = smov 0  }
   0x2   :  { %s5039_s16 = smov 0  }
   0x3 LB: > { %s23_s17 = sadd.s32 1, %s5001_s14  ;;  %s26_s18 = sadd.s32 1, %s5005_s15  ;;  %s5009_s16 = sphi %s5039_s16, %s14_s16   ;;  %s5005_s15 = sphi %s5037_s15, %s5792_s15   ;;  %s5001_s14 = sphi %s5035_s14, %s5791_s14   ;;  %s4997_s13 = sphi %s5033_s13, %s5790_s13   ;;  %s4993_s12 = sphi %s5031_s12, %s5789_s12  }
   0x4   : > { %p24_p0 = scmp.ge.s32.totalorder %s23_s17, 2  ;;  %p3737_p1 = scmp.ge.s32.totalorder %s5009_s16, 1 }
   0x5   : > { %p158_p2 = scmp.lt.s32.totalorder %s5009_s16, 5 }
   0x6   : > { %s5794_s17 = smov (%p24_p0, %s23_s17), 0  ;;  %s5796_s18 = smov (!%p24_p0, %s26_s18), %s5005_s15 }
   0x7   : > { %p159_p3 = pnand %p3737_p1, %p158_p2  ;;  %p28_p4 = scmp.ge.s32.totalorder %s5796_s18, 2 }
   0x8   : > { %v4875_v0 = vld [vmem:[%s5782_s1] sm:$0xff] (!%p159_p3)   ;;  %p193_p5 = scmp.lt.s32.totalorder (!%p159_p3), %s4997_s13, 1  ;;  %v4877_v2 = vld [vmem:[%s5782_s1 + $0x8] sm:$0xff] (!%p159_p3)   ;;  %v4879_v4 = vld [vmem:[%s5782_s1 + $0x10] sm:$0xff] (!%p159_p3)   ;;  %s4194_s10 = smul.u32 (!%p159_p3), 96, %s4993_s12  ;;  %vm972_vm3 = vcmask (!%p159_p3), 1042432  }
   0x9   : > { %s5798_s18 = smov (%p28_p4, %s5796_s18), 0  ;;  %162 = sbr.rel (%p159_p3) target bundleno = 450 (0x1c2), region = 28 }
   0xa   : > { %v4876_v1 = vld [vmem:[%s5782_s1 + $0x100] sm:$0xff] (!%p159_p3)   ;;  %4402 = vmatprep.subr.bf16.mxu1 (!%p159_p3), %v4875_v0  ;;  %v4878_v3 = vld [vmem:[%s5782_s1 + $0x108] sm:$0xff] (!%p159_p3)   ;;  %v4880_v5 = vld [vmem:[%s5782_s1 + $0x110] sm:$0xff] (!%p159_p3)   ;;  %vm487_vm0 = vsmask.f32 (!%p159_p3), 3328  ;;  %vm973_vm4 = vcmask (!%p159_p3), 1046532  }
   0xb   : > { %4530 = vmatprep.subr.bf16.mxu0 (!%p159_p3), %v4876_v1  ;;  %4403 = vmatpush3.bf16.msra.mxu1 (!%p159_p3), %v4875_v0  ;;  %v4881_v6 = vld [vmem:[%s5782_s1 + $0x18] sm:$0xff] (!%p159_p3)   ;;  %v4883_v8 = vld [vmem:[%s5782_s1 + $0x20] sm:$0xff] (!%p159_p3)   ;;  %v4885_v10 = vld [vmem:[%s5782_s1 + $0x28] sm:$0xff] (!%p159_p3)   ;;  %vm488_vm1 = vsmask.f32 (!%p159_p3), 7440  ;;  %s3743_s4 = sshll.u32 (!%p159_p3), %s4997_s13, 1 }
   0xc   : > { %4531 = vmatpush3.bf16.msra.mxu0 (!%p159_p3), %v4876_v1  ;;  %4404 = vmatprep.subr.bf16.mxu1 (!%p159_p3), %v4877_v2  ;;  %v4882_v7 = vld [vmem:[%s5782_s1 + $0x118] sm:$0xff] (!%p159_p3)   ;;  %v4884_v9 = vld [vmem:[%s5782_s1 + $0x120] sm:$0xff] (!%p159_p3)   ;;  %v4886_v11 = vld [vmem:[%s5782_s1 + $0x128] sm:$0xff] (!%p159_p3)   ;;  %vm3591_vm6 = vcmask (!%p159_p3), 1040384  }
   0xd   : > { %4532 = vmatprep.subr.bf16.mxu0 (!%p159_p3), %v4878_v3  ;;  %v4887_v18 = vld [vmem:[%s5782_s1 + $0x30] sm:$0xff] (!%p159_p3)   ;;  %v4889_v32 = vld [vmem:[%s5782_s1 + $0x38] sm:$0xff] (!%p159_p3)   ;;  %vm5130_vm2 = vmor (!%p159_p3), %vm487_vm0, %vm488_vm1 }
   0xe   : > { %v4888_v24 = vld [vmem:[%s5782_s1 + $0x130] sm:$0xff] (!%p159_p3)   ;;  %v4890_v38 = vld [vmem:[%s5782_s1 + $0x138] sm:$0xff] (!%p159_p3)   ;;  %v4893_v49 = vld [vmem:[%s5782_s1 + $0x40] sm:$0xff] (!%p159_p3)  }
   0xf   : > { %4405 = vmatpush3.bf16.msra.mxu1 (!%p159_p3), %v4877_v2  ;;  %v4894_v55 = vld [vmem:[%s5782_s1 + $0x140] sm:$0xff] (!%p159_p3)   ;;  %v4895_v2 = vld [vmem:[%s5782_s1 + $0x48] sm:$0xff] (!%p159_p3)   ;;  %vm5252_vm5 = vmor (!%p159_p3), %vm972_vm3, %vm973_vm4 }
  0x10   : > { %s5079_s27 = scalar_select %p193_p5, %s4997_s13, 1  ;;  %4533 = vmatpush3.bf16.msra.mxu0 %v4878_v3  ;;  %4406 = vmatprep.subr.bf16.mxu1 %v4879_v4 }
  0x11   : > { %4534 = vmatprep.subr.bf16.mxu0 %v4880_v5 }
  0x12   : > { %s4834_s5 = smul.u32 216, %s5079_s27  ;;  %s3741_s24 = sshll.u32 %s5079_s27, 5 }
  0x13   : > { %4407 = vmatpush3.bf16.msra.mxu1 %v4879_v4 }
  0x14   : > { %s197_s20 = scalar_lea.vmem %s5781_s0, %s4834_s5  ;;  %4535 = vmatpush3.bf16.msra.mxu0 %v4880_v5  ;;  %4408 = vmatprep.subr.bf16.mxu1 %v4881_v6  ;;  %s210_s5 = sadd.s32 %s4993_s12, %s3743_s4 }
  0x15   : > { %4536 = vmatprep.subr.bf16.mxu0 %v4882_v7  ;;  %s5107_s28 = scalar_lea.vmem %s197_s20, %s4194_s10  ;;  %p211_p7 = scmp.lt.s32.totalorder %s210_s5, 3 }
  0x16   : > { %v4891_v12 = vld [vmem:[%s5107_s28] sm:$0xff]   ;;  %v3886_v13 = vld [vmem:[%s5107_s28 + $0xc] sm:$0xf]  ;;  %v3887_v14 = vld [vmem:[%s5107_s28 + $0x10] sm:$0xf] }
  0x17   : > { %4409 = vmatpush3.bf16.msra.mxu1 %v4881_v6  ;;  %4418 = vmatprep.mubr.bf16.mxu1 %v4891_v12  ;;  %v3888_v15 = vld [vmem:[%s5107_s28 + $0x14] sm:$0x1]  ;;  %v1576_v16 = vshrl.u32 %v3886_v13, 16  ;;  %v1579_v17 = vshll.u32 %v3886_v13, 16  ;;  %v1585_v19 = vshll.u32 %v3887_v14, 16  ;;  %v1589_v20 = vshrl.u32 %v3887_v14, 16 }
  0x18   : > { %4537 = vmatpush3.bf16.msra.mxu0 %v4882_v7  ;;  %4410 = vmatprep.subr.bf16.mxu1 %v4883_v8  ;;  %v1595_v21 = vshll.u32 %v3888_v15, 16  ;;  %v3889_v29 = vld [vmem:[%s5107_s28 + $0x18] sm:$0xf]  ;;  %v3890_v30 = vld [vmem:[%s5107_s28 + $0x1c] sm:$0xf]  ;;  %v4892_v52 = vld [vmem:[%s5107_s28 + $0xc] sm:$0xff]  }
  0x19   : > { %4538 = vmatprep.subr.bf16.mxu0 %v4884_v9  ;;  %v1578_v22 = vrot.slane %v1576_v16, 4  ;;  %v1581_v23 = vrot.slane %v1579_v17, 5  ;;  %v1587_v25 = vrot.slane %v1585_v19, 5  ;;  %v1591_v26 = vrot.slane %v1589_v20, 4  ;;  %v3891_v31 = vld [vmem:[%s5107_s28 + $0x20] sm:$0x1] }
  0x1a   : > { %v1597_v27 = vrot.slane %v1595_v21, 5  ;;  %v1600_v35 = vshrl.u32 %v3889_v29, 16  ;;  %v1603_v36 = vshll.u32 %v3889_v29, 16  ;;  %v1609_v37 = vshll.u32 %v3890_v30, 16  ;;  %v3892_v56 = vld [vmem:[%s5107_s28 + $0x24] sm:$0xf] }
  0x1b   : > { %4411 = vmatpush3.bf16.msra.mxu1 %v4883_v8  ;;  %v1582_v28 = vor.u32 %v1581_v23, %v1578_v22  ;;  %v1592_v34 = vor.u32 %v1591_v26, %v1587_v25  ;;  %v1613_v40 = vshrl.u32 %v3890_v30, 16  ;;  %v1619_v41 = vshll.u32 %v3891_v31, 16  ;;  %v3893_v58 = vld [vmem:[%s5107_s28 + $0x28] sm:$0xf]  ;;  %v3894_v59 = vld [vmem:[%s5107_s28 + $0x2c] sm:$0x1] }
  0x1c   : > { %4539 = vmatpush3.bf16.msra.mxu0 %v4884_v9  ;;  %4412 = vmatprep.subr.bf16.mxu1 %v4885_v10  ;;  %v1602_v43 = vrot.slane %v1600_v35, 4  ;;  %v1605_v44 = vrot.slane %v1603_v36, 5  ;;  %v1611_v45 = vrot.slane %v1609_v37, 5  ;;  %v1624_v60 = vshrl.u32 %v3892_v56, 16  ;;  %v4896_v6 = vld [vmem:[%s5782_s1 + $0x148] sm:$0xff]   ;;  %v4899_v16 = vld [vmem:[%s5782_s1 + $0x50] sm:$0xff]  }
  0x1d   : > { %4540 = vmatprep.subr.bf16.mxu0 %v4886_v11  ;;  %v1583_v39 = vrot.slane %v1582_v28, 4  ;;  %v1593_v42 = vrot.slane %v1592_v34, 4  ;;  %v1615_v47 = vrot.slane %v1613_v40, 4  ;;  %v1621_v54 = vrot.slane %v1619_v41, 5  ;;  %v3895_v13 = vld [vmem:[%s5107_s28 + $0x30] sm:$0xf] }
  0x1e   : > { %v1606_v50 = vor.u32 %v1605_v44, %v1602_v43  ;;  %v1627_v62 = vshll.u32 %v3892_v56, 16  ;;  %v1633_v63 = vshll.u32 %v3893_v58, 16  ;;  %v1637_v0 = vshrl.u32 %v3893_v58, 16  ;;  %v3896_v17 = vld [vmem:[%s5107_s28 + $0x34] sm:$0xf]  ;;  %v4902_v41 = vld [vmem:[%s5782_s1 + $0x158] sm:$0xff]  }
  0x1f   : > { %4413 = vmatpush3.bf16.msra.mxu1 %v4885_v10  ;;  %v1588_v46 = vsel %vm5130_vm2, %v1583_v39, %v1587_v25  ;;  %v1598_v48 = vsel %vm5130_vm2, %v1593_v42, %v1597_v27  ;;  %v1616_v53 = vor.u32 %v1615_v47, %v1611_v45  ;;  %v1626_v3 = vrot.slane %v1624_v60, 4  ;;  %v4898_v27 = vld [vmem:[%s5107_s28 + $0x24] sm:$0xff]   ;;  %v4903_v34 = vld [vmem:[%s5107_s28 + $0x30] sm:$0xff]   ;;  %v3898_v42 = vld [vmem:[%s5107_s28 + $0x3c] sm:$0xf]  ;;  %s5802_s5 = smov (!%p211_p7, %s210_s5), 3 }
  0x20   : > { %4541 = vmatpush3.bf16.msra.mxu0 %v4886_v11  ;;  %4414 = vmatprep.subr.bf16.mxu1 %v4887_v18  ;;  %v3926_v51 = vcombine.low %v1588_v46, %v1598_v48  ;;  %v1607_v57 = vrot.slane %v1606_v50, 4  ;;  %v1643_v4 = vshll.u32 %v3894_v59, 16  ;;  %v1629_v7 = vrot.slane %v1627_v62, 5  ;;  %v4897_v11 = vld [vmem:[%s5107_s28 + $0x18] sm:$0xff]   ;;  %v3899_v44 = vld [vmem:[%s5107_s28 + $0x40] sm:$0xf] }
  0x21   : > { %4542 = vmatprep.subr.bf16.mxu0 %v4888_v24  ;;  %v1617_v61 = vrot.slane %v1616_v53, 4  ;;  %v1635_v8 = vrot.slane %v1633_v63, 5  ;;  %v1639_v9 = vrot.slane %v1637_v0, 4  ;;  %v1648_v19 = vshrl.u32 %v3895_v13, 16  ;;  %v4905_v58 = vld [vmem:[%s5782_s1 + $0x60] sm:$0xff]   ;;  %s3744_s13 = sshll.u32 %s5802_s5, 1 }
  0x22   : > { %4546 = vmatprep.mubr.bf16.mxu0 %v3926_v51  ;;  %v1612_v1 = vsel %vm5130_vm2, %v1607_v57, %v1611_v45  ;;  %v1645_v12 = vrot.slane %v1643_v4, 5  ;;  %v1630_v14 = vor.u32 %v1629_v7, %v1626_v3  ;;  %v1651_v20 = vshll.u32 %v3895_v13, 16  ;;  %v3900_v45 = vld [vmem:[%s5107_s28 + $0x44] sm:$0x1]  ;;  %v4907_v13 = vld [vmem:[%s5782_s1 + $0x68] sm:$0xff]  }
  0x23   : > { %4415 = vmatpush3.bf16.msra.mxu1 %v4887_v18  ;;  %v1622_v5 = vsel %vm5130_vm2, %v1617_v61, %v1621_v54  ;;  %v1640_v15 = vor.u32 %v1639_v9, %v1635_v8  ;;  %v3897_v18 = vld [vmem:[%s5107_s28 + $0x38] sm:$0x1]  ;;  %v1657_v21 = vshll.u32 %v3896_v17, 16  ;;  %v1661_v22 = vshrl.u32 %v3896_v17, 16  ;;  %v3901_v61 = vld [vmem:[%s5107_s28 + $0x48] sm:$0xf] }
  0x24   : > { %4543 = vmatpush3.bf16.msra.mxu0 %v4888_v24  ;;  %4416 = vmatprep.subr.bf16.mxu1 %v4889_v32  ;;  %v3927_v10 = vcombine.low %v1612_v1, %v1622_v5  ;;  %v1667_v23 = vshll.u32 %v3897_v18, 16  ;;  %v4900_v24 = vld [vmem:[%s5782_s1 + $0x150] sm:$0xff]   ;;  %v1631_v25 = vrot.slane %v1630_v14, 4  ;;  %v1650_v28 = vrot.slane %v1648_v19, 4  ;;  %v4906_v62 = vld [vmem:[%s5782_s1 + $0x160] sm:$0xff]   ;;  %v4908_v14 = vld [vmem:[%s5782_s1 + $0x168] sm:$0xff]  }
  0x25   : > { %4544 = vmatprep.subr.bf16.mxu0 %v4890_v38  ;;  %v1641_v26 = vrot.slane %v1640_v15, 4  ;;  %v1653_v29 = vrot.slane %v1651_v20, 5  ;;  %v1659_v30 = vrot.slane %v1657_v21, 5  ;;  %v1663_v31 = vrot.slane %v1661_v22, 4  ;;  %v3902_v1 = vld [vmem:[%s5107_s28 + $0x4c] sm:$0xf] }
  0x26   : > { %v1636_v35 = vsel %vm5130_vm2, %v1631_v25, %v1635_v8  ;;  %v1672_v46 = vshrl.u32 %v3898_v42, 16  ;;  %v1675_v48 = vshll.u32 %v3898_v42, 16  ;;  %v1685_v50 = vshrl.u32 %v3899_v44, 16  ;;  %v4904_v5 = vld [vmem:[%s5107_s28 + $0x3c] sm:$0xff]   ;;  %v4909_v18 = vld [vmem:[%s5107_s28 + $0x48] sm:$0xff]  }
  0x27   : > { %4417 = vmatpush3.bf16.msra.mxu1 %v4889_v32  ;;  %v1669_v32 = vrot.slane %v1667_v23, 5  ;;  %v1646_v36 = vsel %vm5130_vm2, %v1641_v26, %v1645_v12  ;;  %v1654_v37 = vor.u32 %v1653_v29, %v1650_v28  ;;  %v1664_v40 = vor.u32 %v1663_v31, %v1659_v30  ;;  %v3905_v26 = vld [vmem:[%s5107_s28 + $0x58] sm:$0xf] }
  0x28   : > { %4545 = vmatpush3.bf16.msra.mxu0 %v4890_v38  ;;  %4434 = vmatprep.subr.bf16.mxu1 %v4893_v49  ;;  %v4901_v38 = vld [vmem:[%s5782_s1 + $0x58] sm:$0xff]   ;;  %v3928_v39 = vcombine.low %v1636_v35, %v1646_v36  ;;  %v1691_v53 = vshll.u32 %v3900_v45, 16  ;;  %v1687_v57 = vrot.slane %v1685_v50, 4  ;;  %v1696_v3 = vshrl.u32 %v3901_v61, 16  ;;  %v3908_v50 = vld [vmem:[%s5107_s28 + $0x64] sm:$0xf] }
  0x29   : > { %4562 = vmatprep.subr.bf16.mxu0 %v4894_v55  ;;  %v1655_v43 = vrot.slane %v1654_v37, 4  ;;  %v1665_v47 = vrot.slane %v1664_v40, 4  ;;  %v1699_v4 = vshll.u32 %v3901_v61, 16  ;;  %v1709_v7 = vshrl.u32 %v3902_v1, 16  ;;  %v4910_v37 = vld [vmem:[%s5107_s28 + $0x54] sm:$0xff]  }
  0x2a   : > { %4419 = vmatmul.mubr.bf16.vlgmr.msra.gmra.mrb[0].mxu1 %v4892_v52  ;;  %v1674_v52 = vrot.slane %v1672_v46, 4  ;;  %v1693_v60 = vrot.slane %v1691_v53, 5  ;;  %v1729_v31 = vshll.u32 %v3905_v26, 16  ;;  %v3907_v46 = vld [vmem:[%s5107_s28 + $0x60] sm:$0xf] }
  0x2b   : > { %4547 = vmatmul.mubr.bf16.vlgmr.msra.gmra.mrb[0].mxu0 %v3927_v10  ;;  %4435 = vmatpush3.bf16.msra.mxu1 %v4893_v49  ;;  %v1681_v49 = vshll.u32 %v3899_v44, 16  ;;  %v1660_v51 = vsel %vm5130_vm2, %v1655_v43, %v1659_v30  ;;  %v1670_v54 = vsel %vm5130_vm2, %v1665_v47, %v1669_v32  ;;  %v1701_v12 = vrot.slane %v1699_v4, 5  ;;  %v4912_v43 = vld [vmem:[%s5782_s1 + $0x170] sm:$0xff]   ;;  %v4913_v47 = vld [vmem:[%s5782_s1 + $0x78] sm:$0xff]  }
  0x2c   : > { %4563 = vmatpush3.bf16.msra.mxu0 %v4894_v55  ;;  %4436 = vmatprep.subr.bf16.mxu1 %v4895_v2  ;;  %v1677_v55 = vrot.slane %v1675_v48, 5  ;;  %v3929_v59 = vcombine.low %v1660_v51, %v1670_v54  ;;  %v1733_v32 = vshrl.u32 %v3905_v26, 16  ;;  %v3909_v51 = vld [vmem:[%s5107_s28 + $0x68] sm:$0x1]  ;;  %v1747_v53 = vshll.u32 %v3907_v46, 16  ;;  %v5261_v26 = vld [vmem:[%s5782_s1 + $0x180] sm:$0xff]  }
  0x2d   : > { %4564 = vmatprep.subr.bf16.mxu0 %v4896_v6  ;;  %4422 = vmatprep.mubr.bf16.mxu1 %v4897_v11  ;;  %v1683_v56 = vrot.slane %v1681_v49, 5  ;;  %v1698_v11 = vrot.slane %v1696_v3, 4  ;;  %v1753_v54 = vshll.u32 %v3908_v50, 16 }
  0x2e   : > { %4550 = vmatprep.mubr.bf16.mxu0 %v3928_v39  ;;  %v1678_v63 = vor.u32 %v1677_v55, %v1674_v52  ;;  %v1735_v42 = vrot.slane %v1733_v32, 4  ;;  %v1744_v52 = vshrl.u32 %v3907_v46, 16  ;;  %v1757_v55 = vshrl.u32 %v3908_v50, 16 }
  0x2f   : > { %4437 = vmatpush3.bf16.msra.mxu1 %v4895_v2  ;;  %v1688_v0 = vor.u32 %v1687_v57, %v1683_v56  ;;  %v3903_v2 = vld [vmem:[%s5107_s28 + $0x50] sm:$0x1]  ;;  %v1702_v21 = vor.u32 %v1701_v12, %v1698_v11  ;;  %v4914_v57 = vld [vmem:[%s5782_s1 + $0x178] sm:$0xff]   ;;  %v1749_v61 = vrot.slane %v1747_v53, 5 }
  0x30   : > { %4565 = vmatpush3.bf16.msra.mxu0 %v4896_v6  ;;  %4438 = vmatprep.subr.bf16.mxu1 %v4899_v16  ;;  %v1705_v6 = vshll.u32 %v3902_v1, 16  ;;  %v1715_v8 = vshll.u32 %v3903_v2, 16  ;;  %v1679_v9 = vrot.slane %v1678_v63, 4  ;;  %v1759_v63 = vrot.slane %v1757_v55, 4  ;;  %v5237_v1 = vld [vmem:[%s5782_s1 + $0x80] sm:$0xff]  }
  0x31   : > { %4566 = vmatprep.subr.bf16.mxu0 %v4900_v24  ;;  %v1689_v10 = vrot.slane %v1688_v0, 4  ;;  %v1703_v25 = vrot.slane %v1702_v21, 4 }
  0x32   : > { %4423 = vmatmul.mubr.bf16.gmra.mrb[4].mxu1 %v4898_v27  ;;  %v1707_v15 = vrot.slane %v1705_v6, 5  ;;  %v1717_v17 = vrot.slane %v1715_v8, 5  ;;  %v1684_v19 = vsel %vm5130_vm2, %v1679_v9, %v1683_v56  ;;  %v3906_v27 = vld [vmem:[%s5107_s28 + $0x5c] sm:$0x1]  ;;  %v1763_v56 = vshll.u32 %v3909_v51, 16 }
  0x33   : > { %4439 = vmatpush3.bf16.msra.mxu1 %v4899_v16  ;;  %4426 = vmatprep.mubr.bf16.mxu1 %v4903_v34  ;;  %v1711_v16 = vrot.slane %v1709_v7, 4  ;;  %v1694_v20 = vsel %vm5130_vm2, %v1689_v10, %v1693_v60  ;;  %v1739_v36 = vshll.u32 %v3906_v27, 16  ;;  %v1746_v60 = vrot.slane %v1744_v52, 4  ;;  %v463_v7 = vld [vmem:[%s5107_s28] sm:$0xf] }
  0x34   : > { %4567 = vmatpush3.bf16.msra.mxu0 %v4900_v24  ;;  %4440 = vmatprep.subr.bf16.mxu1 %v4901_v38  ;;  %v3930_v22 = vcombine.low %v1684_v19, %v1694_v20  ;;  %v3904_v24 = vld [vmem:[%s5107_s28 + $0x54] sm:$0xf]  ;;  %v1708_v34 = vsel %vm5130_vm2, %v1703_v25, %v1707_v15  ;;  %v1765_v0 = vrot.slane %v1763_v56, 5  ;;  %v464_v8 = vld [vmem:[%s5107_s28 + $0x4] sm:$0xf]  ;;  %v491_v11 = vshrl.u32 %v463_v7, 16 }
  0x35   : > { %4568 = vmatprep.subr.bf16.mxu0 %v4902_v41  ;;  %4551 = vmatmul.mubr.bf16.gmra.mrb[4].mxu0 %v3929_v59  ;;  %v1712_v23 = vor.u32 %v1711_v16, %v1707_v15  ;;  %v1720_v28 = vshrl.u32 %v3904_v24, 16  ;;  %v1723_v30 = vshll.u32 %v3904_v24, 16  ;;  %v1741_v45 = vrot.slane %v1739_v36, 5  ;;  %v465_v9 = vld [vmem:[%s5107_s28 + $0x8] sm:$0x1] }
  0x36   : > { %4554 = vmatprep.mubr.bf16.mxu0 %v3930_v22  ;;  %v1750_v4 = vor.u32 %v1749_v61, %v1746_v60  ;;  %v494_v12 = vshll.u32 %v463_v7, 16  ;;  %v504_v16 = vshrl.u32 %v464_v8, 16  ;;  %v493_v21 = vrot.slane %v491_v11, 4  ;;  %v3944_v25 = vld [vmem:[%s5107_s28 + $0x14] sm:$0x1]  ;;  %v4917_v11 = vld [vmem:[%s5782_s1 + $0x88] sm:$0xff]  }
  0x37   : > { %4441 = vmatpush3.bf16.msra.mxu1 %v4901_v38  ;;  %v1713_v29 = vrot.slane %v1712_v23, 4  ;;  %v1722_v35 = vrot.slane %v1720_v28, 4  ;;  %v4911_v38 = vld [vmem:[%s5782_s1 + $0x70] sm:$0xff]   ;;  %v1725_v40 = vrot.slane %v1723_v30, 5  ;;  %v3946_v52 = vld [vmem:[%s5107_s28 + $0x1c] sm:$0xf] }
  0x38   : > { %4569 = vmatpush3.bf16.msra.mxu0 %v4902_v41  ;;  %4442 = vmatprep.subr.bf16.mxu1 %v4905_v58  ;;  %v1731_v41 = vrot.slane %v1729_v31, 5  ;;  %v1751_v10 = vrot.slane %v1750_v4, 4  ;;  %v496_v22 = vrot.slane %v494_v12, 5  ;;  %v506_v28 = vrot.slane %v504_v16, 4  ;;  %v466_v31 = vld [vmem:[%s5107_s28 + $0xc] sm:$0xf] }
  0x39   : > { %4570 = vmatprep.subr.bf16.mxu0 %v4906_v62  ;;  %v1718_v39 = vsel %vm5130_vm2, %v1713_v29, %v1717_v17  ;;  %v1726_v48 = vor.u32 %v1725_v40, %v1722_v35  ;;  %v510_v17 = vshll.u32 %v465_v9, 16  ;;  %v2062_v35 = vrot.slane %v3944_v25, 5  ;;  %v467_v36 = vld [vmem:[%s5107_s28 + $0x10] sm:$0xf]  ;;  %v469_v4 = vld [vmem:[%s5107_s28 + $0x18] sm:$0xf] }
  0x3a   : > { %4427 = vmatmul.mubr.bf16.gmra.mrb[8].mxu1 %v4904_v5  ;;  %v3931_v44 = vcombine.low %v1708_v34, %v1718_v39  ;;  %v1736_v49 = vor.u32 %v1735_v42, %v1731_v41  ;;  %v497_v34 = vor.u32 %v496_v22, %v493_v21  ;;  %v518_v42 = vshll.u32 %v466_v31, 16  ;;  %v471_v9 = vld [vmem:[%s5107_s28 + $0x20] sm:$0x1]  ;;  %v4918_v12 = vld [vmem:[%s5782_s1 + $0x188] sm:$0xff]   ;;  %v3948_v16 = vld [vmem:[%s5107_s28 + $0x24] sm:$0xe] }
  0x3b   : > { %4443 = vmatpush3.bf16.msra.mxu1 %v4905_v58  ;;  %4430 = vmatprep.mubr.bf16.mxu1 %v4909_v18  ;;  %v1727_v58 = vrot.slane %v1726_v48, 4  ;;  %v3943_v18 = vld [vmem:[%s5107_s28 + $0x10] sm:$0xf]  ;;  %v512_v29 = vrot.slane %v510_v17, 5  ;;  %v528_v46 = vshrl.u32 %v467_v36, 16 }
  0x3c   : > { %4571 = vmatpush3.bf16.msra.mxu0 %v4906_v62  ;;  %4444 = vmatprep.subr.bf16.mxu1 %v4907_v13  ;;  %v1737_v59 = vrot.slane %v1736_v49, 4  ;;  %v1755_v62 = vrot.slane %v1753_v54, 5  ;;  %v2059_v30 = vrot.slane %v3943_v18, 5  ;;  %v520_v50 = vrot.slane %v518_v42, 5  ;;  %v3949_v21 = vld [vmem:[%s5107_s28 + $0x28] sm:$0xf] }
  0x3d   : > { %4572 = vmatprep.subr.bf16.mxu0 %v4908_v14  ;;  %4555 = vmatmul.mubr.bf16.gmra.mrb[8].mxu0 %v3931_v44  ;;  %v1732_v2 = vsel %vm5130_vm2, %v1727_v58, %v1731_v41  ;;  %v530_v56 = vrot.slane %v528_v46, 4  ;;  %v3950_v22 = vld [vmem:[%s5107_s28 + $0x2c] sm:$0x1] }
  0x3e   : > { %v1742_v3 = vsel %vm5130_vm2, %v1737_v59, %v1741_v45  ;;  %v1760_v6 = vor.u32 %v1759_v63, %v1755_v62  ;;  %v1756_v20 = vsel %vm5130_vm2, %v1751_v10, %v1755_v62  ;;  %v2061_v41 = vrot.slane %v2059_v30, 4 }
  0x3f   : > { %4445 = vmatpush3.bf16.msra.mxu1 %v4907_v13  ;;  %v3932_v5 = vcombine.low %v1732_v2, %v1742_v3  ;;  %v500_v13 = vshll.u32 %v464_v8, 16  ;;  %v524_v45 = vshll.u32 %v467_v36, 16  ;;  %v470_v8 = vld [vmem:[%s5107_s28 + $0x1c] sm:$0xf]  ;;  %v474_v36 = vld [vmem:[%s5107_s28 + $0x2c] sm:$0x1] }
  0x40   : > { %4573 = vmatpush3.bf16.msra.mxu0 %v4908_v14  ;;  %4446 = vmatprep.subr.bf16.mxu1 %v4911_v38  ;;  %v3942_v14 = vld [vmem:[%s5107_s28 + $0xc] sm:$0xe]  ;;  %v1761_v15 = vrot.slane %v1760_v6, 4  ;;  %v2063_v49 = vsel %vm5252_vm5, %v2061_v41, %v2062_v35  ;;  %v3968_v35 = vrot.slane %v3948_v16, 9 }
  0x41   : > { %4574 = vmatprep.subr.bf16.mxu0 %v4912_v43  ;;  %4558 = vmatprep.mubr.bf16.mxu0 %v3932_v5  ;;  %v3966_v19 = vrot.slane %v3942_v14, 9  ;;  %v502_v23 = vrot.slane %v500_v13, 5  ;;  %v526_v55 = vrot.slane %v524_v45, 5  ;;  %v539_v13 = vshrl.u32 %v469_v4, 16  ;;  %v4919_v45 = vld [vmem:[%s5782_s1 + $0x90] sm:$0xff]  }
  0x42   : > { %4431 = vmatmul.mubr.bf16.gmra.mrb[12].mxu1 %v4910_v37  ;;  %v1766_v27 = vsel %vm5130_vm2, %v1761_v15, %v1765_v0  ;;  %v468_v37 = vld [vmem:[%s5107_s28 + $0x14] sm:$0x1]  ;;  %v2066_v0 = vrot.slane %v3946_v52, 5  ;;  %v542_v14 = vshll.u32 %v469_v4, 16  ;;  %v548_v15 = vshll.u32 %v470_v8, 16 }
  0x43   : > { %4447 = vmatpush3.bf16.msra.mxu1 %v4911_v38  ;;  %v3933_v32 = vcombine.low %v1756_v20, %v1766_v27  ;;  %v515_v38 = vshrl.u32 %v466_v31, 16  ;;  %v507_v39 = vor.u32 %v506_v28, %v502_v23  ;;  %v2060_v40 = vsel %vm5252_vm5, %v3966_v19, %v2059_v30  ;;  %v473_v30 = vld [vmem:[%s5107_s28 + $0x28] sm:$0xf] }
  0x44   : > { %4575 = vmatpush3.bf16.msra.mxu0 %v4912_v43  ;;  %4448 = vmatprep.subr.bf16.mxu1 %v4913_v47  ;;  %v498_v43 = vrot.slane %v497_v34, 4  ;;  %v534_v51 = vshll.u32 %v468_v37, 16  ;;  %v3990_v54 = vcombine.low %v2060_v40, %v2063_v49  ;;  %v531_v63 = vor.u32 %v530_v56, %v526_v55  ;;  %v3951_v49 = vld [vmem:[%s5107_s28 + $0x30] sm:$0xe] }
  0x45   : > { %4576 = vmatprep.subr.bf16.mxu0 %v4914_v57  ;;  %4559 = vmatmul.mubr.bf16.gmra.mrb[12].mxu0 %v3933_v32  ;;  %v517_v44 = vrot.slane %v515_v38, 4  ;;  %v508_v48 = vrot.slane %v507_v39, 4  ;;  %v2068_v7 = vrot.slane %v2066_v0, 4  ;;  %v552_v19 = vshrl.u32 %v470_v8, 16 }
  0x46   : > { %v503_v53 = vsel %vm5130_vm2, %v498_v43, %v502_v23  ;;  %v536_v60 = vrot.slane %v534_v51, 5  ;;  %4578 = vmatprep.mubr.bf16.mxu0 %v3990_v54  ;;  %v532_v5 = vrot.slane %v531_v63, 4  ;;  %v558_v20 = vshll.u32 %v471_v9, 16  ;;  %v3952_v54 = vld [vmem:[%s5107_s28 + $0x34] sm:$0xf] }
  0x47   : > { %4449 = vmatpush3.bf16.msra.mxu1 %v4913_v47  ;;  %v3945_v47 = vld [vmem:[%s5107_s28 + $0x18] sm:$0xe]  ;;  %v513_v58 = vsel %vm5130_vm2, %v508_v48, %v512_v29  ;;  %v521_v59 = vor.u32 %v520_v50, %v517_v44  ;;  %v541_v27 = vrot.slane %v539_v13, 4  ;;  %v544_v28 = vrot.slane %v542_v14, 5  ;;  %v472_v29 = vld [vmem:[%s5107_s28 + $0x24] sm:$0xf] }
  0x48   : > { %4577 = vmatpush3.bf16.msra.mxu0 %v4914_v57  ;;  %4466 = vmatprep.subr.bf16.mxu1 %v5237_v1  ;;  %v3947_v57 = vld [vmem:[%s5107_s28 + $0x20] sm:$0x1]  ;;  %v3967_v61 = vrot.slane %v3945_v47, 9  ;;  %v3780_v62 = vcombine.low %v503_v53, %v513_v58  ;;  %v537_v17 = vsel %vm5130_vm2, %v532_v5, %v536_v60  ;;  %v550_v31 = vrot.slane %v548_v15, 5  ;;  %v3953_v58 = vld [vmem:[%s5107_s28 + $0x38] sm:$0x1] }
  0x49   : > { %4594 = vmatprep.subr.bf16.mxu0 %v5261_v26  ;;  %v2069_v2 = vrot.slane %v3947_v57, 5  ;;  %v522_v3 = vrot.slane %v521_v59, 4  ;;  %v554_v32 = vrot.slane %v552_v19, 4  ;;  %v560_v34 = vrot.slane %v558_v20, 5  ;;  %v4921_v60 = vld [vmem:[%s5782_s1 + $0x98] sm:$0xff]   ;;  %v4924_v15 = vld [vmem:[%s5782_s1 + $0x1a0] sm:$0xff]  }
  0x4a   : > { %4450 = vmatprep.mubr.bf16.mxu1 %v3780_v62  ;;  %v2067_v6 = vsel %vm5252_vm5, %v3967_v61, %v2066_v0  ;;  %v545_v37 = vor.u32 %v544_v28, %v541_v27  ;;  %v2073_v38 = vrot.slane %v3949_v21, 5  ;;  %v2076_v39 = vrot.slane %v3950_v22, 5  ;;  %v477_v13 = vld [vmem:[%s5107_s28 + $0x38] sm:$0x1]  ;;  %v3954_v20 = vld [vmem:[%s5107_s28 + $0x3c] sm:$0xe] }
  0x4b   : > { %v527_v10 = vsel %vm5130_vm2, %v522_v3, %v526_v55  ;;  %v2070_v18 = vsel %vm5252_vm5, %v2068_v7, %v2069_v2  ;;  %v563_v40 = vshrl.u32 %v472_v29, 16  ;;  %v555_v41 = vor.u32 %v554_v32, %v550_v31  ;;  %v4922_v2 = vld [vmem:[%s5782_s1 + $0x198] sm:$0xff]   ;;  %v3955_v21 = vld [vmem:[%s5107_s28 + $0x40] sm:$0xf]  ;;  %v3956_v28 = vld [vmem:[%s5107_s28 + $0x44] sm:$0x1] }
  0x4c   : > { %v3781_v23 = vcombine.low %v527_v10, %v537_v17  ;;  %v3991_v25 = vcombine.low %v2067_v6, %v2070_v18  ;;  %v566_v42 = vshll.u32 %v472_v29, 16  ;;  %v572_v43 = vshll.u32 %v473_v30, 16  ;;  %v475_v10 = vld [vmem:[%s5107_s28 + $0x30] sm:$0xf]  ;;  %v478_v29 = vld [vmem:[%s5107_s28 + $0x3c] sm:$0xf] }
  0x4d   : > { %v576_v44 = vshrl.u32 %v473_v30, 16  ;;  %v546_v46 = vrot.slane %v545_v37, 4  ;;  %v2074_v47 = vsel %vm5252_vm5, %v3968_v35, %v2073_v38  ;;  %v2075_v48 = vrot.slane %v2073_v38, 4  ;;  %v479_v35 = vld [vmem:[%s5107_s28 + $0x40] sm:$0xf] }
  0x4e   : > { %4451 = vmatmul.mubr.bf16.vlgmr.msra.gmra.mrb[0].mxu1 %v3781_v23  ;;  %4579 = vmatmul.mubr.bf16.vlgmr.msra.gmra.mrb[0].mxu0 %v3991_v25  ;;  %v556_v50 = vrot.slane %v555_v41, 4  ;;  %v568_v51 = vrot.slane %v566_v42, 5  ;;  %v574_v52 = vrot.slane %v572_v43, 5  ;;  %v582_v57 = vshll.u32 %v474_v36, 16  ;;  %v4923_v36 = vld [vmem:[%s5782_s1 + $0xa0] sm:$0xff]  }
  0x4f   : > { %4467 = vmatpush3.bf16.msra.mxu1 %v5237_v1  ;;  %4595 = vmatpush3.bf16.msra.mxu0 %v5261_v26  ;;  %v565_v1 = vrot.slane %v563_v40, 4  ;;  %v4920_v26 = vld [vmem:[%s5782_s1 + $0x190] sm:$0xff]   ;;  %v578_v53 = vrot.slane %v576_v44, 4  ;;  %v551_v55 = vsel %vm5130_vm2, %v546_v46, %v550_v31  ;;  %v2077_v56 = vsel %vm5252_vm5, %v2075_v48, %v2076_v39  ;;  %v480_v41 = vld [vmem:[%s5107_s28 + $0x44] sm:$0x1]  ;;  %v4925_v46 = vld [vmem:[%s5782_s1 + $0xa8] sm:$0xff]  }
  0x50   : > { %4468 = vmatprep.subr.bf16.mxu1 %v4917_v11  ;;  %4596 = vmatprep.subr.bf16.mxu0 %v4918_v12  ;;  %v3969_v59 = vrot.slane %v3951_v49, 9  ;;  %v561_v61 = vsel %vm5130_vm2, %v556_v50, %v560_v34  ;;  %v3992_v62 = vcombine.low %v2074_v47, %v2077_v56  ;;  %v2080_v0 = vrot.slane %v3952_v54, 5  ;;  %v4926_v47 = vld [vmem:[%s5782_s1 + $0x1a8] sm:$0xff]  }
  0x51   : > { %v569_v63 = vor.u32 %v568_v51, %v565_v1  ;;  %v3782_v3 = vcombine.low %v551_v55, %v561_v61  ;;  %v579_v4 = vor.u32 %v578_v53, %v574_v52  ;;  %v584_v5 = vrot.slane %v582_v57, 5  ;;  %v3957_v50 = vld [vmem:[%s5107_s28 + $0x48] sm:$0xe]  ;;  %v3958_v55 = vld [vmem:[%s5107_s28 + $0x4c] sm:$0xf] }
  0x52   : > { %v2083_v6 = vrot.slane %v3953_v58, 5  ;;  %4582 = vmatprep.mubr.bf16.mxu0 %v3992_v62  ;;  %v2081_v8 = vsel %vm5252_vm5, %v3969_v59, %v2080_v0  ;;  %v2082_v9 = vrot.slane %v2080_v0, 4  ;;  %v587_v14 = vshrl.u32 %v475_v10, 16 }
  0x53   : > { %4469 = vmatpush3.bf16.msra.mxu1 %v4917_v11  ;;  %4597 = vmatpush3.bf16.msra.mxu0 %v4918_v12  ;;  %v570_v7 = vrot.slane %v569_v63, 4  ;;  %v580_v11 = vrot.slane %v579_v4, 4  ;;  %v476_v12 = vld [vmem:[%s5107_s28 + $0x34] sm:$0xf]  ;;  %v590_v18 = vshll.u32 %v475_v10, 16  ;;  %v606_v34 = vshll.u32 %v477_v13, 16 }
  0x54   : > { %4470 = vmatprep.subr.bf16.mxu1 %v4919_v45  ;;  %4598 = vmatprep.subr.bf16.mxu0 %v4920_v26  ;;  %v2084_v17 = vsel %vm5252_vm5, %v2082_v9, %v2083_v6  ;;  %v596_v19 = vshll.u32 %v476_v12, 16  ;;  %v589_v25 = vrot.slane %v587_v14, 4  ;;  %v600_v27 = vshrl.u32 %v476_v12, 16  ;;  %v481_v14 = vld [vmem:[%s5107_s28 + $0x48] sm:$0xf] }
  0x55   : > { %4454 = vmatprep.mubr.bf16.mxu1 %v3782_v3  ;;  %v575_v16 = vsel %vm5130_vm2, %v570_v7, %v574_v52  ;;  %v585_v22 = vsel %vm5130_vm2, %v580_v11, %v584_v5  ;;  %v3993_v23 = vcombine.low %v2081_v8, %v2084_v17  ;;  %v592_v31 = vrot.slane %v590_v18, 5  ;;  %v4928_v7 = vld [vmem:[%s5782_s1 + $0x1b0] sm:$0xff]   ;;  %v482_v17 = vld [vmem:[%s5107_s28 + $0x4c] sm:$0xf] }
  0x56   : > { %v3783_v30 = vcombine.low %v575_v16, %v585_v22  ;;  %v598_v32 = vrot.slane %v596_v19, 5  ;;  %v602_v37 = vrot.slane %v600_v27, 4  ;;  %v3970_v38 = vrot.slane %v3954_v20, 9  ;;  %v483_v18 = vld [vmem:[%s5107_s28 + $0x50] sm:$0x1]  ;;  %v4930_v27 = vld [vmem:[%s5782_s1 + $0x1b8] sm:$0xff]  }
  0x57   : > { %4471 = vmatpush3.bf16.msra.mxu1 %v4919_v45  ;;  %4599 = vmatpush3.bf16.msra.mxu0 %v4920_v26  ;;  %v2087_v39 = vrot.slane %v3955_v21, 5  ;;  %v2090_v40 = vrot.slane %v3956_v28, 5  ;;  %v593_v42 = vor.u32 %v592_v31, %v589_v25  ;;  %v608_v43 = vrot.slane %v606_v34, 5  ;;  %v3960_v25 = vld [vmem:[%s5107_s28 + $0x54] sm:$0xe] }
  0x58   : > { %4472 = vmatprep.subr.bf16.mxu1 %v4921_v60  ;;  %4600 = vmatprep.subr.bf16.mxu0 %v4922_v2  ;;  %v611_v44 = vshrl.u32 %v478_v29, 16  ;;  %v614_v45 = vshll.u32 %v478_v29, 16  ;;  %v603_v48 = vor.u32 %v602_v37, %v598_v32  ;;  %v620_v26 = vshll.u32 %v479_v35, 16  ;;  %v3962_v34 = vld [vmem:[%s5107_s28 + $0x5c] sm:$0x1] }
  0x59   : > { %4583 = vmatmul.mubr.bf16.gmra.mrb[4].mxu0 %v3993_v23  ;;  %4455 = vmatmul.mubr.bf16.gmra.mrb[4].mxu1 %v3783_v30  ;;  %v2088_v1 = vsel %vm5252_vm5, %v3970_v38, %v2087_v39  ;;  %v2089_v49 = vrot.slane %v2087_v39, 4  ;;  %v594_v51 = vrot.slane %v593_v42, 4  ;;  %v624_v54 = vshrl.u32 %v479_v35, 16  ;;  %v484_v39 = vld [vmem:[%s5107_s28 + $0x54] sm:$0xf] }
  0x5a   : > { %v613_v52 = vrot.slane %v611_v44, 4  ;;  %v616_v53 = vrot.slane %v614_v45, 5  ;;  %v604_v56 = vrot.slane %v603_v48, 4  ;;  %v622_v58 = vrot.slane %v620_v26, 5  ;;  %v485_v45 = vld [vmem:[%s5107_s28 + $0x58] sm:$0xf] }
  0x5b   : > { %4601 = vmatpush3.bf16.msra.mxu0 %v4922_v2  ;;  %4473 = vmatpush3.bf16.msra.mxu1 %v4921_v60  ;;  %v2091_v57 = vsel %vm5252_vm5, %v2089_v49, %v2090_v40  ;;  %v630_v59 = vshll.u32 %v480_v41, 16  ;;  %v3959_v60 = vld [vmem:[%s5107_s28 + $0x50] sm:$0x1]  ;;  %v599_v61 = vsel %vm5130_vm2, %v594_v51, %v598_v32  ;;  %v626_v0 = vrot.slane %v624_v54, 4  ;;  %v3961_v32 = vld [vmem:[%s5107_s28 + $0x58] sm:$0xf] }
  0x5c   : > { %4602 = vmatprep.subr.bf16.mxu0 %v4924_v15  ;;  %4474 = vmatprep.subr.bf16.mxu1 %v4923_v36  ;;  %v3994_v62 = vcombine.low %v2088_v1, %v2091_v57  ;;  %v617_v63 = vor.u32 %v616_v53, %v613_v52  ;;  %v4927_v2 = vld [vmem:[%s5782_s1 + $0xb0] sm:$0xff]   ;;  %v609_v3 = vsel %vm5130_vm2, %v604_v56, %v608_v43  ;;  %v3971_v5 = vrot.slane %v3957_v50, 9  ;;  %v4929_v40 = vld [vmem:[%s5782_s1 + $0xb8] sm:$0xff]   ;;  %v5402_v53 = vld [vmem:[%s5782_s1 + $0xc0] sm:$0xff]  }
  0x5d   : > { %v632_v4 = vrot.slane %v630_v59, 5  ;;  %v2094_v6 = vrot.slane %v3958_v55, 5  ;;  %v3784_v8 = vcombine.low %v599_v61, %v609_v3  ;;  %v627_v10 = vor.u32 %v626_v0, %v622_v58  ;;  %v486_v48 = vld [vmem:[%s5107_s28 + $0x5c] sm:$0x1]  ;;  %v5411_v0 = vld [vmem:[%s5782_s1 + $0x1c0] sm:$0xff]  }
  0x5e   : > { %4586 = vmatprep.mubr.bf16.mxu0 %v3994_v62  ;;  %v618_v9 = vrot.slane %v617_v63, 4  ;;  %v2097_v11 = vrot.slane %v3959_v60, 5  ;;  %v635_v19 = vshrl.u32 %v481_v14, 16  ;;  %v638_v21 = vshll.u32 %v481_v14, 16  ;;  %v3964_v63 = vld [vmem:[%s5107_s28 + $0x64] sm:$0xf] }
  0x5f   : > { %4603 = vmatpush3.bf16.msra.mxu0 %v4924_v15  ;;  %4475 = vmatpush3.bf16.msra.mxu1 %v4923_v36  ;;  %v2095_v12 = vsel %vm5252_vm5, %v3971_v5, %v2094_v6  ;;  %v2096_v13 = vrot.slane %v2094_v6, 4  ;;  %v628_v16 = vrot.slane %v627_v10, 4  ;;  %v644_v22 = vshll.u32 %v482_v17, 16  ;;  %v3965_v6 = vld [vmem:[%s5107_s28 + $0x68] sm:$0x1] }
  0x60   : > { %4604 = vmatprep.subr.bf16.mxu0 %v4926_v47  ;;  %4476 = vmatprep.subr.bf16.mxu1 %v4925_v46  ;;  %v623_v15 = vsel %vm5130_vm2, %v618_v9, %v622_v58  ;;  %v648_v23 = vshrl.u32 %v482_v17, 16  ;;  %v637_v30 = vrot.slane %v635_v19, 4  ;;  %v654_v31 = vshll.u32 %v483_v18, 16  ;;  %v3963_v58 = vld [vmem:[%s5107_s28 + $0x60] sm:$0xe] }
  0x61   : > { %4458 = vmatprep.mubr.bf16.mxu1 %v3784_v8  ;;  %v2098_v20 = vsel %vm5252_vm5, %v2096_v13, %v2097_v11  ;;  %v633_v28 = vsel %vm5130_vm2, %v628_v16, %v632_v4  ;;  %v640_v36 = vrot.slane %v638_v21, 5  ;;  %v646_v37 = vrot.slane %v644_v22, 5  ;;  %v925_v19 = vld [vmem:[%s5107_s28 + $0x4] sm:$0xf]  ;;  %v4931_v22 = vld [vmem:[%s5107_s28 + $0x18] sm:$0xff]  }
  0x62   : > { %v3995_v29 = vcombine.low %v2095_v12, %v2098_v20  ;;  %v3785_v35 = vcombine.low %v623_v15, %v633_v28  ;;  %v650_v38 = vrot.slane %v648_v23, 4  ;;  %v656_v41 = vrot.slane %v654_v31, 5  ;;  %v924_v15 = vld [vmem:[%s5107_s28] sm:$0xe]  ;;  %v926_v20 = vld [vmem:[%s5107_s28 + $0x8] sm:$0x1] }
  0x63   : > { %4605 = vmatpush3.bf16.msra.mxu0 %v4926_v47  ;;  %4477 = vmatpush3.bf16.msra.mxu1 %v4925_v46  ;;  %v3972_v42 = vrot.slane %v3960_v25, 9  ;;  %v2101_v43 = vrot.slane %v3961_v32, 5  ;;  %v2104_v44 = vrot.slane %v3962_v34, 5  ;;  %v641_v46 = vor.u32 %v640_v36, %v637_v30  ;;  %v927_v30 = vld [vmem:[%s5107_s28 + $0xc] sm:$0xe] }
  0x64   : > { %4606 = vmatprep.subr.bf16.mxu0 %v4928_v7  ;;  %4478 = vmatprep.subr.bf16.mxu1 %v4927_v2  ;;  %v651_v47 = vor.u32 %v650_v38, %v646_v37  ;;  %v659_v1 = vshrl.u32 %v484_v39, 16  ;;  %v662_v49 = vshll.u32 %v484_v39, 16  ;;  %v668_v51 = vshll.u32 %v485_v45, 16  ;;  %v928_v31 = vld [vmem:[%s5107_s28 + $0x10] sm:$0xf] }
  0x65   : > { %4587 = vmatmul.mubr.bf16.gmra.mrb[8].mxu0 %v3995_v29  ;;  %4459 = vmatmul.mubr.bf16.gmra.mrb[8].mxu1 %v3785_v35  ;;  %v2102_v26 = vsel %vm5252_vm5, %v3972_v42, %v2101_v43  ;;  %v2103_v50 = vrot.slane %v2101_v43, 4  ;;  %v672_v52 = vshrl.u32 %v485_v45, 16  ;;  %v642_v54 = vrot.slane %v641_v46, 4  ;;  %v929_v32 = vld [vmem:[%s5107_s28 + $0x14] sm:$0x1] }
  0x66   : > { %v652_v55 = vrot.slane %v651_v47, 4  ;;  %v661_v56 = vrot.slane %v659_v1, 4  ;;  %v664_v57 = vrot.slane %v662_v49, 5  ;;  %v670_v60 = vrot.slane %v668_v51, 5  ;;  %v930_v45 = vld [vmem:[%s5107_s28 + $0x18] sm:$0xe] }
  0x67   : > { %4607 = vmatpush3.bf16.msra.mxu0 %v4928_v7  ;;  %4479 = vmatpush3.bf16.msra.mxu1 %v4927_v2  ;;  %v2105_v59 = vsel %vm5252_vm5, %v2103_v50, %v2104_v44  ;;  %v674_v61 = vrot.slane %v672_v52, 4  ;;  %v678_v62 = vshll.u32 %v486_v48, 16  ;;  %v647_v2 = vsel %vm5130_vm2, %v642_v54, %v646_v37  ;;  %v4933_v44 = vld [vmem:[%s5107_s28 + $0x24] sm:$0xff]   ;;  %v931_v46 = vld [vmem:[%s5107_s28 + $0x1c] sm:$0xf] }
  0x68   : > { %4608 = vmatprep.subr.bf16.mxu0 %v4930_v27  ;;  %4480 = vmatprep.subr.bf16.mxu1 %v4929_v40  ;;  %v657_v3 = vsel %vm5130_vm2, %v652_v55, %v656_v41  ;;  %v3996_v4 = vcombine.low %v2102_v26, %v2105_v59  ;;  %v665_v5 = vor.u32 %v664_v57, %v661_v56  ;;  %v3973_v10 = vrot.slane %v3963_v58, 9  ;;  %v4935_v48 = vld [vmem:[%s5782_s1 + $0xc8] sm:$0xff]   ;;  %v932_v1 = vld [vmem:[%s5107_s28 + $0x20] sm:$0x1]  ;;  %v933_v54 = vld [vmem:[%s5107_s28 + $0x24] sm:$0xe] }
  0x69   : > { %v3786_v7 = vcombine.low %v647_v2, %v657_v3  ;;  %v675_v8 = vor.u32 %v674_v61, %v670_v60  ;;  %v680_v9 = vrot.slane %v678_v62, 5  ;;  %v2108_v12 = vrot.slane %v3964_v63, 5  ;;  %v4936_v51 = vld [vmem:[%s5782_s1 + $0x1c8] sm:$0xff]   ;;  %v4937_v63 = vld [vmem:[%s5107_s28 + $0x30] sm:$0xff]  }
  0x6a   : > { %4590 = vmatprep.mubr.bf16.mxu0 %v3996_v4  ;;  %v666_v11 = vrot.slane %v665_v5, 4  ;;  %v2111_v13 = vrot.slane %v3965_v6, 5  ;;  %v3796_v21 = vrot.slane %v924_v15, 9  ;;  %v977_v25 = vrot.slane %v925_v19, 5  ;;  %v934_v57 = vld [vmem:[%s5107_s28 + $0x28] sm:$0xf] }
  0x6b   : > { %4609 = vmatpush3.bf16.msra.mxu0 %v4930_v27  ;;  %4481 = vmatpush3.bf16.msra.mxu1 %v4929_v40  ;;  %v676_v14 = vrot.slane %v675_v8, 4  ;;  %v2109_v17 = vsel %vm5252_vm5, %v3973_v10, %v2108_v12  ;;  %v2110_v18 = vrot.slane %v2108_v12, 4  ;;  %v980_v27 = vrot.slane %v926_v20, 5  ;;  %v935_v58 = vld [vmem:[%s5107_s28 + $0x2c] sm:$0x1]  ;;  %v4938_v5 = vld [vmem:[%s5782_s1 + $0xd0] sm:$0xff]  }
  0x6c   : > { %4626 = vmatprep.subr.bf16.mxu0 %v5411_v0  ;;  %4498 = vmatprep.subr.bf16.mxu1 %v5402_v53  ;;  %v671_v16 = vsel %vm5130_vm2, %v666_v11, %v670_v60  ;;  %v978_v35 = vsel %vm5252_vm5, %v3796_v21, %v977_v25  ;;  %v979_v36 = vrot.slane %v977_v25, 4  ;;  %v3797_v37 = vrot.slane %v927_v30, 9  ;;  %v937_v10 = vld [vmem:[%s5107_s28 + $0x34] sm:$0xf]  ;;  %v938_v11 = vld [vmem:[%s5107_s28 + $0x38] sm:$0x1] }
  0x6d   : > { %4462 = vmatprep.mubr.bf16.mxu1 %v3786_v7  ;;  %v681_v23 = vsel %vm5130_vm2, %v676_v14, %v680_v9  ;;  %v2112_v29 = vsel %vm5252_vm5, %v2110_v18, %v2111_v13  ;;  %v984_v38 = vrot.slane %v928_v31, 5  ;;  %v987_v39 = vrot.slane %v929_v32, 5  ;;  %v4940_v7 = vld [vmem:[%s5782_s1 + $0x1d0] sm:$0xff]   ;;  %v4942_v12 = vld [vmem:[%s5782_s1 + $0x1d8] sm:$0xff]   ;;  %v4943_v20 = vld [vmem:[%s5107_s28 + $0x48] sm:$0xff]  }
  0x6e   : > { %v3787_v28 = vcombine.low %v671_v16, %v681_v23  ;;  %v3997_v34 = vcombine.low %v2109_v17, %v2112_v29  ;;  %v981_v40 = vsel %vm5252_vm5, %v979_v36, %v980_v27  ;;  %v3798_v49 = vrot.slane %v930_v45, 9  ;;  %v936_v9 = vld [vmem:[%s5107_s28 + $0x30] sm:$0xe]  ;;  %v939_v16 = vld [vmem:[%s5107_s28 + $0x3c] sm:$0xe]  ;;  %v4944_v30 = vld [vmem:[%s5782_s1 + $0xe0] sm:$0xff]  }
  0x6f   : > { %v3820_v41 = vcombine.low %v978_v35, %v981_v40  ;;  %v985_v42 = vsel %vm5252_vm5, %v3797_v37, %v984_v38  ;;  %v986_v43 = vrot.slane %v984_v38, 4  ;;  %v991_v26 = vrot.slane %v931_v46, 5  ;;  %v940_v17 = vld [vmem:[%s5107_s28 + $0x40] sm:$0xf]  ;;  %v941_v21 = vld [vmem:[%s5107_s28 + $0x44] sm:$0x1] }
  0x70   : > { %4463 = vmatmul.mubr.bf16.gmra.mrb[12].mxu1 %v3787_v28  ;;  %4591 = vmatmul.mubr.bf16.gmra.mrb[12].mxu0 %v3997_v34  ;;  %v994_v52 = vrot.slane %v932_v1, 5  ;;  %v3799_v59 = vrot.slane %v933_v54, 9  ;;  %v998_v60 = vrot.slane %v934_v57, 5  ;;  %v1001_v61 = vrot.slane %v935_v58, 5  ;;  %v4945_v34 = vld [vmem:[%s5107_s28 + $0x54] sm:$0xff]   ;;  %v4946_v35 = vld [vmem:[%s5782_s1 + $0x1e0] sm:$0xff]  }
  0x71   : > { %4610 = vmatprep.mubr.bf16.mxu0 %v4931_v22  ;;  %4482 = vmatprep.mubr.bf16.mxu1 %v3820_v41  ;;  %v988_v47 = vsel %vm5252_vm5, %v986_v43, %v987_v39  ;;  %v992_v55 = vsel %vm5252_vm5, %v3798_v49, %v991_v26  ;;  %v993_v56 = vrot.slane %v991_v26, 4  ;;  %v3800_v13 = vrot.slane %v936_v9, 9  ;;  %v4947_v37 = vld [vmem:[%s5782_s1 + $0xe8] sm:$0xff]   ;;  %v944_v41 = vld [vmem:[%s5107_s28 + $0x50] sm:$0x1]  ;;  %v4949_v43 = vld [vmem:[%s5107_s28 + $0x60] sm:$0xff]  }
  0x72   : > { %v3821_v50 = vcombine.low %v985_v42, %v988_v47  ;;  %v999_v3 = vsel %vm5252_vm5, %v3799_v59, %v998_v60  ;;  %v1000_v4 = vrot.slane %v998_v60, 4  ;;  %v1005_v14 = vrot.slane %v937_v10, 5  ;;  %v942_v38 = vld [vmem:[%s5107_s28 + $0x48] sm:$0xe]  ;;  %v943_v40 = vld [vmem:[%s5107_s28 + $0x4c] sm:$0xf] }
  0x73   : > { %v995_v62 = vsel %vm5252_vm5, %v993_v56, %v994_v52  ;;  %v1008_v15 = vrot.slane %v938_v11, 5  ;;  %v3801_v22 = vrot.slane %v939_v16, 9  ;;  %v1012_v23 = vrot.slane %v940_v17, 5  ;;  %v4948_v39 = vld [vmem:[%s5782_s1 + $0x1e8] sm:$0xff]   ;;  %v945_v46 = vld [vmem:[%s5107_s28 + $0x54] sm:$0xe] }
  0x74   : > { %v3822_v2 = vcombine.low %v992_v55, %v995_v62  ;;  %v1002_v6 = vsel %vm5252_vm5, %v1000_v4, %v1001_v61  ;;  %v1006_v18 = vsel %vm5252_vm5, %v3800_v13, %v1005_v14  ;;  %v1007_v19 = vrot.slane %v1005_v14, 4  ;;  %v946_v47 = vld [vmem:[%s5107_s28 + $0x58] sm:$0xf]  ;;  %v4950_v52 = vld [vmem:[%s5782_s1 + $0xf0] sm:$0xff]   ;;  %v4057_v4 = vld [vmem:[%s5107_s28 + $0x1c] sm:$0xf] }
  0x75   : > { %v3823_v8 = vcombine.low %v999_v3, %v1002_v6  ;;  %v1015_v25 = vrot.slane %v941_v21, 5  ;;  %v1013_v28 = vsel %vm5252_vm5, %v3801_v22, %v1012_v23  ;;  %v1014_v29 = vrot.slane %v1012_v23, 4  ;;  %v4952_v57 = vld [vmem:[%s5782_s1 + $0x1f0] sm:$0xff]   ;;  %v4953_v61 = vld [vmem:[%s5782_s1 + $0xf8] sm:$0xff]   ;;  %v4059_v13 = vld [vmem:[%s5107_s28 + $0x24] sm:$0xf] }
  0x76   : > { %v1009_v27 = vsel %vm5252_vm5, %v1007_v19, %v1008_v15  ;;  %v3802_v42 = vrot.slane %v942_v38, 9  ;;  %v1022_v45 = vrot.slane %v944_v41, 5  ;;  %v3803_v26 = vrot.slane %v945_v46, 9  ;;  %v4951_v59 = vld [vmem:[%s5107_s28 + $0x6c] sm:$0xff]   ;;  %v4056_v3 = vld [vmem:[%s5107_s28 + $0x18] sm:$0xf] }
  0x77   : > { %v3824_v31 = vcombine.low %v1006_v18, %v1009_v27  ;;  %v1016_v32 = vsel %vm5252_vm5, %v1014_v29, %v1015_v25  ;;  %v2658_v6 = vshrl.u32 %v4056_v3, 16  ;;  %v4956_v15 = vld [vmem:[%s5107_s28 + $0x18] sm:$0xff]   ;;  %v4060_v16 = vld [vmem:[%s5107_s28 + $0x28] sm:$0xf]  ;;  %v4061_v17 = vld [vmem:[%s5107_s28 + $0x2c] sm:$0x1] }
  0x78   : > { %4483 = vmatmul.mubr.bf16.vlgmr.msra.gmra.mrb[0].mxu1 %v3821_v50  ;;  %4611 = vmatmul.mubr.bf16.vlgmr.msra.gmra.mrb[0].mxu0 %v4933_v44  ;;  %v3825_v36 = vcombine.low %v1013_v28, %v1016_v32  ;;  %v1019_v44 = vrot.slane %v943_v40, 5  ;;  %v1026_v50 = vrot.slane %v946_v47, 5  ;;  %v2682_v18 = vshrl.u32 %v4059_v13, 16  ;;  %v4957_v28 = vld [vmem:[%s5782_s1 + $0x200] sm:$0xff]   ;;  %v4062_v41 = vld [vmem:[%s5107_s28 + $0x30] sm:$0xf] }
  0x79   : > { %4499 = vmatpush3.bf16.msra.mxu1 %v5402_v53  ;;  %4627 = vmatpush3.bf16.msra.mxu0 %v5411_v0  ;;  %v4939_v53 = vld [vmem:[%s5107_s28 + $0x3c] sm:$0xff]   ;;  %v2660_v9 = vrot.slane %v2658_v6, 4  ;;  %v2685_v21 = vshll.u32 %v4059_v13, 16  ;;  %v2691_v22 = vshll.u32 %v4060_v16, 16  ;;  %v2695_v25 = vshrl.u32 %v4060_v16, 16 }
  0x7a   : > { %4500 = vmatprep.subr.bf16.mxu1 %v4935_v48  ;;  %4628 = vmatprep.subr.bf16.mxu0 %v4936_v51  ;;  %v4941_v0 = vld [vmem:[%s5782_s1 + $0xd8] sm:$0xff]   ;;  %v1020_v1 = vsel %vm5252_vm5, %v3802_v42, %v1019_v44  ;;  %v1021_v49 = vrot.slane %v1019_v44, 4  ;;  %v1027_v55 = vsel %vm5252_vm5, %v3803_v26, %v1026_v50  ;;  %v1028_v56 = vrot.slane %v1026_v50, 4  ;;  %v4063_v42 = vld [vmem:[%s5107_s28 + $0x34] sm:$0xf] }
  0x7b   : > { %4486 = vmatprep.mubr.bf16.mxu1 %v3822_v2  ;;  %4614 = vmatprep.mubr.bf16.mxu0 %v4937_v63  ;;  %v4954_v63 = vld [vmem:[%s5782_s1 + $0x1f8] sm:$0xff]   ;;  %v4955_v2 = vld [vmem:[%s5107_s28 + $0xc] sm:$0xff]   ;;  %v2684_v23 = vrot.slane %v2682_v18, 4  ;;  %v2701_v27 = vshll.u32 %v4061_v17, 16  ;;  %v2693_v32 = vrot.slane %v2691_v22, 5  ;;  %v2706_v46 = vshrl.u32 %v4062_v41, 16 }
  0x7c   : > { %v1023_v54 = vsel %vm5252_vm5, %v1021_v49, %v1022_v45  ;;  %v4064_v45 = vld [vmem:[%s5107_s28 + $0x38] sm:$0x1]  ;;  %v2709_v47 = vshll.u32 %v4062_v41, 16  ;;  %v2719_v49 = vshrl.u32 %v4063_v42, 16  ;;  %v4963_v18 = vld [vmem:[%s5107_s28 + $0x3c] sm:$0xff]  }
  0x7d   : > { %4501 = vmatpush3.bf16.msra.mxu1 %v4935_v48  ;;  %4629 = vmatpush3.bf16.msra.mxu0 %v4936_v51  ;;  %v947_v48 = vld [vmem:[%s5107_s28 + $0x5c] sm:$0x1]  ;;  %v3826_v58 = vcombine.low %v1020_v1, %v1023_v54  ;;  %v2715_v1 = vshll.u32 %v4063_v42, 16  ;;  %v2725_v26 = vshll.u32 %v4064_v45, 16  ;;  %v4960_v54 = vld [vmem:[%s5107_s28 + $0x30] sm:$0xff]  }
  0x7e   : > { %4502 = vmatprep.subr.bf16.mxu1 %v4938_v5  ;;  %4630 = vmatprep.subr.bf16.mxu0 %v4940_v7  ;;  %v1029_v51 = vrot.slane %v947_v48, 5  ;;  %v4069_v22 = vld [vmem:[%s5107_s28 + $0x4c] sm:$0xf]  ;;  %v4071_v42 = vld [vmem:[%s5107_s28 + $0x54] sm:$0xf] }
  0x80   : > { %4487 = vmatmul.mubr.bf16.gmra.mrb[4].mxu1 %v3823_v8  ;;  %4615 = vmatmul.mubr.bf16.gmra.mrb[4].mxu0 %v4939_v53  ;;  %v1030_v60 = vsel %vm5252_vm5, %v1028_v56, %v1029_v51  ;;  %v2661_v53 = vshll.u32 %v4056_v3, 16  ;;  %v2671_v8 = vshrl.u32 %v4057_v4, 16  ;;  %v2708_v51 = vrot.slane %v2706_v46, 4 }
  0x81   : > { %4503 = vmatpush3.bf16.msra.mxu1 %v4938_v5  ;;  %4631 = vmatpush3.bf16.msra.mxu0 %v4940_v7  ;;  %v3827_v62 = vcombine.low %v1027_v55, %v1030_v60  ;;  %v4058_v5 = vld [vmem:[%s5107_s28 + $0x20] sm:$0x1]  ;;  %v2667_v7 = vshll.u32 %v4057_v4, 16  ;;  %v4065_v55 = vld [vmem:[%s5107_s28 + $0x3c] sm:$0xf] }
  0x82   : > { %4504 = vmatprep.subr.bf16.mxu1 %v4941_v0  ;;  %4632 = vmatprep.subr.bf16.mxu0 %v4942_v12  ;;  %v2663_v10 = vrot.slane %v2661_v53, 5  ;;  %v4066_v60 = vld [vmem:[%s5107_s28 + $0x40] sm:$0xf]  ;;  %v2730_v3 = vshrl.u32 %v4065_v55, 16  ;;  %v2733_v4 = vshll.u32 %v4065_v55, 16 }
  0x83   : > { %4618 = vmatprep.mubr.bf16.mxu0 %v4943_v20  ;;  %4490 = vmatprep.mubr.bf16.mxu1 %v3824_v31  ;;  %v2669_v11 = vrot.slane %v2667_v7, 5  ;;  %v2687_v31 = vrot.slane %v2685_v21, 5  ;;  %v2739_v53 = vshll.u32 %v4066_v60, 16  ;;  %v2743_v7 = vshrl.u32 %v4066_v60, 16  ;;  %v4967_v60 = vld [vmem:[%s5107_s28 + $0x54] sm:$0xff]  }
  0x84   : > { %v2664_v19 = vor.u32 %v2663_v10, %v2660_v9  ;;  %v2735_v9 = vrot.slane %v2733_v4, 5 }
  0x85   : > { %4505 = vmatpush3.bf16.msra.mxu1 %v4941_v0  ;;  %4633 = vmatpush3.bf16.msra.mxu0 %v4942_v12  ;;  %v2677_v0 = vshll.u32 %v4058_v5, 16  ;;  %v2673_v12 = vrot.slane %v2671_v8, 4  ;;  %v2688_v40 = vor.u32 %v2687_v31, %v2684_v23  ;;  %v2745_v13 = vrot.slane %v2743_v7, 4  ;;  %v4070_v23 = vld [vmem:[%s5107_s28 + $0x50] sm:$0x1] }
  0x86   : > { %4506 = vmatprep.subr.bf16.mxu1 %v4944_v30  ;;  %4634 = vmatprep.subr.bf16.mxu0 %v4946_v35  ;;  %v2665_v29 = vrot.slane %v2664_v19, 4  ;;  %v4068_v19 = vld [vmem:[%s5107_s28 + $0x48] sm:$0xf]  ;;  %v2767_v31 = vshrl.u32 %v4069_v22, 16 }
  0x87   : > { %v2679_v14 = vrot.slane %v2677_v0, 5  ;;  %v2674_v20 = vor.u32 %v2673_v12, %v2669_v11  ;;  %v2689_v48 = vrot.slane %v2688_v40, 4  ;;  %v2732_v0 = vrot.slane %v2730_v3, 4 }
  0x88   : > { %4491 = vmatmul.mubr.bf16.gmra.mrb[8].mxu1 %v3825_v36  ;;  %4619 = vmatmul.mubr.bf16.gmra.mrb[8].mxu0 %v4945_v34  ;;  %v2697_v34 = vrot.slane %v2695_v25, 4  ;;  %v5550_v36 = vld [vmem:[%s5782_s1 + $0x208] sm:$0xff]   ;;  %v2670_v38 = vsel %vm5130_vm2, %v2665_v29, %v2669_v11  ;;  %v2741_v12 = vrot.slane %v2739_v53, 5  ;;  %v2754_v25 = vshrl.u32 %v4068_v19, 16 }
  0x89   : > { %4507 = vmatpush3.bf16.msra.mxu1 %v4944_v30  ;;  %4635 = vmatpush3.bf16.msra.mxu0 %v4946_v35  ;;  %v2675_v30 = vrot.slane %v2674_v20, 4  ;;  %v2703_v35 = vrot.slane %v2701_v27, 5  ;;  %v2694_v56 = vsel %vm5130_vm2, %v2689_v48, %v2693_v32  ;;  %v2736_v16 = vor.u32 %v2735_v9, %v2732_v0  ;;  %v4076_v53 = vld [vmem:[%s5107_s28 + $0x68] sm:$0x1] }
  0x8a   : > { %4508 = vmatprep.subr.bf16.mxu1 %v4947_v37  ;;  %4636 = vmatprep.subr.bf16.mxu0 %v4948_v39  ;;  %v2698_v44 = vor.u32 %v2697_v34, %v2693_v32  ;;  %v2746_v21 = vor.u32 %v2745_v13, %v2741_v12  ;;  %v2757_v27 = vshll.u32 %v4068_v19, 16  ;;  %v4964_v32 = vld [vmem:[%s5107_s28 + $0x48] sm:$0xff]   ;;  %v2769_v41 = vrot.slane %v2767_v31, 4  ;;  %v4968_v13 = vld [vmem:[%s5107_s28 + $0x60] sm:$0xff]  }
  0x8b   : > { %4622 = vmatprep.mubr.bf16.mxu0 %v4949_v43  ;;  %4494 = vmatprep.mubr.bf16.mxu1 %v3826_v58  ;;  %v2721_v58 = vrot.slane %v2719_v49, 4  ;;  %v2737_v29 = vrot.slane %v2736_v16, 4  ;;  %v2778_v48 = vshrl.u32 %v4071_v42, 16  ;;  %v2781_v49 = vshll.u32 %v4071_v42, 16  ;;  %v4077_v19 = vld [vmem:[%s5107_s28 + $0x6c] sm:$0xf] }
  0x8c   : > { %v2699_v50 = vrot.slane %v2698_v44, 4  ;;  %v2747_v34 = vrot.slane %v2746_v21, 4  ;;  %v2829_v31 = vshll.u32 %v4077_v19, 16 }
  0x8d   : > { %4509 = vmatpush3.bf16.msra.mxu1 %v4947_v37  ;;  %4637 = vmatpush3.bf16.msra.mxu0 %v4948_v39  ;;  %v4959_v37 = vld [vmem:[%s5107_s28 + $0x24] sm:$0xff]   ;;  %v2680_v39 = vsel %vm5130_vm2, %v2675_v30, %v2679_v14  ;;  %v5579_v14 = vld [vmem:[%s5782_s1 + $0x218] sm:$0xff]   ;;  %v2763_v30 = vshll.u32 %v4069_v22, 16 }
  0x8e   : > { %4510 = vmatprep.subr.bf16.mxu1 %v4950_v52  ;;  %4638 = vmatprep.subr.bf16.mxu0 %v4952_v57  ;;  %v4096_v43 = vcombine.low %v2670_v38, %v2680_v39  ;;  %v2773_v38 = vshll.u32 %v4070_v23, 16  ;;  %v2742_v39 = vsel %vm5130_vm2, %v2737_v29, %v2741_v12  ;;  %v2821_v12 = vshll.u32 %v4076_v53, 16  ;;  %v4079_v29 = vld [vmem:[%s5107_s28 + $0x74] sm:$0x1] }
  0x8f   : > { %v2765_v40 = vrot.slane %v2763_v30, 5  ;;  %v2826_v30 = vshrl.u32 %v4077_v19, 16  ;;  %v4129_v19 = vld [vmem:[%s5107_s28 + $0x5c] sm:$0x1] }
  0x90   : > { %4495 = vmatmul.mubr.bf16.gmra.mrb[12].mxu1 %v3827_v62  ;;  %4623 = vmatmul.mubr.bf16.gmra.mrb[12].mxu0 %v4951_v59  ;;  %v2727_v59 = vrot.slane %v2725_v26, 5  ;;  %v2704_v62 = vsel %vm5130_vm2, %v2699_v50, %v2703_v35  ;;  %v2756_v35 = vrot.slane %v2754_v25, 4  ;;  %v2775_v46 = vrot.slane %v2773_v38, 5  ;;  %v4965_v50 = vld [vmem:[%s5782_s1 + $0x220] sm:$0xff]   ;;  %v4078_v25 = vld [vmem:[%s5107_s28 + $0x70] sm:$0xf] }
  0x91   : > { %4511 = vmatpush3.bf16.msra.mxu1 %v4950_v52  ;;  %4639 = vmatpush3.bf16.msra.mxu0 %v4952_v57  ;;  %v2711_v52 = vrot.slane %v2709_v47, 5  ;;  %v2717_v57 = vrot.slane %v2715_v1, 5  ;;  %v4097_v5 = vcombine.low %v2694_v56, %v2704_v62  ;;  %v4073_v47 = vld [vmem:[%s5107_s28 + $0x5c] sm:$0x1]  ;;  %v2770_v1 = vor.u32 %v2769_v41, %v2765_v40 }
  0x92   : > { %4512 = vmatprep.subr.bf16.mxu1 %v4953_v61  ;;  %4640 = vmatprep.subr.bf16.mxu0 %v4954_v63  ;;  %v2797_v56 = vshll.u32 %v4073_v47, 16  ;;  %v2823_v23 = vrot.slane %v2821_v12, 5  ;;  %v2845_v41 = vshll.u32 %v4079_v29, 16  ;;  %v4127_v12 = vld [vmem:[%s5107_s28 + $0x54] sm:$0xe] }
  0x93   : > { %4514 = vmatprep.mubr.bf16.mxu1 %v4955_v2  ;;  %4642 = vmatprep.mubr.bf16.mxu0 %v4096_v43  ;;  %v4067_v2 = vld [vmem:[%s5107_s28 + $0x44] sm:$0x1]  ;;  %v2722_v6 = vor.u32 %v2721_v58, %v2717_v57  ;;  %v4072_v43 = vld [vmem:[%s5107_s28 + $0x58] sm:$0xf]  ;;  %v2783_v58 = vrot.slane %v2781_v49, 5  ;;  %v4141_v33 = vrot.slane %v4127_v12, 9 }
  0x94   : > { %v2749_v10 = vshll.u32 %v4067_v2, 16  ;;  %v2787_v26 = vshll.u32 %v4072_v43, 16  ;;  %v2791_v55 = vshrl.u32 %v4072_v43, 16  ;;  %v2799_v2 = vrot.slane %v2797_v56, 5  ;;  %v4125_v56 = vld [vmem:[%s5107_s28 + $0x4c] sm:$0xf] }
  0x95   : > { %4513 = vmatpush3.bf16.msra.mxu1 %v4953_v61  ;;  %4641 = vmatpush3.bf16.msra.mxu0 %v4954_v63  ;;  %v5569_v61 = vld [vmem:[%s5782_s1 + $0x210] sm:$0xff]   ;;  %v2712_v63 = vor.u32 %v2711_v52, %v2708_v51  ;;  %v2723_v11 = vrot.slane %v2722_v6, 4  ;;  %v5609_v51 = vld [vmem:[%s5782_s1 + $0x228] sm:$0xff]   ;;  %v4075_v6 = vld [vmem:[%s5107_s28 + $0x64] sm:$0xf] }
  0x96   : > { %4690 = vmatprep.subr.bf16.mxu1 %v4957_v28  ;;  %4658 = vmatprep.subr.bf16.mxu0 %v4957_v28  ;;  %v2751_v17 = vrot.slane %v2749_v10, 5  ;;  %v2811_v10 = vshll.u32 %v4075_v6, 16 }
  0x97   : > { %v2713_v8 = vrot.slane %v2712_v63, 4  ;;  %v2728_v20 = vsel %vm5130_vm2, %v2723_v11, %v2727_v59  ;;  %v2789_v59 = vrot.slane %v2787_v26, 5  ;;  %v2793_v63 = vrot.slane %v2791_v55, 4  ;;  %v4124_v55 = vld [vmem:[%s5107_s28 + $0x48] sm:$0xe] }
  0x98   : > { %4515 = vmatmul.mubr.bf16.vlgmr.msra.gmra.mrb[0].mxu1 %v4956_v15  ;;  %4643 = vmatmul.mubr.bf16.vlgmr.msra.gmra.mrb[0].mxu0 %v4097_v5  ;;  %v2752_v44 = vsel %vm5130_vm2, %v2747_v34, %v2751_v17  ;;  %v4074_v5 = vld [vmem:[%s5107_s28 + $0x60] sm:$0xf]  ;;  %v2815_v11 = vshrl.u32 %v4075_v6, 16  ;;  %v2813_v21 = vrot.slane %v2811_v10, 5 }
  0x99   : > { %4698 = vmatpush3.bf16.msra.mxu1 %v4957_v28  ;;  %4518 = vmatprep.mubr.bf16.mxu1 %v4959_v37  ;;  %v2718_v15 = vsel %vm5130_vm2, %v2713_v8, %v2717_v57  ;;  %v2759_v37 = vrot.slane %v2757_v27, 5  ;;  %v2771_v57 = vrot.slane %v2770_v1, 4  ;;  %v2794_v8 = vor.u32 %v2793_v63, %v2789_v59  ;;  %v4114_v1 = vld [vmem:[%s5107_s28 + $0x20] sm:$0x1] }
  0x9a   : > { %4691 = vmatprep.subr.bf16.mxu1 %v5550_v36  ;;  %4659 = vmatpush3.bf16.msra.mxu0 %v4957_v28  ;;  %v4098_v28 = vcombine.low %v2718_v15, %v2728_v20  ;;  %v2805_v0 = vshll.u32 %v4074_v5, 16  ;;  %v5626_v15 = vld [vmem:[%s5782_s1 + $0x230] sm:$0xff]   ;;  %v2817_v22 = vrot.slane %v2815_v11, 4 }
  0x9b   : > { %4660 = vmatprep.subr.bf16.mxu0 %v5550_v36  ;;  %v2760_v45 = vor.u32 %v2759_v37, %v2756_v35  ;;  %v2776_v3 = vsel %vm5130_vm2, %v2771_v57, %v2775_v46  ;;  %v2795_v16 = vrot.slane %v2794_v8, 4  ;;  %v2835_v35 = vshll.u32 %v4078_v25, 16  ;;  %v4117_v8 = vld [vmem:[%s5107_s28 + $0x2c] sm:$0x1] }
  0x9c   : > { %4646 = vmatprep.mubr.bf16.mxu0 %v4098_v28  ;;  %v2818_v34 = vor.u32 %v2817_v22, %v2813_v21  ;;  %v2839_v37 = vshrl.u32 %v4078_v25, 16  ;;  %v3151_v11 = vrot.slane %v4117_v8, 5 }
  0x9d   : > { %4699 = vmatpush3.bf16.msra.mxu1 %v5550_v36  ;;  %v2761_v52 = vrot.slane %v2760_v45, 4  ;;  %v2800_v27 = vsel %vm5130_vm2, %v2795_v16, %v2799_v2  ;;  %v2837_v43 = vrot.slane %v2835_v35, 5  ;;  %v4112_v45 = vld [vmem:[%s5107_s28 + $0x18] sm:$0xe] }
  0x9e   : > { %4692 = vmatprep.subr.bf16.mxu1 %v5569_v61  ;;  %4661 = vmatpush3.bf16.msra.mxu0 %v5550_v36  ;;  %v4099_v36 = vcombine.low %v2742_v39, %v2752_v44  ;;  %v2828_v39 = vrot.slane %v2826_v30, 4  ;;  %v2819_v42 = vrot.slane %v2818_v34, 4  ;;  %v2841_v44 = vrot.slane %v2839_v37, 4 }
  0x9f   : > { %4662 = vmatprep.subr.bf16.mxu0 %v5569_v61  ;;  %v2766_v62 = vsel %vm5130_vm2, %v2761_v52, %v2765_v40  ;;  %v2831_v40 = vrot.slane %v2829_v31, 5  ;;  %v4136_v49 = vrot.slane %v4112_v45, 9  ;;  %v4122_v45 = vld [vmem:[%s5107_s28 + $0x40] sm:$0xf] }
  0xa0   : > { %4519 = vmatmul.mubr.bf16.gmra.mrb[4].mxu1 %v4960_v54  ;;  %v2780_v54 = vrot.slane %v2778_v48, 4  ;;  %4647 = vmatmul.mubr.bf16.gmra.mrb[4].mxu0 %v4099_v36  ;;  %v4100_v7 = vcombine.low %v2766_v62, %v2776_v3  ;;  %v2847_v48 = vrot.slane %v2845_v41, 5  ;;  %v4113_v36 = vld [vmem:[%s5107_s28 + $0x1c] sm:$0xf]  ;;  %v2824_v26 = vsel %vm5130_vm2, %v2819_v42, %v2823_v23 }
  0xa1   : > { %4700 = vmatpush3.bf16.msra.mxu1 %v5569_v61  ;;  %4522 = vmatprep.mubr.bf16.mxu1 %v4963_v18  ;;  %v2807_v18 = vrot.slane %v2805_v0, 5  ;;  %v2832_v47 = vor.u32 %v2831_v40, %v2828_v39  ;;  %v3141_v52 = vrot.slane %v4113_v36, 5  ;;  %v3169_v62 = vrot.slane %v4125_v56, 5  ;;  %v4132_v39 = vld [vmem:[%s5107_s28 + $0x68] sm:$0x1] }
  0xa2   : > { %4693 = vmatprep.subr.bf16.mxu1 %v5579_v14  ;;  %4663 = vmatpush3.bf16.msra.mxu0 %v5569_v61  ;;  %v2784_v4 = vor.u32 %v2783_v58, %v2780_v54  ;;  %v2802_v61 = vshrl.u32 %v4074_v5, 16  ;;  %v3144_v54 = vrot.slane %v4114_v1, 5  ;;  %v4115_v5 = vld [vmem:[%s5107_s28 + $0x24] sm:$0xe]  ;;  %v4123_v36 = vld [vmem:[%s5107_s28 + $0x44] sm:$0x1] }
  0xa3   : > { %4664 = vmatprep.subr.bf16.mxu0 %v5579_v14  ;;  %4650 = vmatprep.mubr.bf16.mxu0 %v4100_v7  ;;  %v2833_v58 = vrot.slane %v2832_v47, 4  ;;  %v3142_v2 = vsel %vm5252_vm5, %v4136_v49, %v3141_v52  ;;  %v3143_v3 = vrot.slane %v3141_v52, 4  ;;  %v3171_v53 = vrot.slane %v3169_v62, 4  ;;  %v4116_v7 = vld [vmem:[%s5107_s28 + $0x28] sm:$0xf] }
  0xa4   : > { %v2785_v9 = vrot.slane %v2784_v4, 4  ;;  %v2804_v17 = vrot.slane %v2802_v61, 4  ;;  %v4137_v61 = vrot.slane %v4115_v5, 9  ;;  %v3148_v10 = vrot.slane %v4116_v7, 5  ;;  %v4133_v52 = vld [vmem:[%s5107_s28 + $0x6c] sm:$0xe] }
  0xa5   : > { %4701 = vmatpush3.bf16.msra.mxu1 %v5579_v14  ;;  %v3162_v1 = vrot.slane %v4122_v45, 5 }
  0xa6   : > { %4694 = vmatprep.subr.bf16.mxu1 %v4965_v50  ;;  %4665 = vmatpush3.bf16.msra.mxu0 %v5579_v14  ;;  %v2790_v20 = vsel %vm5130_vm2, %v2785_v9, %v2789_v59  ;;  %v5637_v14 = vld [vmem:[%s5782_s1 + $0x238] sm:$0xff]   ;;  %v2808_v28 = vor.u32 %v2807_v18, %v2804_v17  ;;  %v4126_v59 = vld [vmem:[%s5107_s28 + $0x50] sm:$0x1]  ;;  %v3145_v9 = vsel %vm5252_vm5, %v3143_v3, %v3144_v54  ;;  %v3150_v23 = vrot.slane %v3148_v10, 4 }
  0xa7   : > { %4666 = vmatprep.subr.bf16.mxu0 %v4965_v50  ;;  %v3172_v4 = vrot.slane %v4126_v59, 5  ;;  %v4160_v17 = vcombine.low %v3142_v2, %v3145_v9  ;;  %v3149_v22 = vsel %vm5252_vm5, %v4137_v61, %v3148_v10  ;;  %v4134_v54 = vld [vmem:[%s5107_s28 + $0x70] sm:$0xf]  ;;  %v4135_v59 = vld [vmem:[%s5107_s28 + $0x74] sm:$0x1] }
  0xa8   : > { %4523 = vmatmul.mubr.bf16.gmra.mrb[8].mxu1 %v4964_v32  ;;  %v4101_v32 = vcombine.low %v2790_v20, %v2800_v27  ;;  %v2809_v38 = vrot.slane %v2808_v28, 4  ;;  %v4118_v20 = vld [vmem:[%s5107_s28 + $0x30] sm:$0xe]  ;;  %v4119_v27 = vld [vmem:[%s5107_s28 + $0x34] sm:$0xf]  ;;  %v3179_v28 = vrot.slane %v4129_v19, 5  ;;  %v3152_v34 = vsel %vm5252_vm5, %v3150_v23, %v3151_v11 }
  0xa9   : > { %4702 = vmatpush3.bf16.msra.mxu1 %v4965_v50  ;;  %4526 = vmatprep.mubr.bf16.mxu1 %v4967_v60  ;;  %v4140_v60 = vrot.slane %v4124_v55, 9  ;;  %v3173_v18 = vsel %vm5252_vm5, %v3171_v53, %v3172_v4  ;;  %v4138_v29 = vrot.slane %v4118_v20, 9  ;;  %v3155_v30 = vrot.slane %v4119_v27, 5 }
  0xaa   : > { %4695 = vmatprep.subr.bf16.mxu1 %v5609_v51  ;;  %4667 = vmatpush3.bf16.msra.mxu0 %v4965_v50  ;;  %v2814_v46 = vsel %vm5130_vm2, %v2809_v38, %v2813_v21  ;;  %v2842_v50 = vor.u32 %v2841_v44, %v2837_v43  ;;  %v4131_v38 = vld [vmem:[%s5107_s28 + $0x64] sm:$0xf]  ;;  %v4121_v44 = vld [vmem:[%s5107_s28 + $0x3c] sm:$0xe]  ;;  %v3193_v2 = vrot.slane %v4135_v59, 5 }
  0xab   : > { %4651 = vmatmul.mubr.bf16.gmra.mrb[8].mxu0 %v4101_v32  ;;  %4668 = vmatprep.subr.bf16.mxu0 %v5609_v51  ;;  %v4102_v57 = vcombine.low %v2814_v46, %v2824_v26  ;;  %v3170_v6 = vsel %vm5252_vm5, %v4140_v60, %v3169_v62  ;;  %v4130_v32 = vld [vmem:[%s5107_s28 + $0x60] sm:$0xe]  ;;  %v3156_v41 = vsel %vm5252_vm5, %v4138_v29, %v3155_v30  ;;  %v3157_v42 = vrot.slane %v3155_v30, 4 }
  0xac   : > { %v2843_v63 = vrot.slane %v2842_v50, 4  ;;  %v4164_v21 = vcombine.low %v3170_v6, %v3173_v18  ;;  %v4142_v40 = vrot.slane %v4130_v32, 9  ;;  %v4161_v46 = vcombine.low %v3149_v22, %v3152_v34 }
  0xad   : > { %4703 = vmatpush3.bf16.msra.mxu1 %v5609_v51  ;;  %4654 = vmatprep.mubr.bf16.mxu0 %v4102_v57  ;;  %v4139_v56 = vrot.slane %v4121_v44, 9  ;;  %v3164_v57 = vrot.slane %v3162_v1, 4  ;;  %v4143_v62 = vrot.slane %v4133_v52, 9 }
  0xae   : > { %4696 = vmatprep.subr.bf16.mxu1 %v5626_v15  ;;  %4669 = vmatpush3.bf16.msra.mxu0 %v5609_v51  ;;  %v2838_v51 = vsel %vm5130_vm2, %v2833_v58, %v2837_v43  ;;  %v2848_v0 = vsel %vm5130_vm2, %v2843_v63, %v2847_v48  ;;  %v3183_v43 = vrot.slane %v4131_v38, 5  ;;  %v3186_v48 = vrot.slane %v4132_v39, 5 }
  0xaf   : > { %4670 = vmatprep.subr.bf16.mxu0 %v5626_v15  ;;  %v4103_v16 = vcombine.low %v2838_v51, %v2848_v0  ;;  %v3165_v58 = vrot.slane %v4123_v36, 5  ;;  %v3190_v63 = vrot.slane %v4134_v54, 5  ;;  %v3163_v51 = vsel %vm5252_vm5, %v4139_v56, %v3162_v1 }
  0xb0   : > { %4527 = vmatmul.mubr.bf16.gmra.mrb[12].mxu1 %v4968_v13  ;;  %v4128_v13 = vld [vmem:[%s5107_s28 + $0x58] sm:$0xf]  ;;  %v3184_v26 = vsel %vm5252_vm5, %v4142_v40, %v3183_v43  ;;  %v3185_v50 = vrot.slane %v3183_v43, 4 }
  0xb1   : > { %4704 = vmatpush3.bf16.msra.mxu1 %v5626_v15  ;;  %v3176_v25 = vrot.slane %v4128_v13, 5  ;;  %4682 = vmatprep.mubr.bf16.mxu1 %v4164_v21  ;;  %v3191_v4 = vsel %vm5252_vm5, %v4143_v62, %v3190_v63  ;;  %v3192_v5 = vrot.slane %v3190_v63, 4  ;;  %v3166_v6 = vsel %vm5252_vm5, %v3164_v57, %v3165_v58 }
  0xb2   : > { %4697 = vmatprep.subr.bf16.mxu1 %v5637_v14  ;;  %4671 = vmatpush3.bf16.msra.mxu0 %v5626_v15  ;;  %v4120_v15 = vld [vmem:[%s5107_s28 + $0x38] sm:$0x1]  ;;  %v3187_v60 = vsel %vm5252_vm5, %v3185_v50, %v3186_v48  ;;  %v4163_v8 = vcombine.low %v3163_v51, %v3166_v6  ;;  %s3739_s28 = sshll.u32 %s4993_s12, 3  ;;  %s214_s12 = scalar_lea.vmem %s5784_s3, %s3744_s13 }
  0xb3   : > { %4672 = vmatprep.subr.bf16.mxu0 %v5637_v14  ;;  %4655 = vmatmul.mubr.bf16.gmra.mrb[12].mxu0 %v4103_v16  ;;  %v3158_v31 = vrot.slane %v4120_v15, 5  ;;  %v3177_v35 = vsel %vm5252_vm5, %v4141_v33, %v3176_v25  ;;  %v3178_v37 = vrot.slane %v3176_v25, 4  ;;  %v4166_v3 = vcombine.low %v3184_v26, %v3187_v60  ;;  %p201_p6 = scmp.lt.s32.totalorder %s3739_s28, 15 }
  0xb4   : > { %4674 = vmatprep.mubr.bf16.mxu0 %v4160_v17  ;;  %v3194_v53 = vsel %vm5252_vm5, %v3192_v5, %v3193_v2 }
  0xb5   : > { %4705 = vmatpush3.bf16.msra.mxu1 %v5637_v14  ;;  %v3180_v47 = vsel %vm5252_vm5, %v3178_v37, %v3179_v28  ;;  %v4167_v7 = vcombine.low %v3191_v4, %v3194_v53  ;;  %s5800_s28 = smov (!%p201_p6, %s3739_s28), 15 }
  0xb6   : > { %4673 = vmatpush3.bf16.msra.mxu0 %v5637_v14  ;;  %v4165_v49 = vcombine.low %v3177_v35, %v3180_v47  ;;  %v3159_v14 = vsel %vm5252_vm5, %v3157_v42, %v3158_v31  ;;  %s3740_s23 = sshll.u32 %s5800_s28, 1 }
  0xb7   : > { %v4162_v55 = vcombine.low %v3156_v41, %v3159_v14  ;;  %s205_s25 = sadd.s32 %s3741_s24, %s3740_s23 }
  0xb8   : > { %4683 = vmatmul.mubr.bf16.vlgmr.msra.gmra.mrb[16].mxu1 %v4165_v49  ;;  %s3742_s26 = sshll.u32 %s205_s25, 2 }
  0xb9   : > { %4686 = vmatprep.mubr.bf16.mxu1 %v4166_v3  ;;  %s5735_s30 = scalar_lea.vmem %s5783_s2, %s3742_s26 }
  0xbb   : > { %4675 = vmatmul.mubr.bf16.vlgmr.msra.gmra.mrb[0].mxu0 %v4161_v46 }
  0xbc   : > { %4678 = vmatprep.mubr.bf16.mxu0 %v4162_v55 }
  0xc0   : > { %4687 = vmatmul.mubr.bf16.gmra.mrb[20].mxu1 %v4167_v7 }
  0xc3   : > { %4679 = vmatmul.mubr.bf16.gmra.mrb[4].mxu0 %v4163_v8 }
 0x16b   : > { %v4516_v61 = vpop.f32.mrb[0].mxu1 }
 0x16c   : > { %v1440_v0 = vpop.f32.mrb[1].mxu1 }
 0x16d   : > { %v4517_v9 = vpop.f32.mrb[2].mxu1 }
 0x16e   : > { %v1443_v10 = vpop.f32.mrb[3].mxu1 }
 0x173   : > { %v5716_v11 = vpop.f32.mrb[4].mxu1 }
 0x174   : > { %v5718_v12 = vpop.f32.mrb[5].mxu1 }
 0x175   : > { %v5720_v13 = vpop.f32.mrb[6].mxu1 }
 0x176   : > { %v5722_v16 = vpop.f32.mrb[7].mxu1 }
 0x17b   : > { %v4524_v17 = vpop.f32.mrb[8].mxu1 }
 0x17c   : > { %v1472_v24 = vpop.f32.mrb[9].mxu1 }
 0x17d   : > { %v4525_v18 = vpop.f32.mrb[10].mxu1 }
 0x17e   : > { %v1475_v19 = vpop.f32.mrb[11].mxu1  ;;  %v4652_v21 = vpop.f32.mrb[8].mxu0 }
 0x17f   : > { %v4714_v23 = vadd.f32 %v4652_v21, %v4524_v17  ;;  %v3012_v25 = vpop.f32.mrb[9].mxu0 }
 0x180   : > { %v4716_v15 = vadd.f32 %v3012_v25, %v1472_v24  ;;  %v4653_v28 = vpop.f32.mrb[10].mxu0 }
 0x181   : > { %v4718_v29 = vadd.f32 %v4653_v28, %v4525_v18  ;;  %v3015_v30 = vpop.f32.mrb[11].mxu0 }
 0x182   : > { %v4720_v31 = vadd.f32 %v3015_v30, %v1475_v19 }
 0x183   : > { %v4528_v33 = vpop.f32.mrb[12].mxu1 }
 0x184   : > { %v1488_v20 = vpop.f32.mrb[13].mxu1 }
 0x185   : > { %v4529_v22 = vpop.f32.mrb[14].mxu1 }
 0x186   : > { %v1491_v27 = vpop.f32.mrb[15].mxu1  ;;  %v4656_v32 = vpop.f32.mrb[12].mxu0 }
 0x187   : > { %v4722_v34 = vadd.f32 %v4656_v32, %v4528_v33  ;;  %v3028_v35 = vpop.f32.mrb[13].mxu0 }
 0x188   : > { %v4724_v37 = vadd.f32 %v3028_v35, %v1488_v20  ;;  %v4657_v38 = vpop.f32.mrb[14].mxu0 }
 0x189   : > { %v4726_v39 = vadd.f32 %v4657_v38, %v4529_v22  ;;  %v3031_v40 = vpop.f32.mrb[15].mxu0 }
 0x18a   : > { %v4728_v41 = vadd.f32 %v3031_v40, %v1491_v27 }
 0x18b   : > { %v4684_v42 = vpop.f32.mrb[16].mxu1 }
 0x18c   : > { %v5726_v43 = vadd.f32 %v4714_v23, %v4684_v42  ;;  %v3358_v44 = vpop.f32.mrb[17].mxu1 }
 0x18d   : > { %v5728_v46 = vadd.f32 %v4716_v15, %v3358_v44  ;;  %v4685_v47 = vpop.f32.mrb[18].mxu1 }
 0x18e   : > { %v4676_v45 = vpop.f32.mrb[0].mxu0  ;;  %v5730_v1 = vadd.f32 %v4718_v29, %v4685_v47  ;;  %v3361_v49 = vpop.f32.mrb[19].mxu1  ;;  %v3564_v47 = vmul.f32 %v5726_v43, %v5726_v43 }
 0x18f   : > { %v4706_v48 = vadd.f32 %v4676_v45, %v4516_v61  ;;  %v3326_v36 = vpop.f32.mrb[1].mxu0  ;;  %v4721_v50 = vadd.f32 %v4720_v31, %v3361_v49 }
 0x190   : > { %v4707_v14 = vadd.f32 %v3326_v36, %v1440_v0  ;;  %v4677_v26 = vpop.f32.mrb[2].mxu0  ;;  %v4239_v54 = vpack.c.bf16 %v5730_v1, %v5726_v43  ;;  %v3565_v49 = vmul.f32 %v5730_v1, %v5730_v1 }
 0x191   : > { %v4708_v52 = vadd.f32 %v4677_v26, %v4517_v9  ;;  %v3329_v55 = vpop.f32.mrb[3].mxu0  ;;  %v4234_v57 = vpack.c.bf16 %v4721_v50, %v5728_v46  ;;  %v3556_v5 = vmul.f32 %v4706_v48, %v4706_v48  ;;  %v3563_v42 = vmul.f32 %v4721_v50, %v4721_v50 }
 0x192   : > { %v4709_v56 = vadd.f32 %v3329_v55, %v1443_v10  ;;  %4255 = vst [vmem:[%s5735_s30 + $0x28] sm:$0xff] %v4239_v54   ;;  %v3554_v59 = vmul.f32 %v4707_v14, %v4707_v14 }
 0x193   : > { %v4219_v58 = vpack.c.bf16 %v4708_v52, %v4706_v48  ;;  %4254 = vst [vmem:[%s5735_s30 + $0x20] sm:$0xff] %v4234_v57   ;;  %v4688_v2 = vpop.f32.mrb[20].mxu1  ;;  %v3557_v17 = vmul.f32 %v4708_v52, %v4708_v52 }
 0x194   : > { %v4214_v60 = vpack.c.bf16 %v4709_v56, %v4707_v14  ;;  %v3533_v62 = vadd.f32 %v4709_v56, %v4707_v14  ;;  %v3555_v63 = vmul.f32 %v4709_v56, %v4709_v56  ;;  %v4723_v3 = vadd.f32 %v4722_v34, %v4688_v2  ;;  %v3374_v4 = vpop.f32.mrb[21].mxu1 }
 0x195   : > { %4251 = vst [vmem:[%s5735_s30 + $0x8] sm:$0xff] %v4219_v58   ;;  %v4725_v7 = vadd.f32 %v4724_v37, %v3374_v4  ;;  %v4689_v8 = vpop.f32.mrb[22].mxu1 }
 0x196   : > { %4215 = vst [vmem:[%s5735_s30] sm:$0xff] %v4214_v60   ;;  %v3534_v51 = vadd.f32 %v4706_v48, %v3533_v62  ;;  %v3570_v6 = vadd.f32 %v3555_v63, %v3554_v59  ;;  %v4680_v53 = vpop.f32.mrb[4].mxu0  ;;  %v4727_v9 = vadd.f32 %v4726_v39, %v4689_v8  ;;  %v3377_v10 = vpop.f32.mrb[23].mxu1 }
 0x197   : > { %v4710_v61 = vadd.f32 %v4680_v53, %v5716_v11  ;;  %v3342_v0 = vpop.f32.mrb[5].mxu0  ;;  %v4729_v28 = vadd.f32 %v4728_v41, %v3377_v10 }
 0x198   : > { %v3571_v24 = vadd.f32 %v3570_v6, %v3556_v5  ;;  %v4711_v18 = vadd.f32 %v3342_v0, %v5718_v12  ;;  %v3535_v19 = vadd.f32 %v4708_v52, %v3534_v51  ;;  %v4681_v33 = vpop.f32.mrb[6].mxu0  ;;  %v4249_v21 = vpack.c.bf16 %v4727_v9, %v4723_v3 }
 0x199   : > { %v4712_v20 = vadd.f32 %v4681_v33, %v5720_v13  ;;  %v3345_v22 = vpop.f32.mrb[7].mxu0  ;;  %v4244_v32 = vpack.c.bf16 %v4729_v28, %v4725_v7  ;;  %v3560_v34 = vmul.f32 %v4710_v61, %v4710_v61  ;;  %v3566_v52 = vmul.f32 %v4725_v7, %v4725_v7 }
 0x19a   : > { %v3536_v23 = vadd.f32 %v4711_v18, %v3535_v19  ;;  %v3558_v25 = vmul.f32 %v4711_v18, %v4711_v18  ;;  %v3572_v11 = vadd.f32 %v3571_v24, %v3557_v17  ;;  %v4713_v27 = vadd.f32 %v3345_v22, %v5722_v16  ;;  %4257 = vst [vmem:[%s5735_s30 + $0x38] sm:$0xff] %v4249_v21  }
 0x19b   : > { %v4229_v15 = vpack.c.bf16 %v4712_v20, %v4710_v61  ;;  %4256 = vst [vmem:[%s5735_s30 + $0x30] sm:$0xff] %v4244_v32   ;;  %v3561_v37 = vmul.f32 %v4712_v20, %v4712_v20  ;;  %v3562_v16 = vmul.f32 %v5728_v46, %v5728_v46  ;;  %v3567_v56 = vmul.f32 %v4729_v28, %v4729_v28 }
 0x19c   : > { %v3573_v29 = vadd.f32 %v3572_v11, %v3558_v25  ;;  %v4224_v30 = vpack.c.bf16 %v4713_v27, %v4711_v18  ;;  %v3537_v12 = vadd.f32 %v4713_v27, %v3536_v23  ;;  %v3559_v31 = vmul.f32 %v4713_v27, %v4713_v27 }
 0x19d   : > { %4253 = vst [vmem:[%s5735_s30 + $0x18] sm:$0xff] %v4229_v15   ;;  %v3569_v60 = vmul.f32 %v4727_v9, %v4727_v9 }
 0x19e   : > { %4252 = vst [vmem:[%s5735_s30 + $0x10] sm:$0xff] %v4224_v30   ;;  %v3538_v13 = vadd.f32 %v4710_v61, %v3537_v12  ;;  %v3574_v35 = vadd.f32 %v3573_v29, %v3559_v31 }
 0x1a0   : > { %v3539_v38 = vadd.f32 %v4712_v20, %v3538_v13  ;;  %v3575_v39 = vadd.f32 %v3574_v35, %v3560_v34 }
 0x1a2   : > { %v3540_v40 = vadd.f32 %v5728_v46, %v3539_v38  ;;  %v3576_v41 = vadd.f32 %v3575_v39, %v3561_v37 }
 0x1a4   : > { %v3577_v44 = vadd.f32 %v3576_v41, %v3562_v16  ;;  %v3541_v45 = vadd.f32 %v4721_v50, %v3540_v40  ;;  %v3568_v50 = vmul.f32 %v4723_v3, %v4723_v3 }
 0x1a6   : > { %v3542_v48 = vadd.f32 %v5726_v43, %v3541_v45  ;;  %v3578_v36 = vadd.f32 %v3577_v44, %v3563_v42 }
 0x1a8   : > { %v3543_v14 = vadd.f32 %v5730_v1, %v3542_v48  ;;  %v3579_v26 = vadd.f32 %v3578_v36, %v3564_v47 }
 0x1aa   : > { %v3544_v46 = vadd.f32 %v4725_v7, %v3543_v14  ;;  %v3580_v54 = vadd.f32 %v3579_v26, %v3565_v49 }
 0x1ac   : > { %v3545_v55 = vadd.f32 %v4729_v28, %v3544_v46  ;;  %v3581_v57 = vadd.f32 %v3580_v54, %v3566_v52 }
 0x1ae   : > { %v3546_v58 = vadd.f32 %v4723_v3, %v3545_v55  ;;  %v3582_v59 = vadd.f32 %v3581_v57, %v3567_v56 }
 0x1b0   : > { %v3547_v43 = vadd.f32 %v4727_v9, %v3546_v58  ;;  %v3583_v62 = vadd.f32 %v3582_v59, %v3568_v50 }
 0x1b2   : > { %v3548_v63 = vrot.slane %v3547_v43, 4  ;;  %v3584_v2 = vadd.f32 %v3583_v62, %v3569_v60 }
 0x1b4   : > { %v3549_v4 = vadd.f32 %v3548_v63, %v3547_v43  ;;  %v3585_v1 = vrot.slane %v3584_v2, 4 }
 0x1b6   : > { %v3550_v5 = vrot.slane %v3549_v4, 2  ;;  %v3586_v51 = vadd.f32 %v3585_v1, %v3584_v2 }
 0x1b8   : > { %v3551_v6 = vadd.f32 %v3550_v5, %v3549_v4  ;;  %v3587_v53 = vrot.slane %v3586_v51, 2 }
 0x1ba   : > { %v3552_v7 = vrot.slane %v3551_v6, 1  ;;  %v3588_v8 = vadd.f32 %v3587_v53, %v3586_v51 }
 0x1bc   : > { %v3589_v61 = vrot.slane %v3588_v8, 1  ;;  %v3553_v3 = vadd.f32 %v3552_v7, %v3551_v6 }
 0x1be   : > { %v3590_v0 = vadd.f32 %v3589_v61, %v3588_v8 }
 0x1c0   : > { %v3592_v9 = vsel %vm3591_vm6, %v3553_v3, %v3590_v0 }
 0x1c1   : > { %3593 = vst [vmem:[%s214_s12] sm:$0x3] %v3592_v9 }
 0x1c2 PF: > { %s14_s16 = sadd.s32 1, %s5009_s16   ;;  %s5789_s12 = smov %s5001_s14 }
 0x1c3   : > { %p11_p8 = scmp.ge.s32.totalorder %s14_s16, 6   ;;  %s5790_s13 = smov %s5005_s15 }
 0x1c4   : > { %s5791_s14 = smov %s5794_s17  ;;  %s5792_s15 = smov %s5798_s18 }
 0x1c5   :  { %13 = sbr.rel (!%p11_p8) target bundleno = 3 (0x3), region = 81 }

</bundles_post_ra>
